<compile_context>
chip_gen: v5e
topology: v5e:2x2
jax: 0.10.0
libtpu: 0.0.40
codegen_flags: <defaults>
</compile_context>

<pallas_src>
import functools

import jax
import jax.numpy as jnp
from jax import lax
from jax.experimental import pallas as pl
from jax.experimental.pallas import tpu as pltpu  # noqa: F401  (kept for TPU-specific tuning hooks)

B, CIN, H, W = 2, 4, 16, 16
COUT = 32            # channel width of the synthetic "resnet_feature" output
NUM_CLASSES = 16     # synthetic multi-label classifier width (self.fc); power of 2
TOP_N = 2            # self.top_n_img_pred
HW = H * W
KK = 9 * CIN         # im2col contraction size


def _lex_argmax(vals, idxs):
    """Compare-and-select max over the last axis carrying (value, index).

    Lexicographic on (value, -index): on equal values the LOWER index wins,
    matching lax.top_k / torch.sort(descending) first-index tie-break.
    Requires the last dim to be a power of two (NUM_CLASSES = 16).
    """
    n = vals.shape[-1]
    while n > 1:
        half = n // 2
        lo_v, hi_v = vals[:, :half], vals[:, half:]
        lo_i, hi_i = idxs[:, :half], idxs[:, half:]
        take_hi = (hi_v > lo_v) | ((hi_v == lo_v) & (hi_i < lo_i))
        vals = jnp.where(take_hi, hi_v, lo_v)
        idxs = jnp.where(take_hi, hi_i, lo_i)
        n = half
    return vals, idxs                                   # (B, 1), (B, 1)


# ---------------------------------------------------------------------------
# Single fused kernel: im2col + conv3x3 (matmul) + bias + ReLU + avg-pool
#                      + fc + sigmoid + top-2
# ---------------------------------------------------------------------------
def _fused_kernel(x_ref, wconv_ref, bconv_ref, wfc_ref, bfc_ref,
                  feat_ref, prob_ref, idx_ref):
    # x_ref:     (B, H+2, W+2, CIN) f32  (zero-padded NHWC input)
    # wconv_ref: (9*CIN, COUT) f32       bconv_ref: (1, COUT) f32
    # wfc_ref:   (COUT, NUM_CLASSES) f32 bfc_ref:   (1, NUM_CLASSES) f32
    # feat_ref:  (B, HW, COUT) f32
    # prob_ref:  (B, TOP_N) f32          idx_ref:   (B, TOP_N) i32
    xp = x_ref[...]                                     # (B, H+2, W+2, CIN)

    # --- in-kernel im2col: 9 shifted windows -> (B*HW, 9*CIN) patch matrix ---
    # Column order is tap-major / channel-minor, matching wconv.reshape(9*CIN, COUT).
    cols = []
    for kh in range(3):
        for kw in range(3):
            col = xp[:, kh:kh + H, kw:kw + W, :]        # (B, H, W, CIN) static slice
            cols.append(col.reshape(B * HW, CIN))       # collapse leading dims
    patches = jnp.concatenate(cols, axis=-1)            # (B*HW, 9*CIN)

    # --- conv 3x3 as one MXU matmul: bf16 operands, f32 accumulation ---
    acc = jnp.dot(patches.astype(jnp.bfloat16),
                  wconv_ref[...].astype(jnp.bfloat16),
                  preferred_element_type=jnp.float32)   # (B*HW, COUT) f32
    feat = jnp.maximum(acc + bconv_ref[...], 0.0)       # bias + ReLU (f32)
    feat3 = feat.reshape(B, HW, COUT)
    feat_ref[...] = feat3                               # == feature.view().permute()

    # --- head: AdaptiveAvgPool2d((1,1)) + fc + sigmoid (all f32) ---
    pooled = jnp.mean(feat3, axis=1)                    # (B, COUT)
    logits = jnp.dot(pooled, wfc_ref[...],
                     preferred_element_type=jnp.float32) + bfc_ref[...]
    probs = jax.nn.sigmoid(logits)                      # (B, NUM_CLASSES)

    # --- torch.sort(descending)[:, :2] == top-2 (value, index) ---
    col_ids = lax.broadcasted_iota(jnp.int32, probs.shape, 1)
    p1, i1 = _lex_argmax(probs, col_ids)
    masked = jnp.where(col_ids == i1, -jnp.inf, probs)  # drop winner by INDEX (robust)
    p2, i2 = _lex_argmax(masked, col_ids)

    prob_ref[...] = jnp.concatenate([p1, p2], axis=-1)  # (B, 2) f32
    idx_ref[...] = jnp.concatenate([i1, i2], axis=-1)   # (B, 2) i32


_fused_call = pl.pallas_call(
    _fused_kernel,
    # No grid: whole problem (< 1 MiB incl. tile padding) lives in VMEM in one
    # step on a single TensorCore — avoids per-grid-step overhead and re-DMA of
    # the weights.  Default BlockSpecs (full arrays in VMEM) are exactly right.
    out_shape=(
        jax.ShapeDtypeStruct((B, HW, COUT), jnp.float32),
        jax.ShapeDtypeStruct((B, TOP_N), jnp.float32),
        jax.ShapeDtypeStruct((B, TOP_N), jnp.int32),
    ),
)


# ---------------------------------------------------------------------------
# Wrapper: layout plumbing only (transpose + pad), fully fused under jax.jit
# ---------------------------------------------------------------------------
@functools.partial(jax.jit, static_argnames=("using_kws", "gen_kws"))
def multilabel_feature_extractor(x_nchw, wconv, bconv, wfc, bfc,
                                 using_kws=True, gen_kws=True):
    """Forward pass of MultiLabelFeatureExtractor.

    Returns (feature [B, H*W, Cout], kws_tuple); kws_tuple carries the top-2
    class indices and sigmoid probabilities (the device-side inputs of
    get_kw_char_idx).
    """
    x_nhwc = jnp.transpose(x_nchw, (0, 2, 3, 1)).astype(jnp.float32)
    xpad = jnp.pad(x_nhwc, ((0, 0), (1, 1), (1, 1), (0, 0)))   # 3x3 conv, pad=1
    w_flat = wconv.reshape(KK, COUT)
    # The classifier head is fused into the same kernel; when kws are disabled
    # its (negligible) extra work is simply discarded.
    feature, top_prob, top_idx = _fused_call(xpad, w_flat, bconv, wfc, bfc)

    kws_tuple = None
    if gen_kws and using_kws:
        # TODO(synk): get_kw_char_idx (python dict lookups, random.choice of keyword
        # strings, char tokenization, pad_sequence) is host-side and has no Pallas
        # equivalent; we return the device-side (top_idx, top_prob) it consumes.
        kws_tuple = (top_idx, top_prob)
    return feature, kws_tuple


# ---------------------------------------------------------------------------
# Pure-JAX reference for verification (mirrors the kernel's bf16 MXU operands
# for the conv matmul; accumulation and everything else stay f32)
# ---------------------------------------------------------------------------
def reference(x_nchw, wconv, bconv, wfc, bfc):
    x_nhwc = jnp.transpose(x_nchw, (0, 2, 3, 1)).astype(jnp.float32)
    xp = jnp.pad(x_nhwc, ((0, 0), (1, 1), (1, 1), (0, 0)))
    cols = [xp[:, kh:kh + H, kw:kw + W, :] for kh in range(3) for kw in range(3)]
    patches = jnp.stack(cols, axis=3).reshape(B * HW, KK)      # tap-major, chan-minor
    feat = jnp.maximum(
        jnp.dot(patches.astype(jnp.bfloat16),
                wconv.reshape(KK, COUT).astype(jnp.bfloat16),
                preferred_element_type=jnp.float32) + bconv, 0.0)
    feat = feat.reshape(B, HW, COUT)
    pooled = feat.mean(axis=1)
    probs = jax.nn.sigmoid(pooled @ wfc + bfc)
    top_p, top_i = lax.top_k(probs, TOP_N)
    return feat, top_p, top_i.astype(jnp.int32)


if __name__ == "__main__":
    key = jax.random.PRNGKey(0)
    kx, kw1, kb1, kw2, kb2 = jax.random.split(key, 5)

    x = jax.random.normal(kx, (B, CIN, H, W), jnp.float32)               # NCHW input
    wconv = jax.random.normal(kw1, (9, CIN, COUT), jnp.float32) * 0.1    # conv trunk
    bconv = jax.random.normal(kb1, (1, COUT), jnp.float32) * 0.1
    wfc = jax.random.normal(kw2, (COUT, NUM_CLASSES), jnp.float32) * 0.1  # self.fc
    bfc = jax.random.normal(kb2, (1, NUM_CLASSES), jnp.float32) * 0.1

    feature, kws_tuple = multilabel_feature_extractor(x, wconv, bconv, wfc, bfc,
                                                      using_kws=True, gen_kws=True)
    feature = jax.block_until_ready(feature)
    top_idx, top_prob = kws_tuple
    top_idx = jax.block_until_ready(top_idx)
    top_prob = jax.block_until_ready(top_prob)

    ref_feat, ref_prob, ref_idx = reference(x, wconv, bconv, wfc, bfc)
    assert feature.shape == (B, HW, COUT)
    assert jnp.allclose(feature, ref_feat, atol=1e-4, rtol=1e-4)
    assert top_prob.shape == (B, TOP_N) and top_idx.shape == (B, TOP_N)
    assert jnp.allclose(top_prob, ref_prob, atol=1e-4, rtol=1e-4)
    assert jnp.array_equal(top_idx, ref_idx)
    print("KERNEL_OK")
</pallas_src>

<mosaic_0001>
module attributes {stable_mosaic.version = 11 : i64} {
  func.func @_fused_kernel(%arg0: memref<2x18x18x4xf32, #tpu.memory_space<vmem>>, %arg1: memref<36x32xf32, #tpu.memory_space<vmem>>, %arg2: memref<1x32xf32, #tpu.memory_space<vmem>>, %arg3: memref<32x16xf32, #tpu.memory_space<vmem>>, %arg4: memref<1x16xf32, #tpu.memory_space<vmem>>, %arg5: memref<2x256x32xf32, #tpu.memory_space<vmem>>, %arg6: memref<2x2xf32, #tpu.memory_space<vmem>>, %arg7: memref<2x2xi32, #tpu.memory_space<vmem>>) attributes {dimension_semantics = [], scalar_prefetch = 0 : i64, scratch_operands = 0 : i64, tpu.core_type = #tpu.core_type<tc>} {
    %c0 = arith.constant 0 : index
    %c0_0 = arith.constant 0 : index
    %c0_1 = arith.constant 0 : index
    %c0_2 = arith.constant 0 : index
    %0 = vector.load %arg0[%c0, %c0_0, %c0_1, %c0_2] : memref<2x18x18x4xf32, #tpu.memory_space<vmem>>, vector<2x18x18x4xf32>
    %1 = vector.extract_strided_slice %0 {offsets = [0, 0, 0, 0], sizes = [2, 16, 16, 4], strides = [1, 1, 1, 1]} : vector<2x18x18x4xf32> to vector<2x16x16x4xf32>
    %2 = vector.shape_cast %1 : vector<2x16x16x4xf32> to vector<512x4xf32>
    %3 = vector.extract_strided_slice %0 {offsets = [0, 0, 1, 0], sizes = [2, 16, 16, 4], strides = [1, 1, 1, 1]} : vector<2x18x18x4xf32> to vector<2x16x16x4xf32>
    %4 = vector.shape_cast %3 : vector<2x16x16x4xf32> to vector<512x4xf32>
    %5 = vector.extract_strided_slice %0 {offsets = [0, 0, 2, 0], sizes = [2, 16, 16, 4], strides = [1, 1, 1, 1]} : vector<2x18x18x4xf32> to vector<2x16x16x4xf32>
    %6 = vector.shape_cast %5 : vector<2x16x16x4xf32> to vector<512x4xf32>
    %7 = vector.extract_strided_slice %0 {offsets = [0, 1, 0, 0], sizes = [2, 16, 16, 4], strides = [1, 1, 1, 1]} : vector<2x18x18x4xf32> to vector<2x16x16x4xf32>
    %8 = vector.shape_cast %7 : vector<2x16x16x4xf32> to vector<512x4xf32>
    %9 = vector.extract_strided_slice %0 {offsets = [0, 1, 1, 0], sizes = [2, 16, 16, 4], strides = [1, 1, 1, 1]} : vector<2x18x18x4xf32> to vector<2x16x16x4xf32>
    %10 = vector.shape_cast %9 : vector<2x16x16x4xf32> to vector<512x4xf32>
    %11 = vector.extract_strided_slice %0 {offsets = [0, 1, 2, 0], sizes = [2, 16, 16, 4], strides = [1, 1, 1, 1]} : vector<2x18x18x4xf32> to vector<2x16x16x4xf32>
    %12 = vector.shape_cast %11 : vector<2x16x16x4xf32> to vector<512x4xf32>
    %13 = vector.extract_strided_slice %0 {offsets = [0, 2, 0, 0], sizes = [2, 16, 16, 4], strides = [1, 1, 1, 1]} : vector<2x18x18x4xf32> to vector<2x16x16x4xf32>
    %14 = vector.shape_cast %13 : vector<2x16x16x4xf32> to vector<512x4xf32>
    %15 = vector.extract_strided_slice %0 {offsets = [0, 2, 1, 0], sizes = [2, 16, 16, 4], strides = [1, 1, 1, 1]} : vector<2x18x18x4xf32> to vector<2x16x16x4xf32>
    %16 = vector.shape_cast %15 : vector<2x16x16x4xf32> to vector<512x4xf32>
    %17 = vector.extract_strided_slice %0 {offsets = [0, 2, 2, 0], sizes = [2, 16, 16, 4], strides = [1, 1, 1, 1]} : vector<2x18x18x4xf32> to vector<2x16x16x4xf32>
    %18 = vector.shape_cast %17 : vector<2x16x16x4xf32> to vector<512x4xf32>
    %19 = tpu.concatenate %2, %4, %6, %8, %10, %12, %14, %16, %18 in 1 : vector<512x4xf32>, vector<512x4xf32>, vector<512x4xf32>, vector<512x4xf32>, vector<512x4xf32>, vector<512x4xf32>, vector<512x4xf32>, vector<512x4xf32>, vector<512x4xf32> -> vector<512x36xf32>
    %20 = arith.truncf %19 : vector<512x36xf32> to vector<512x36xbf16>
    %c0_3 = arith.constant 0 : index
    %c0_4 = arith.constant 0 : index
    %21 = vector.load %arg1[%c0_3, %c0_4] : memref<36x32xf32, #tpu.memory_space<vmem>>, vector<36x32xf32>
    %22 = arith.truncf %21 : vector<36x32xf32> to vector<36x32xbf16>
    %cst = arith.constant dense<0.000000e+00> : vector<512x32xf32>
    %23 = tpu.matmul %20, %22, %cst {dimension_numbers = #tpu.dot_dimension_numbers<[1], [0], [0], [1], [0, 0, 1, 1], [], []>} : vector<512x36xbf16>, vector<36x32xbf16>, vector<512x32xf32> -> vector<512x32xf32>
    %c0_5 = arith.constant 0 : index
    %c0_6 = arith.constant 0 : index
    %24 = vector.load %arg2[%c0_5, %c0_6] : memref<1x32xf32, #tpu.memory_space<vmem>>, vector<1x32xf32>
    %25 = vector.broadcast %24 : vector<1x32xf32> to vector<512x32xf32>
    %26 = arith.addf %23, %25 : vector<512x32xf32>
    %cst_7 = arith.constant 0.000000e+00 : f32
    %27 = vector.broadcast %cst_7 : f32 to vector<512x32xf32>
    %28 = arith.maximumf %26, %27 : vector<512x32xf32>
    %29 = vector.shape_cast %28 : vector<512x32xf32> to vector<2x256x32xf32>
    %c0_8 = arith.constant 0 : index
    %c0_9 = arith.constant 0 : index
    %c0_10 = arith.constant 0 : index
    %30 = vector.load %arg5[%c0_8, %c0_9, %c0_10] : memref<2x256x32xf32, #tpu.memory_space<vmem>>, vector<2x256x32xf32>
    tpu.vector_store %arg5[%c0_8, %c0_9, %c0_10], %29 {strides = array<i32>} : memref<2x256x32xf32, #tpu.memory_space<vmem>>, vector<2x256x32xf32>,
    %cst_11 = arith.constant dense<0.000000e+00> : vector<2x32xf32>
    %31 = vector.multi_reduction <add>, %29, %cst_11 [1] : vector<2x256x32xf32> to vector<2x32xf32>
    %cst_12 = arith.constant 2.560000e+02 : f32
    %32 = vector.broadcast %cst_12 : f32 to vector<2x32xf32>
    %33 = arith.divf %31, %32 : vector<2x32xf32>
    %c0_13 = arith.constant 0 : index
    %c0_14 = arith.constant 0 : index
    %34 = vector.load %arg3[%c0_13, %c0_14] : memref<32x16xf32, #tpu.memory_space<vmem>>, vector<32x16xf32>
    %cst_15 = arith.constant dense<0.000000e+00> : vector<2x16xf32>
    %35 = tpu.matmul %33, %34, %cst_15 {dimension_numbers = #tpu.dot_dimension_numbers<[1], [0], [0], [1], [0, 0, 1, 1], [], []>} : vector<2x32xf32>, vector<32x16xf32>, vector<2x16xf32> -> vector<2x16xf32>
    %c0_16 = arith.constant 0 : index
    %c0_17 = arith.constant 0 : index
    %36 = vector.load %arg4[%c0_16, %c0_17] : memref<1x16xf32, #tpu.memory_space<vmem>>, vector<1x16xf32>
    %37 = vector.broadcast %36 : vector<1x16xf32> to vector<2x16xf32>
    %38 = arith.addf %35, %37 : vector<2x16xf32>
    %39 = arith.negf %38 : vector<2x16xf32>
    %40 = math.exp %39 : vector<2x16xf32>
    %cst_18 = arith.constant 1.000000e+00 : f32
    %41 = vector.broadcast %cst_18 : f32 to vector<2x16xf32>
    %42 = arith.addf %41, %40 : vector<2x16xf32>
    %43 = arith.divf %41, %42 : vector<2x16xf32>
    %44 = tpu.iota {dimensions = array<i32: 1>} : vector<2x16xi32>
    %45 = vector.extract_strided_slice %43 {offsets = [0, 0], sizes = [2, 8], strides = [1, 1]} : vector<2x16xf32> to vector<2x8xf32>
    %46 = vector.extract_strided_slice %43 {offsets = [0, 8], sizes = [2, 8], strides = [1, 1]} : vector<2x16xf32> to vector<2x8xf32>
    %47 = vector.extract_strided_slice %44 {offsets = [0, 0], sizes = [2, 8], strides = [1, 1]} : vector<2x16xi32> to vector<2x8xi32>
    %48 = vector.extract_strided_slice %44 {offsets = [0, 8], sizes = [2, 8], strides = [1, 1]} : vector<2x16xi32> to vector<2x8xi32>
    %49 = arith.cmpf ogt, %46, %45 : vector<2x8xf32>
    %50 = arith.cmpf oeq, %46, %45 : vector<2x8xf32>
    %51 = arith.cmpi slt, %48, %47 : vector<2x8xi32>
    %52 = arith.andi %50, %51 : vector<2x8xi1>
    %53 = arith.ori %49, %52 : vector<2x8xi1>
    %54 = arith.select %53, %46, %45 : vector<2x8xi1>, vector<2x8xf32>
    %55 = arith.select %53, %48, %47 : vector<2x8xi1>, vector<2x8xi32>
    %56 = vector.extract_strided_slice %54 {offsets = [0, 0], sizes = [2, 4], strides = [1, 1]} : vector<2x8xf32> to vector<2x4xf32>
    %57 = vector.extract_strided_slice %54 {offsets = [0, 4], sizes = [2, 4], strides = [1, 1]} : vector<2x8xf32> to vector<2x4xf32>
    %58 = vector.extract_strided_slice %55 {offsets = [0, 0], sizes = [2, 4], strides = [1, 1]} : vector<2x8xi32> to vector<2x4xi32>
    %59 = vector.extract_strided_slice %55 {offsets = [0, 4], sizes = [2, 4], strides = [1, 1]} : vector<2x8xi32> to vector<2x4xi32>
    %60 = arith.cmpf ogt, %57, %56 : vector<2x4xf32>
    %61 = arith.cmpf oeq, %57, %56 : vector<2x4xf32>
    %62 = arith.cmpi slt, %59, %58 : vector<2x4xi32>
    %63 = arith.andi %61, %62 : vector<2x4xi1>
    %64 = arith.ori %60, %63 : vector<2x4xi1>
    %65 = arith.select %64, %57, %56 : vector<2x4xi1>, vector<2x4xf32>
    %66 = arith.select %64, %59, %58 : vector<2x4xi1>, vector<2x4xi32>
    %67 = vector.extract_strided_slice %65 {offsets = [0, 0], sizes = [2, 2], strides = [1, 1]} : vector<2x4xf32> to vector<2x2xf32>
    %68 = vector.extract_strided_slice %65 {offsets = [0, 2], sizes = [2, 2], strides = [1, 1]} : vector<2x4xf32> to vector<2x2xf32>
    %69 = vector.extract_strided_slice %66 {offsets = [0, 0], sizes = [2, 2], strides = [1, 1]} : vector<2x4xi32> to vector<2x2xi32>
    %70 = vector.extract_strided_slice %66 {offsets = [0, 2], sizes = [2, 2], strides = [1, 1]} : vector<2x4xi32> to vector<2x2xi32>
    %71 = arith.cmpf ogt, %68, %67 : vector<2x2xf32>
    %72 = arith.cmpf oeq, %68, %67 : vector<2x2xf32>
    %73 = arith.cmpi slt, %70, %69 : vector<2x2xi32>
    %74 = arith.andi %72, %73 : vector<2x2xi1>
    %75 = arith.ori %71, %74 : vector<2x2xi1>
    %76 = arith.select %75, %68, %67 : vector<2x2xi1>, vector<2x2xf32>
    %77 = arith.select %75, %70, %69 : vector<2x2xi1>, vector<2x2xi32>
    %78 = vector.extract_strided_slice %76 {offsets = [0, 0], sizes = [2, 1], strides = [1, 1]} : vector<2x2xf32> to vector<2x1xf32>
    %79 = vector.extract_strided_slice %76 {offsets = [0, 1], sizes = [2, 1], strides = [1, 1]} : vector<2x2xf32> to vector<2x1xf32>
    %80 = vector.extract_strided_slice %77 {offsets = [0, 0], sizes = [2, 1], strides = [1, 1]} : vector<2x2xi32> to vector<2x1xi32>
    %81 = vector.extract_strided_slice %77 {offsets = [0, 1], sizes = [2, 1], strides = [1, 1]} : vector<2x2xi32> to vector<2x1xi32>
    %82 = arith.cmpf ogt, %79, %78 : vector<2x1xf32>
    %83 = arith.cmpf oeq, %79, %78 : vector<2x1xf32>
    %84 = arith.cmpi slt, %81, %80 : vector<2x1xi32>
    %85 = arith.andi %83, %84 : vector<2x1xi1>
    %86 = arith.ori %82, %85 : vector<2x1xi1>
    %87 = arith.select %86, %79, %78 : vector<2x1xi1>, vector<2x1xf32>
    %88 = arith.select %86, %81, %80 : vector<2x1xi1>, vector<2x1xi32>
    %89 = vector.broadcast %88 : vector<2x1xi32> to vector<2x16xi32>
    %90 = arith.cmpi eq, %44, %89 : vector<2x16xi32>
    %cst_19 = arith.constant 0xFF800000 : f32
    %91 = vector.broadcast %cst_19 : f32 to vector<2x16xf32>
    %92 = arith.select %90, %91, %43 : vector<2x16xi1>, vector<2x16xf32>
    %93 = vector.extract_strided_slice %92 {offsets = [0, 0], sizes = [2, 8], strides = [1, 1]} : vector<2x16xf32> to vector<2x8xf32>
    %94 = vector.extract_strided_slice %92 {offsets = [0, 8], sizes = [2, 8], strides = [1, 1]} : vector<2x16xf32> to vector<2x8xf32>
    %95 = vector.extract_strided_slice %44 {offsets = [0, 0], sizes = [2, 8], strides = [1, 1]} : vector<2x16xi32> to vector<2x8xi32>
    %96 = vector.extract_strided_slice %44 {offsets = [0, 8], sizes = [2, 8], strides = [1, 1]} : vector<2x16xi32> to vector<2x8xi32>
    %97 = arith.cmpf ogt, %94, %93 : vector<2x8xf32>
    %98 = arith.cmpf oeq, %94, %93 : vector<2x8xf32>
    %99 = arith.cmpi slt, %96, %95 : vector<2x8xi32>
    %100 = arith.andi %98, %99 : vector<2x8xi1>
    %101 = arith.ori %97, %100 : vector<2x8xi1>
    %102 = arith.select %101, %94, %93 : vector<2x8xi1>, vector<2x8xf32>
    %103 = arith.select %101, %96, %95 : vector<2x8xi1>, vector<2x8xi32>
    %104 = vector.extract_strided_slice %102 {offsets = [0, 0], sizes = [2, 4], strides = [1, 1]} : vector<2x8xf32> to vector<2x4xf32>
    %105 = vector.extract_strided_slice %102 {offsets = [0, 4], sizes = [2, 4], strides = [1, 1]} : vector<2x8xf32> to vector<2x4xf32>
    %106 = vector.extract_strided_slice %103 {offsets = [0, 0], sizes = [2, 4], strides = [1, 1]} : vector<2x8xi32> to vector<2x4xi32>
    %107 = vector.extract_strided_slice %103 {offsets = [0, 4], sizes = [2, 4], strides = [1, 1]} : vector<2x8xi32> to vector<2x4xi32>
    %108 = arith.cmpf ogt, %105, %104 : vector<2x4xf32>
    %109 = arith.cmpf oeq, %105, %104 : vector<2x4xf32>
    %110 = arith.cmpi slt, %107, %106 : vector<2x4xi32>
    %111 = arith.andi %109, %110 : vector<2x4xi1>
    %112 = arith.ori %108, %111 : vector<2x4xi1>
    %113 = arith.select %112, %105, %104 : vector<2x4xi1>, vector<2x4xf32>
    %114 = arith.select %112, %107, %106 : vector<2x4xi1>, vector<2x4xi32>
    %115 = vector.extract_strided_slice %113 {offsets = [0, 0], sizes = [2, 2], strides = [1, 1]} : vector<2x4xf32> to vector<2x2xf32>
    %116 = vector.extract_strided_slice %113 {offsets = [0, 2], sizes = [2, 2], strides = [1, 1]} : vector<2x4xf32> to vector<2x2xf32>
    %117 = vector.extract_strided_slice %114 {offsets = [0, 0], sizes = [2, 2], strides = [1, 1]} : vector<2x4xi32> to vector<2x2xi32>
    %118 = vector.extract_strided_slice %114 {offsets = [0, 2], sizes = [2, 2], strides = [1, 1]} : vector<2x4xi32> to vector<2x2xi32>
    %119 = arith.cmpf ogt, %116, %115 : vector<2x2xf32>
    %120 = arith.cmpf oeq, %116, %115 : vector<2x2xf32>
    %121 = arith.cmpi slt, %118, %117 : vector<2x2xi32>
    %122 = arith.andi %120, %121 : vector<2x2xi1>
    %123 = arith.ori %119, %122 : vector<2x2xi1>
    %124 = arith.select %123, %116, %115 : vector<2x2xi1>, vector<2x2xf32>
    %125 = arith.select %123, %118, %117 : vector<2x2xi1>, vector<2x2xi32>
    %126 = vector.extract_strided_slice %124 {offsets = [0, 0], sizes = [2, 1], strides = [1, 1]} : vector<2x2xf32> to vector<2x1xf32>
    %127 = vector.extract_strided_slice %124 {offsets = [0, 1], sizes = [2, 1], strides = [1, 1]} : vector<2x2xf32> to vector<2x1xf32>
    %128 = vector.extract_strided_slice %125 {offsets = [0, 0], sizes = [2, 1], strides = [1, 1]} : vector<2x2xi32> to vector<2x1xi32>
    %129 = vector.extract_strided_slice %125 {offsets = [0, 1], sizes = [2, 1], strides = [1, 1]} : vector<2x2xi32> to vector<2x1xi32>
    %130 = arith.cmpf ogt, %127, %126 : vector<2x1xf32>
    %131 = arith.cmpf oeq, %127, %126 : vector<2x1xf32>
    %132 = arith.cmpi slt, %129, %128 : vector<2x1xi32>
    %133 = arith.andi %131, %132 : vector<2x1xi1>
    %134 = arith.ori %130, %133 : vector<2x1xi1>
    %135 = arith.select %134, %127, %126 : vector<2x1xi1>, vector<2x1xf32>
    %136 = arith.select %134, %129, %128 : vector<2x1xi1>, vector<2x1xi32>
    %137 = tpu.concatenate %87, %135 in 1 : vector<2x1xf32>, vector<2x1xf32> -> vector<2x2xf32>
    %c0_20 = arith.constant 0 : index
    %c0_21 = arith.constant 0 : index
    %138 = vector.load %arg6[%c0_20, %c0_21] : memref<2x2xf32, #tpu.memory_space<vmem>>, vector<2x2xf32>
    tpu.vector_store %arg6[%c0_20, %c0_21], %137 {strides = array<i32>} : memref<2x2xf32, #tpu.memory_space<vmem>>, vector<2x2xf32>,
    %139 = tpu.concatenate %88, %136 in 1 : vector<2x1xi32>, vector<2x1xi32> -> vector<2x2xi32>
    %c0_22 = arith.constant 0 : index
    %c0_23 = arith.constant 0 : index
    %140 = vector.load %arg7[%c0_22, %c0_23] : memref<2x2xi32, #tpu.memory_space<vmem>>, vector<2x2xi32>
    tpu.vector_store %arg7[%c0_22, %c0_23], %139 {strides = array<i32>} : memref<2x2xi32, #tpu.memory_space<vmem>>, vector<2x2xi32>,
    return
  }
}

</mosaic_0001>

<bundles_post_ra>
// kernel: multilabel_feature_extractor.1
= control target key start
LH: loop header
LB: loop body
LE: loop exit
PB: predicated region body
PF: predicated region fallthrough
CT: control target
= control target key end

     0   :  { %13 = vsyncpa [#allocation3], 0  ;;  %vm230_vm0 = vcmask 1046528   ;;  %s4990_s8 = smov 4   ;;  %s9035_s0 = inlined_call_operand.vmem [shape: f32[2,18,18,4], index: 0, kind: input, shape index: {}]   ;;  %s9036_s1 = inlined_call_operand.vmem [shape: f32[36,32], index: 1, kind: input, shape index: {}]   ;;  %s9037_s2 = inlined_call_operand.vmem [shape: f32[1,32], index: 2, kind: input, shape index: {}]   ;;  %s9038_s3 = inlined_call_operand.vmem [shape: f32[32,16], index: 3, kind: input, shape index: {}]   ;;  %s9039_s4 = inlined_call_operand.vmem [shape: f32[1,16], index: 4, kind: input, shape index: {}]   ;;  %s9040_s5 = inlined_call_operand.vmem [shape: f32[2,256,32], index: 5, kind: output, shape index: {0}]   ;;  %s9041_s6 = inlined_call_operand.hbm [shape: f32[2,2], index: 6, kind: output, shape index: {1}]   ;;  %s9042_s7 = inlined_call_operand.hbm [shape: s32[2,2], index: 7, kind: output, shape index: {2}]  }
   0x1   :  { %v5049_v0 = vld [vmem:[%s9035_s0 + $0x60] sm:$0xff]  ;;  %v5054_v1 = vld [vmem:[%s9035_s0 + $0x68] sm:$0xff]  ;;  %v5059_v2 = vld [vmem:[%s9035_s0 + $0x70] sm:$0x3] }
   0x2   :  { %v251_v3 = vrot.slane %v5049_v0, 1  ;;  %v252_v4 = vrot.slane %v5054_v1, 1  ;;  %v254_v5 = vrot.slane %v5059_v2, 1  ;;  %v5067_v6 = vld [vmem:[%s9035_s0 + $0x30] sm:$0xff]  ;;  %v5072_v7 = vld [vmem:[%s9035_s0 + $0x38] sm:$0xff]  ;;  %v5084_v11 = vld [vmem:[%s9035_s0] sm:$0xff] }
   0x3   :  { %v5077_v8 = vld [vmem:[%s9035_s0 + $0x40] sm:$0x3]  ;;  %v241_v9 = vrot.slane %v5067_v6, 1  ;;  %v242_v10 = vrot.slane %v5072_v7, 1  ;;  %v5089_v12 = vld [vmem:[%s9035_s0 + $0x8] sm:$0xff]  ;;  %v5102_v17 = vld [vmem:[%s9035_s0 + $0x78] sm:$0xff] }
   0x4   :  { %v253_v13 = vsel %vm230_vm0, %v251_v3, %v252_v4  ;;  %v255_v14 = vsel %vm230_vm0, %v252_v4, %v254_v5  ;;  %v244_v15 = vrot.slane %v5077_v8, 1  ;;  %v5097_v16 = vld [vmem:[%s9035_s0 + $0x10] sm:$0x3]  ;;  %v5107_v18 = vld [vmem:[%s9035_s0 + $0x80] sm:$0xff]  ;;  %v231_v21 = vrot.slane %v5084_v11, 1  ;;  %v5121_v23 = vld [vmem:[%s9035_s0 + $0x48] sm:$0xff] }
   0x5   :  { %v5109_v19 = vpack.i.bf16 %v255_v14, %v253_v13  ;;  %v243_v20 = vsel %vm230_vm0, %v241_v9, %v242_v10  ;;  %v5116_v22 = vld [vmem:[%s9035_s0 + $0x88] sm:$0x3]  ;;  %v5126_v24 = vld [vmem:[%s9035_s0 + $0x50] sm:$0xff]  ;;  %v232_v26 = vrot.slane %v5089_v12, 1  ;;  %v234_v27 = vrot.slane %v5097_v16, 1  ;;  %v5146_v33 = vld [vmem:[%s9035_s0 + $0x18] sm:$0xff] }
   0x6   :  { %v245_v25 = vsel %vm230_vm0, %v242_v10, %v244_v15  ;;  %v5134_v28 = vld [vmem:[%s9035_s0 + $0x58] sm:$0x3]  ;;  %v256_v30 = vrot.slane %v5102_v17, 1  ;;  %v257_v31 = vrot.slane %v5107_v18, 1  ;;  %v259_v32 = vrot.slane %v5116_v22, 1  ;;  %v5151_v34 = vld [vmem:[%s9035_s0 + $0x20] sm:$0xff] }
   0x7   :  { %9316 = vst [vmem:[#allocation8_spill] sm:$0xff] %v5109_v19  ;;  %3544 = vrot.lane.b32.xlu2 %v5109_v19, %s4990_s8  ;;  %v5138_v29 = vpack.i.bf16 %v245_v25, %v243_v20  ;;  %v233_v35 = vsel %vm230_vm0, %v231_v21, %v232_v26  ;;  %v235_v36 = vsel %vm230_vm0, %v232_v26, %v234_v27  ;;  %v246_v37 = vrot.slane %v5121_v23, 1  ;;  %v5160_v39 = vld [vmem:[%s9035_s0 + $0x28] sm:$0x3]  ;;  %v5170_v44 = vld [vmem:[%s9035_s0 + $0xc0] sm:$0xff]  ;;  %v5198_v54 = vld [vmem:[%s9035_s0 + $0xb0] sm:$0xff] }
   0x8   :  { %v247_v38 = vrot.slane %v5126_v24, 1  ;;  %v3523_v40 = vpack.i.bf16 %v235_v36, %v233_v35  ;;  %v258_v41 = vsel %vm230_vm0, %v256_v30, %v257_v31  ;;  %v260_v42 = vsel %vm230_vm0, %v257_v31, %v259_v32  ;;  %v5175_v45 = vld [vmem:[%s9035_s0 + $0xc8] sm:$0xff]  ;;  %v5180_v46 = vld [vmem:[%s9035_s0 + $0xd0] sm:$0x3]  ;;  %v5203_v55 = vld [vmem:[%s9035_s0 + $0xb8] sm:$0x3] }
   0x9   :  { %9317 = vst [vmem:[#allocation9_spill] sm:$0xff] %v5138_v29  ;;  %3534 = vrot.lane.b32.xlu1 %v5138_v29, %s4990_s8  ;;  %v249_v43 = vrot.slane %v5134_v28, 1  ;;  %v236_v48 = vrot.slane %v5146_v33, 1  ;;  %v237_v49 = vrot.slane %v5151_v34, 1  ;;  %v5186_v50 = vpack.i.bf16 %v260_v42, %v258_v41  ;;  %v5193_v53 = vld [vmem:[%s9035_s0 + $0xa8] sm:$0xff]  ;;  %v5212_v60 = vld [vmem:[%s9035_s0 + $0x90] sm:$0xff] }
   0xa   :  { %v248_v47 = vsel %vm230_vm0, %v246_v37, %v247_v38  ;;  %3524 = vrot.lane.b32.xlu0 %v3523_v40, %s4990_s8  ;;  %v239_v52 = vrot.slane %v5160_v39, 1  ;;  %v271_v57 = vrot.slane %v5170_v44, 1  ;;  %v272_v58 = vrot.slane %v5175_v45, 1  ;;  %v5217_v61 = vld [vmem:[%s9035_s0 + $0x98] sm:$0xff]  ;;  %v5225_v3 = vld [vmem:[%s9035_s0 + $0xa0] sm:$0x3] }
   0xb   :  { %9318 = vst [vmem:[#allocation10_spill] sm:$0xff] %v5186_v50  ;;  %v250_v51 = vsel %vm230_vm0, %v247_v38, %v249_v43  ;;  %v238_v56 = vsel %vm230_vm0, %v236_v48, %v237_v49  ;;  %v274_v59 = vrot.slane %v5180_v46, 1  ;;  %v266_v4 = vrot.slane %v5193_v53, 1  ;;  %v5244_v25 = vld [vmem:[%s9035_s0 + $0x108] sm:$0xff]  ;;  %v5249_v26 = vld [vmem:[%s9035_s0 + $0x110] sm:$0xff]  ;;  %v5271_v37 = vld [vmem:[%s9035_s0 + $0xf8] sm:$0xff] }
   0xc   :  { %v5219_v62 = vpack.i.bf16 %v250_v51, %v248_v47  ;;  %v240_v63 = vsel %vm230_vm0, %v237_v49, %v239_v52  ;;  %v267_v5 = vrot.slane %v5198_v54, 1  ;;  %v269_v9 = vrot.slane %v5203_v55, 1  ;;  %v5254_v27 = vld [vmem:[%s9035_s0 + $0x118] sm:$0x3]  ;;  %v5266_v36 = vld [vmem:[%s9035_s0 + $0xf0] sm:$0xff]  ;;  %v5292_v49 = vld [vmem:[%s9035_s0 + $0xe0] sm:$0xff] }
   0xd   :  { %v5232_v10 = vpack.i.bf16 %v240_v63, %v238_v56  ;;  %v261_v13 = vrot.slane %v5212_v60, 1  ;;  %v262_v14 = vrot.slane %v5217_v61, 1  ;;  %v273_v15 = vsel %vm230_vm0, %v271_v57, %v272_v58  ;;  %v5276_v38 = vld [vmem:[%s9035_s0 + $0x100] sm:$0x3]  ;;  %v5285_v47 = vld [vmem:[%s9035_s0 + $0xd8] sm:$0xff]  ;;  %v5310_v63 = vld [vmem:[%s9035_s0 + $0x150] sm:$0xff] }
   0xe   :  { %9319 = vst [vmem:[#allocation11_spill] sm:$0xff] %v5219_v62  ;;  %v275_v20 = vsel %vm230_vm0, %v272_v58, %v274_v59  ;;  %v264_v21 = vrot.slane %v5225_v3, 1  ;;  %v268_v30 = vsel %vm230_vm0, %v266_v4, %v267_v5  ;;  %v270_v31 = vsel %vm230_vm0, %v267_v5, %v269_v9  ;;  %v5297_v51 = vld [vmem:[%s9035_s0 + $0xe8] sm:$0x3]  ;;  %v5315_v4 = vld [vmem:[%s9035_s0 + $0x158] sm:$0xff] }
   0xf   :  { %3549 = vrot.lane.b32.xlu2 %v5186_v50, %s4990_s8  ;;  %9320 = vst [vmem:[#allocation12_spill] sm:$0xff] %v5232_v10  ;;  %v5260_v32 = vpack.i.bf16 %v275_v20, %v273_v15  ;;  %v263_v35 = vsel %vm230_vm0, %v261_v13, %v262_v14  ;;  %v286_v41 = vrot.slane %v5244_v25, 1  ;;  %v287_v42 = vrot.slane %v5249_v26, 1  ;;  %v5326_v15 = vld [vmem:[%s9035_s0 + $0x160] sm:$0x3] }
  0x10   :  { %v265_v40 = vsel %vm230_vm0, %v262_v14, %v264_v21  ;;  %v289_v43 = vrot.slane %v5254_v27, 1  ;;  %v5287_v48 = vpack.i.bf16 %v270_v31, %v268_v30  ;;  %v281_v52 = vrot.slane %v5266_v36, 1  ;;  %9324 = vst [vmem:[#allocation16_spill] sm:$0xff] %v5326_v15 }
  0x11   :  { %3539 = vrot.lane.b32.xlu1 %v5219_v62, %s4990_s8  ;;  %9321 = vst [vmem:[#allocation13_spill] sm:$0xff] %v5260_v32  ;;  %v282_v56 = vrot.slane %v5271_v37, 1  ;;  %v284_v57 = vrot.slane %v5276_v38, 1  ;;  %v5304_v58 = vpack.i.bf16 %v265_v40, %v263_v35  ;;  %v276_v59 = vrot.slane %v5285_v47, 1 }
  0x12   :  { %3529 = vrot.lane.b32.xlu0 %v5232_v10, %s4990_s8  ;;  %9322 = vst [vmem:[#allocation14_spill] sm:$0xff] %v5287_v48  ;;  %v288_v5 = vsel %vm230_vm0, %v286_v41, %v287_v42  ;;  %v290_v9 = vsel %vm230_vm0, %v287_v42, %v289_v43  ;;  %v277_v13 = vrot.slane %v5292_v49, 1  ;;  %v279_v14 = vrot.slane %v5297_v51, 1 }
  0x13   :  { %9323 = vst [vmem:[#allocation15_spill] sm:$0xff] %v5304_v58 }
  0x17   :  { %3564 = vrot.lane.b32.xlu2 %v5260_v32, %s4990_s8 }
  0x19   :  { %3559 = vrot.lane.b32.xlu1 %v5287_v48, %s4990_s8 }
  0x1a   :  { %14 = vsyncpa [#allocation5], 0  ;;  %v283_v20 = vsel %vm230_vm0, %v281_v52, %v282_v56  ;;  %v285_v21 = vsel %vm230_vm0, %v282_v56, %v284_v57  ;;  %3554 = vrot.lane.b32.xlu0 %v5304_v58, %s4990_s8  ;;  %v5332_v30 = vpack.i.bf16 %v290_v9, %v288_v5  ;;  %v301_v31 = vrot.slane %v5310_v63, 1  ;;  %v5339_v40 = vld [vmem:[%s9035_s0 + $0x138] sm:$0xff]  ;;  %v5344_v41 = vld [vmem:[%s9035_s0 + $0x140] sm:$0xff]  ;;  %s4991_s17 = smov 8  }
  0x1b   :  { %v302_v35 = vrot.slane %v5315_v4, 1  ;;  %9326 = vst [vmem:[#allocation18_spill] sm:$0xff] %v5339_v40  ;;  %v5349_v42 = vld [vmem:[%s9035_s0 + $0x148] sm:$0x3]  ;;  %v278_v43 = vsel %vm230_vm0, %v276_v59, %v277_v13  ;;  %v280_v52 = vsel %vm230_vm0, %v277_v13, %v279_v14  ;;  %v304_v56 = vrot.slane %v5326_v15, 1  ;;  %v5359_v5 = vld [vmem:[%s9035_s0 + $0x120] sm:$0xff] }
  0x1c   :  { %9325 = vst [vmem:[#allocation17_spill] sm:$0xff] %v5332_v30  ;;  %v5354_v57 = vpack.i.bf16 %v285_v21, %v283_v20  ;;  %v5364_v9 = vld [vmem:[%s9035_s0 + $0x128] sm:$0xff]  ;;  %v5369_v59 = vld [vmem:[%s9035_s0 + $0x130] sm:$0x3]  ;;  %v296_v13 = vrot.slane %v5339_v40, 1  ;;  %v297_v14 = vrot.slane %v5344_v41, 1  ;;  %v5376_v21 = vpack.i.bf16 %v280_v52, %v278_v43 }
  0x1d   :  { %9327 = vst [vmem:[#allocation19_spill] sm:$0xff] %v5344_v41  ;;  %v299_v20 = vrot.slane %v5349_v42, 1  ;;  %v303_v48 = vsel %vm230_vm0, %v301_v31, %v302_v35  ;;  %v305_v32 = vsel %vm230_vm0, %v302_v35, %v304_v56  ;;  %v291_v19 = vrot.slane %v5359_v5, 1  ;;  %v5386_v10 = vld [vmem:[%s9035_s0 + $0x1c8] sm:$0xff]  ;;  %v5391_v43 = vld [vmem:[%s9035_s0 + $0x1d0] sm:$0xff]  ;;  %s4992_s26 = smov 12  }
  0x1e   :  { %9328 = vst [vmem:[#allocation20_spill] sm:$0xff] %v5349_v42  ;;  %v292_v50 = vrot.slane %v5364_v9, 1  ;;  %v294_v58 = vrot.slane %v5369_v59, 1  ;;  %v5398_v31 = vld [vmem:[%s9035_s0 + $0x1d8] sm:$0x3]  ;;  %v298_v35 = vsel %vm230_vm0, %v296_v13, %v297_v14  ;;  %v5404_v56 = vpack.i.bf16 %v305_v32, %v303_v48  ;;  %v5435_v62 = vld [vmem:[%s9035_s0 + $0x168] sm:$0xff] }
  0x1f   :  { %9329 = vst [vmem:[#allocation21_spill] sm:$0xff] %v5354_v57  ;;  %3579 = vrot.lane.b32.xlu2 %v5332_v30, %s4990_s8  ;;  %v300_v52 = vsel %vm230_vm0, %v297_v14, %v299_v20  ;;  %v316_v30 = vrot.slane %v5386_v10, 1  ;;  %v317_v29 = vrot.slane %v5391_v43, 1  ;;  %v5416_v13 = vld [vmem:[%s9035_s0 + $0x1b8] sm:$0xff]  ;;  %v5421_v14 = vld [vmem:[%s9035_s0 + $0x1c0] sm:$0x3] }
  0x20   :  { %9330 = vst [vmem:[#allocation22_spill] sm:$0xff] %v5376_v21  ;;  %v5424_v32 = vsel %vm230_vm0, %v291_v19, %v292_v50  ;;  %v5427_v48 = vsel %vm230_vm0, %v292_v50, %v294_v58  ;;  %v319_v20 = vrot.slane %v5398_v31, 1  ;;  %v5445_v19 = vld [vmem:[%s9035_s0 + $0x178] sm:$0x3]  ;;  %v312_v58 = vrot.slane %v5416_v13, 1  ;;  %s4993_s27 = smov 16  }
  0x21   :  { %9331 = vst [vmem:[#allocation23_spill] sm:$0xff] %v5386_v10  ;;  %3574 = vrot.lane.b32.xlu1 %v5354_v57, %s4990_s8  ;;  %v5411_v57 = vld [vmem:[%s9035_s0 + $0x1b0] sm:$0xff]  ;;  %v306_v42 = vrot.slane %v5435_v62, 1  ;;  %vm391_vm1 = vcmask 1045504   ;;  %s4994_s29 = smov 24   ;;  %s4995_s30 = smov 20  }
  0x22   :  { %9332 = vst [vmem:[#allocation24_spill] sm:$0xff] %v5391_v43  ;;  %3569 = vrot.lane.b32.xlu0 %v5376_v21, %s4990_s8  ;;  %v5430_v21 = vpack.i.bf16 %v300_v52, %v298_v35  ;;  %v5440_v43 = vld [vmem:[%s9035_s0 + $0x170] sm:$0xff]  ;;  %v311_v50 = vrot.slane %v5411_v57, 1  ;;  %v314_v35 = vrot.slane %v5421_v14, 1  ;;  %v5454_v52 = vpack.i.bf16 %v5427_v48, %v5424_v32  ;;  %s4996_s15 = smov 32   ;;  %s4997_s16 = smov 28  }
  0x23   :  { %9333 = vst [vmem:[#allocation25_spill] sm:$0xff] %v5398_v31  ;;  %v5457_v31 = vsel %vm230_vm0, %v316_v30, %v317_v29  ;;  %v5460_v10 = vsel %vm230_vm0, %v317_v29, %v319_v20  ;;  %v5480_v29 = vld [vmem:[%s9035_s0 + $0x220] sm:$0x3]  ;;  %vm2801_vm2 = vcmask 1041408   ;;  %vm2140_vm3 = vcmask 31744   ;;  %s5004_s28 = smov [#allocation4]  }
  0x24   :  { %9334 = vst [vmem:[#allocation26_spill] sm:$0xff] %v5404_v56  ;;  %v313_v30 = vsel %vm230_vm0, %v311_v50, %v312_v58  ;;  %v315_v20 = vsel %vm230_vm0, %v312_v58, %v314_v35  ;;  %v5498_v50 = vld [vmem:[%s9035_s0 + $0x200] sm:$0xff]  ;;  %v5503_v58 = vld [vmem:[%s9035_s0 + $0x208] sm:$0x3]  ;;  %vm2205_vm4 = vcmask 64512   ;;  %vm2270_vm5 = vcmask 97280  }
  0x25   :  { %9335 = vst [vmem:[#allocation27_spill] sm:$0xff] %v5411_v57  ;;  %v307_v57 = vrot.slane %v5440_v43, 1  ;;  %vm2335_vm6 = vcmask 130048   ;;  %vm2400_vm7 = vcmask 162816   ;;  %vm2465_vm8 = vcmask 195584   ;;  %s3448_s9 = sshll.u32 %s9042_s7, 4  ;;  %s3449_s9 = int_to_ptr.hbm [resolvable:$true] %s3448_s9 }
  0x26   :  { %9336 = vst [vmem:[#allocation28_spill] sm:$0xff] %v5416_v13  ;;  %v309_v13 = vrot.slane %v5445_v19, 1  ;;  %vm2530_vm9 = vcmask 228352   ;;  %vm2595_vm10 = vcmask 261120   ;;  %vm2704_vm11 = vcmask 293888   ;;  %s5005_s10 = smov [#allocation2]  }
  0x27   :  { %9337 = vst [vmem:[#allocation29_spill] sm:$0xff] %v5421_v14  ;;  %3594 = vrot.lane.b32.xlu2 %v5404_v56, %s4990_s8  ;;  %v5468_v56 = vld [vmem:[%s9035_s0 + $0x210] sm:$0xff]  ;;  %v5506_v35 = vsel %vm230_vm0, %v306_v42, %v307_v57  ;;  %vm3259_vm13 = vcmask 1041409   ;;  %s3435_s11 = sshll.u32 %s5005_s10, 4  ;;  %s3436_s11 = int_to_ptr.vmem [resolvable:$true] %s3435_s11 }
  0x28   :  { %9338 = vst [vmem:[#allocation30_spill] sm:$0xff] %v5424_v32  ;;  %v3608_v32 = vpack.i.bf16 %v5460_v10, %v5457_v31  ;;  %v331_v14 = vrot.slane %v5468_v56, 1  ;;  %v5525_v42 = vld [vmem:[%s9035_s0 + $0x1f0] sm:$0x3] }
  0x29   :  { %9339 = vst [vmem:[#allocation31_spill] sm:$0xff] %v5427_v48  ;;  %v5473_v48 = vld [vmem:[%s9035_s0 + $0x218] sm:$0xff]  ;;  %3589 = vrot.lane.b32.xlu1 %v5430_v21, %s4990_s8 }
  0x2a   :  { %9340 = vst [vmem:[#allocation32_spill] sm:$0xff] %v5430_v21  ;;  %3584 = vrot.lane.b32.xlu0 %v5454_v52, %s4990_s8  ;;  %v332_v41 = vrot.slane %v5473_v48, 1  ;;  %v5493_v21 = vld [vmem:[%s9035_s0 + $0x1f8] sm:$0xff] }
  0x2b   :  { %9341 = vst [vmem:[#allocation33_spill] sm:$0xff] %v5454_v52  ;;  %v5509_v52 = vsel %vm230_vm0, %v307_v57, %v309_v13  ;;  %v326_v57 = vrot.slane %v5493_v21, 1  ;;  %v327_v13 = vrot.slane %v5498_v50, 1 }
  0x2c   :  { %9342 = vst [vmem:[#allocation34_spill] sm:$0xff] %v5457_v31  ;;  %v3603_v31 = vpack.i.bf16 %v315_v20, %v313_v30  ;;  %v329_v30 = vrot.slane %v5503_v58, 1  ;;  %v5533_v20 = vpack.i.bf16 %v5509_v52, %v5506_v35 }
  0x2d   :  { %9343 = vst [vmem:[#allocation35_spill] sm:$0xff] %v5460_v10  ;;  %v334_v10 = vrot.slane %v5480_v29, 1 }
  0x2e   :  { %9344 = vst [vmem:[#allocation36_spill] sm:$0xff] %v5468_v56  ;;  %v5520_v56 = vld [vmem:[%s9035_s0 + $0x1e8] sm:$0xff] }
  0x2f   :  { %9345 = vst [vmem:[#allocation37_spill] sm:$0xff] %v5473_v48  ;;  %v5515_v48 = vld [vmem:[%s9035_s0 + $0x1e0] sm:$0xff]  ;;  %3609 = vrot.lane.b32.xlu2 %v3608_v32, %s4990_s8  ;;  %v5539_v40 = vsel %vm230_vm0, %v332_v41, %v334_v10  ;;  %v5547_v32 = vld [vmem:[%s9035_s0 + $0x258] sm:$0xff]  ;;  %v5558_v10 = vld [vmem:[%s9035_s0 + $0x268] sm:$0x3] }
  0x30   :  { %9346 = vst [vmem:[#allocation38_spill] sm:$0xff] %v5480_v29  ;;  %v5536_v29 = vsel %vm230_vm0, %v331_v14, %v332_v41  ;;  %v321_v15 = vrot.slane %v5515_v48, 1  ;;  %v5561_v41 = vsel %vm230_vm0, %v326_v57, %v327_v13  ;;  %v5564_v14 = vsel %vm230_vm0, %v327_v13, %v329_v30  ;;  %v5582_v57 = vld [vmem:[%s9035_s0 + $0x248] sm:$0xff]  ;;  %v5587_v13 = vld [vmem:[%s9035_s0 + $0x250] sm:$0x3] }
  0x31   :  { %9347 = vst [vmem:[#allocation39_spill] sm:$0xff] %v5493_v21  ;;  %v322_v21 = vrot.slane %v5520_v56, 1  ;;  %3604 = vrot.lane.b32.xlu1 %v3603_v31, %s4990_s8  ;;  %v346_v31 = vrot.slane %v5547_v32, 1 }
  0x32   :  { %9348 = vst [vmem:[#allocation40_spill] sm:$0xff] %v5498_v50  ;;  %v324_v50 = vrot.slane %v5525_v42, 1  ;;  %3599 = vrot.lane.b32.xlu0 %v5533_v20, %s4990_s8 }
  0x33   :  { %9349 = vst [vmem:[#allocation41_spill] sm:$0xff] %v5503_v58  ;;  %v5590_v30 = vsel %vm230_vm0, %v321_v15, %v322_v21  ;;  %v5613_v15 = vld [vmem:[%s9035_s0 + $0x238] sm:$0x3] }
  0x34   :  { %9350 = vst [vmem:[#allocation42_spill] sm:$0xff] %v5506_v35  ;;  %v5570_v35 = vpack.i.bf16 %v5539_v40, %v5536_v29 }
  0x35   :  { %9351 = vst [vmem:[#allocation43_spill] sm:$0xff] %v5509_v52  ;;  %v5552_v52 = vld [vmem:[%s9035_s0 + $0x260] sm:$0xff] }
  0x36   :  { %9352 = vst [vmem:[#allocation44_spill] sm:$0xff] %v5515_v48  ;;  %v347_v58 = vrot.slane %v5552_v52, 1 }
  0x37   :  { %9353 = vst [vmem:[#allocation45_spill] sm:$0xff] %v5520_v56  ;;  %3624 = vrot.lane.b32.xlu2 %v5570_v35, %s4990_s8 }
  0x38   :  { %9354 = vst [vmem:[#allocation46_spill] sm:$0xff] %v5525_v42  ;;  %v5577_v42 = vld [vmem:[%s9035_s0 + $0x240] sm:$0xff] }
  0x39   :  { %9355 = vst [vmem:[#allocation47_spill] sm:$0xff] %v5533_v20  ;;  %v5593_v20 = vsel %vm230_vm0, %v322_v21, %v324_v50  ;;  %v341_v21 = vrot.slane %v5577_v42, 1  ;;  %v342_v50 = vrot.slane %v5582_v57, 1 }
  0x3a   :  { %9356 = vst [vmem:[#allocation48_spill] sm:$0xff] %v5536_v29  ;;  %v5598_v29 = vpack.i.bf16 %v5564_v14, %v5561_v41 }
  0x3b   :  { %9357 = vst [vmem:[#allocation49_spill] sm:$0xff] %v5539_v40  ;;  %v349_v40 = vrot.slane %v5558_v10, 1 }
  0x3c   :  { %9358 = vst [vmem:[#allocation50_spill] sm:$0xff] %v5547_v32  ;;  %v5608_v32 = vld [vmem:[%s9035_s0 + $0x230] sm:$0xff]  ;;  %3619 = vrot.lane.b32.xlu1 %v5598_v29, %s4990_s8 }
  0x3d   :  { %9359 = vst [vmem:[#allocation51_spill] sm:$0xff] %v5552_v52  ;;  %v5603_v52 = vld [vmem:[%s9035_s0 + $0x228] sm:$0xff]  ;;  %v5628_v56 = vsel %vm230_vm0, %v347_v58, %v349_v40  ;;  %v5648_v40 = vld [vmem:[%s9035_s0 + $0x2b0] sm:$0x3] }
  0x3e   :  { %9360 = vst [vmem:[#allocation52_spill] sm:$0xff] %v5558_v10  ;;  %v5625_v10 = vsel %vm230_vm0, %v346_v31, %v347_v58  ;;  %v336_v48 = vrot.slane %v5603_v52, 1  ;;  %v5651_v58 = vsel %vm230_vm0, %v341_v21, %v342_v50  ;;  %v5677_v21 = vld [vmem:[%s9035_s0 + $0x298] sm:$0x3] }
  0x3f   :  { %9361 = vst [vmem:[#allocation53_spill] sm:$0xff] %v5561_v41  ;;  %v5622_v41 = vpack.i.bf16 %v5593_v20, %v5590_v30 }
  0x40   :  { %9362 = vst [vmem:[#allocation54_spill] sm:$0xff] %v5564_v14  ;;  %v344_v14 = vrot.slane %v5587_v13, 1 }
  0x41   :  { %9363 = vst [vmem:[#allocation55_spill] sm:$0xff] %v5570_v35  ;;  %v5636_v35 = vld [vmem:[%s9035_s0 + $0x2a0] sm:$0xff]  ;;  %3614 = vrot.lane.b32.xlu0 %v5622_v41, %s4990_s8 }
  0x42   :  { %9364 = vst [vmem:[#allocation56_spill] sm:$0xff] %v5577_v42  ;;  %v337_v42 = vrot.slane %v5608_v32, 1  ;;  %v5654_v31 = vsel %vm230_vm0, %v342_v50, %v344_v14  ;;  %v5672_v14 = vld [vmem:[%s9035_s0 + $0x290] sm:$0xff] }
  0x43   :  { %9365 = vst [vmem:[#allocation57_spill] sm:$0xff] %v5582_v57  ;;  %v339_v57 = vrot.slane %v5613_v15, 1 }
  0x44   :  { %9366 = vst [vmem:[#allocation58_spill] sm:$0xff] %v5587_v13  ;;  %v5680_v50 = vsel %vm230_vm0, %v336_v48, %v337_v42  ;;  %v5703_v48 = vld [vmem:[%s9035_s0 + $0x280] sm:$0x3] }
  0x45   :  { %9367 = vst [vmem:[#allocation59_spill] sm:$0xff] %v5590_v30  ;;  %v5660_v30 = vpack.i.bf16 %v5628_v56, %v5625_v10 }
  0x46   :  { %9368 = vst [vmem:[#allocation60_spill] sm:$0xff] %v5593_v20  ;;  %v5641_v20 = vld [vmem:[%s9035_s0 + $0x2a8] sm:$0xff] }
  0x47   :  { %9369 = vst [vmem:[#allocation61_spill] sm:$0xff] %v5598_v29  ;;  %v361_v29 = vrot.slane %v5636_v35, 1  ;;  %v362_v13 = vrot.slane %v5641_v20, 1  ;;  %3639 = vrot.lane.b32.xlu2 %v5660_v30, %s4990_s8 }
  0x48   :  { %9370 = vst [vmem:[#allocation62_spill] sm:$0xff] %v5603_v52 }
  0x49   :  { %9371 = vst [vmem:[#allocation63_spill] sm:$0xff] %v5608_v32 }
  0x4a   :  { %9372 = vst [vmem:[#allocation64_spill] sm:$0xff] %v5613_v15  ;;  %v5667_v15 = vld [vmem:[%s9035_s0 + $0x288] sm:$0xff] }
  0x4b   :  { %9373 = vst [vmem:[#allocation65_spill] sm:$0xff] %v5622_v41  ;;  %v5688_v41 = vpack.i.bf16 %v5654_v31, %v5651_v58 }
  0x4c   :  { %9374 = vst [vmem:[#allocation66_spill] sm:$0xff] %v5625_v10  ;;  %v364_v10 = vrot.slane %v5648_v40, 1 }
  0x4d   :  { %9375 = vst [vmem:[#allocation67_spill] sm:$0xff] %v5628_v56  ;;  %v5683_v56 = vsel %vm230_vm0, %v337_v42, %v339_v57  ;;  %v356_v42 = vrot.slane %v5667_v15, 1  ;;  %v357_v57 = vrot.slane %v5672_v14, 1  ;;  %3634 = vrot.lane.b32.xlu1 %v5688_v41, %s4990_s8 }
  0x4e   :  { %9376 = vst [vmem:[#allocation68_spill] sm:$0xff] %v5636_v35  ;;  %v5698_v35 = vld [vmem:[%s9035_s0 + $0x278] sm:$0xff]  ;;  %v5718_v32 = vsel %vm230_vm0, %v362_v13, %v364_v10 }
  0x4f   :  { %9377 = vst [vmem:[#allocation69_spill] sm:$0xff] %v5641_v20  ;;  %v5693_v20 = vld [vmem:[%s9035_s0 + $0x270] sm:$0xff]  ;;  %v5741_v10 = vsel %vm230_vm0, %v356_v42, %v357_v57  ;;  %v5767_v42 = vld [vmem:[%s9035_s0 + $0x2e0] sm:$0x3] }
  0x50   :  { %9378 = vst [vmem:[#allocation70_spill] sm:$0xff] %v5648_v40  ;;  %v5715_v40 = vsel %vm230_vm0, %v361_v29, %v362_v13  ;;  %v351_v52 = vrot.slane %v5693_v20, 1  ;;  %v5738_v29 = vld [vmem:[%s9035_s0 + $0x2f8] sm:$0x3] }
  0x51   :  { %9379 = vst [vmem:[#allocation71_spill] sm:$0xff] %v5651_v58  ;;  %v5712_v58 = vpack.i.bf16 %v5683_v56, %v5680_v50 }
  0x52   :  { %9380 = vst [vmem:[#allocation72_spill] sm:$0xff] %v5654_v31  ;;  %v359_v31 = vrot.slane %v5677_v21, 1 }
  0x53   :  { %9381 = vst [vmem:[#allocation73_spill] sm:$0xff] %v5660_v30  ;;  %v5726_v30 = vld [vmem:[%s9035_s0 + $0x2e8] sm:$0xff]  ;;  %3629 = vrot.lane.b32.xlu0 %v5712_v58, %s4990_s8 }
  0x54   :  { %9382 = vst [vmem:[#allocation74_spill] sm:$0xff] %v5667_v15  ;;  %v352_v15 = vrot.slane %v5698_v35, 1  ;;  %v5744_v13 = vsel %vm230_vm0, %v357_v57, %v359_v31  ;;  %v5762_v31 = vld [vmem:[%s9035_s0 + $0x2d8] sm:$0xff] }
  0x55   :  { %9383 = vst [vmem:[#allocation75_spill] sm:$0xff] %v5672_v14  ;;  %v354_v14 = vrot.slane %v5703_v48, 1 }
  0x56   :  { %9384 = vst [vmem:[#allocation76_spill] sm:$0xff] %v5677_v21  ;;  %v5770_v57 = vsel %vm230_vm0, %v351_v52, %v352_v15  ;;  %v5793_v52 = vld [vmem:[%s9035_s0 + $0x2c8] sm:$0x3] }
  0x57   :  { %9385 = vst [vmem:[#allocation77_spill] sm:$0xff] %v5680_v50  ;;  %v5750_v50 = vpack.i.bf16 %v5718_v32, %v5715_v40 }
  0x58   :  { %9386 = vst [vmem:[#allocation78_spill] sm:$0xff] %v5683_v56  ;;  %v5731_v56 = vld [vmem:[%s9035_s0 + $0x2f0] sm:$0xff] }
  0x59   :  { %9387 = vst [vmem:[#allocation79_spill] sm:$0xff] %v5688_v41  ;;  %v376_v41 = vrot.slane %v5726_v30, 1  ;;  %v377_v21 = vrot.slane %v5731_v56, 1  ;;  %3654 = vrot.lane.b32.xlu2 %v5750_v50, %s4990_s8 }
  0x5a   :  { %9388 = vst [vmem:[#allocation80_spill] sm:$0xff] %v5693_v20 }
  0x5b   :  { %9389 = vst [vmem:[#allocation81_spill] sm:$0xff] %v5698_v35 }
  0x5c   :  { %9390 = vst [vmem:[#allocation82_spill] sm:$0xff] %v5703_v48  ;;  %v5757_v48 = vld [vmem:[%s9035_s0 + $0x2d0] sm:$0xff] }
  0x5d   :  { %9391 = vst [vmem:[#allocation83_spill] sm:$0xff] %v5712_v58  ;;  %v5773_v58 = vsel %vm230_vm0, %v352_v15, %v354_v14  ;;  %v371_v15 = vrot.slane %v5757_v48, 1  ;;  %v372_v14 = vrot.slane %v5762_v31, 1 }
  0x5e   :  { %9392 = vst [vmem:[#allocation84_spill] sm:$0xff] %v5715_v40  ;;  %v5778_v40 = vpack.i.bf16 %v5744_v13, %v5741_v10 }
  0x5f   :  { %9393 = vst [vmem:[#allocation85_spill] sm:$0xff] %v5718_v32  ;;  %v379_v32 = vrot.slane %v5738_v29, 1 }
  0x60   :  { %9394 = vst [vmem:[#allocation86_spill] sm:$0xff] %v5726_v30  ;;  %v5788_v30 = vld [vmem:[%s9035_s0 + $0x2c0] sm:$0xff]  ;;  %3649 = vrot.lane.b32.xlu1 %v5778_v40, %s4990_s8 }
  0x61   :  { %9395 = vst [vmem:[#allocation87_spill] sm:$0xff] %v5731_v56  ;;  %v5783_v56 = vld [vmem:[%s9035_s0 + $0x2b8] sm:$0xff]  ;;  %v5808_v35 = vsel %vm230_vm0, %v377_v21, %v379_v32 }
  0x62   :  { %9396 = vst [vmem:[#allocation88_spill] sm:$0xff] %v5738_v29  ;;  %v5805_v29 = vsel %vm230_vm0, %v376_v41, %v377_v21  ;;  %v366_v20 = vrot.slane %v5783_v56, 1  ;;  %v395_v41 = vrot.slane %v5097_v16, 2  ;;  %v5831_v21 = vld [vmem:[%s9035_s0 + $0x318] sm:$0xff]  ;;  %v5841_v16 = vld [vmem:[%s9035_s0 + $0x328] sm:$0x3] }
  0x63   :  { %9397 = vst [vmem:[#allocation89_spill] sm:$0xff] %v5741_v10  ;;  %v5802_v10 = vpack.i.bf16 %v5773_v58, %v5770_v57  ;;  %v5826_v32 = vpack.i.bf16 %v5808_v35, %v5805_v29 }
  0x64   :  { %9398 = vst [vmem:[#allocation90_spill] sm:$0xff] %v5744_v13  ;;  %v374_v13 = vrot.slane %v5767_v42, 1 }
  0x65   :  { %9399 = vst [vmem:[#allocation91_spill] sm:$0xff] %v5750_v50  ;;  %v5816_v50 = vsel %vm230_vm0, %v371_v15, %v372_v14  ;;  %3644 = vrot.lane.b32.xlu0 %v5802_v10, %s4990_s8  ;;  %v5836_v15 = vld [vmem:[%s9035_s0 + $0x320] sm:$0xff]  ;;  %3669 = vrot.lane.b32.xlu2 %v5826_v32, %s4990_s8 }
  0x66   :  { %9400 = vst [vmem:[#allocation92_spill] sm:$0xff] %v5757_v48  ;;  %v367_v48 = vrot.slane %v5788_v30, 1 }
  0x67   :  { %9401 = vst [vmem:[#allocation93_spill] sm:$0xff] %v5762_v31  ;;  %v369_v31 = vrot.slane %v5793_v52, 1 }
  0x68   :  { %9402 = vst [vmem:[#allocation94_spill] sm:$0xff] %v5767_v42 }
  0x69   :  { %9403 = vst [vmem:[#allocation95_spill] sm:$0xff] %v5770_v57 }
  0x6a   :  { %9404 = vst [vmem:[#allocation96_spill] sm:$0xff] %v5773_v58  ;;  %v5819_v58 = vsel %vm230_vm0, %v372_v14, %v374_v13  ;;  %v5844_v13 = vsel %vm230_vm0, %v366_v20, %v367_v48  ;;  %v5847_v14 = vsel %vm230_vm0, %v367_v48, %v369_v31  ;;  %v387_v48 = vrot.slane %v5836_v15, 1 }
  0x6b   :  { %9405 = vst [vmem:[#allocation97_spill] sm:$0xff] %v5778_v40  ;;  %v5859_v40 = vld [vmem:[%s9035_s0 + $0x308] sm:$0xff]  ;;  %v5863_v20 = vpack.i.bf16 %v5819_v58, %v5816_v50  ;;  %v389_v31 = vrot.slane %v5841_v16, 1  ;;  %v5877_v57 = vpack.i.bf16 %v5847_v14, %v5844_v13 }
  0x6c   :  { %9406 = vst [vmem:[#allocation98_spill] sm:$0xff] %v5793_v52 }
  0x6d   :  { %9407 = vst [vmem:[#allocation99_spill] sm:$0xff] %v5802_v10  ;;  %v392_v10 = vrot.slane %v5084_v11, 2  ;;  %v5868_v11 = vld [vmem:[%s9035_s0 + $0x310] sm:$0x3]  ;;  %3664 = vrot.lane.b32.xlu1 %v5863_v20, %s4990_s8  ;;  %3659 = vrot.lane.b32.xlu0 %v5877_v57, %s4990_s8 }
  0x6e   :  { %9408 = vst [vmem:[#allocation100_spill] sm:$0xff] %v5805_v29  ;;  %v5854_v29 = vld [vmem:[%s9035_s0 + $0x300] sm:$0xff] }
  0x6f   :  { %9409 = vst [vmem:[#allocation101_spill] sm:$0xff] %v5808_v35  ;;  %v393_v35 = vrot.slane %v5089_v12, 2  ;;  %v386_v12 = vrot.slane %v5831_v21, 1 }
  0x70   :  { %9410 = vst [vmem:[#allocation102_spill] sm:$0xff] %v5816_v50  ;;  %v382_v50 = vrot.slane %v5859_v40, 1 }
  0x71   :  { %9411 = vst [vmem:[#allocation103_spill] sm:$0xff] %v5819_v58  ;;  %v381_v58 = vrot.slane %v5854_v29, 1  ;;  %v394_v42 = vsel %vm391_vm1, %v392_v10, %v393_v35  ;;  %v396_v52 = vsel %vm391_vm1, %v393_v35, %v395_v41  ;;  %v407_v10 = vrot.slane %v5121_v23, 2 }
  0x72   :  { %9412 = vst [vmem:[#allocation104_spill] sm:$0xff] %v5826_v32  ;;  %v390_v32 = vsel %vm230_vm0, %v387_v48, %v389_v31  ;;  %v408_v35 = vrot.slane %v5126_v24, 2  ;;  %v410_v41 = vrot.slane %v5134_v28, 2  ;;  %v403_v31 = vrot.slane %v5072_v7, 2 }
  0x73   :  { %9413 = vst [vmem:[#allocation105_spill] sm:$0xff] %v5831_v21  ;;  %v384_v21 = vrot.slane %v5868_v11, 1  ;;  %v398_v23 = vrot.slane %v5151_v34, 2 }
  0x74   :  { %9414 = vst [vmem:[#allocation106_spill] sm:$0xff] %v5836_v15  ;;  %v409_v24 = vsel %vm391_vm1, %v407_v10, %v408_v35  ;;  %v411_v28 = vsel %vm391_vm1, %v408_v35, %v410_v41  ;;  %v412_v10 = vrot.slane %v5049_v0, 2  ;;  %v437_v41 = vrot.slane %v5285_v47, 2 }
  0x75   :  { %9415 = vst [vmem:[#allocation107_spill] sm:$0xff] %v5841_v16  ;;  %v388_v16 = vsel %vm230_vm0, %v386_v12, %v387_v48  ;;  %v385_v15 = vsel %vm230_vm0, %v382_v50, %v384_v21  ;;  %v405_v12 = vrot.slane %v5077_v8, 2  ;;  %v402_v48 = vrot.slane %v5067_v6, 2 }
  0x76   :  { %9416 = vst [vmem:[#allocation108_spill] sm:$0xff] %v5844_v13  ;;  %v383_v13 = vsel %vm230_vm0, %v381_v58, %v382_v50  ;;  %v397_v50 = vrot.slane %v5146_v33, 2  ;;  %v5914_v8 = vpack.i.bf16 %v411_v28, %v409_v24  ;;  %v435_v24 = vrot.slane %v5180_v46, 2 }
  0x77   :  { %9417 = vst [vmem:[#allocation109_spill] sm:$0xff] %v5847_v14  ;;  %v3683_v14 = vpack.i.bf16 %v396_v52, %v394_v42  ;;  %v5901_v58 = vpack.i.bf16 %v385_v15, %v383_v13  ;;  %v400_v42 = vrot.slane %v5160_v39, 2  ;;  %v404_v6 = vsel %vm391_vm1, %v402_v48, %v403_v31 }
  0x78   :  { %9418 = vst [vmem:[#allocation110_spill] sm:$0xff] %v5863_v20  ;;  %v406_v7 = vsel %vm391_vm1, %v403_v31, %v405_v12  ;;  %v399_v33 = vsel %vm391_vm1, %v397_v50, %v398_v23  ;;  %v422_v52 = vrot.slane %v5212_v60, 2  ;;  %v423_v39 = vrot.slane %v5217_v61, 2 }
  0x79   :  { %9419 = vst [vmem:[#allocation111_spill] sm:$0xff] %v5868_v11  ;;  %v5895_v11 = vpack.i.bf16 %v390_v32, %v388_v16  ;;  %3684 = vrot.lane.b32.xlu2 %v3683_v14, %s4991_s17  ;;  %3674 = vrot.lane.b32.xlu0 %v5901_v58, %s4990_s8  ;;  %v401_v34 = vsel %vm391_vm1, %v398_v23, %v400_v42  ;;  %v425_v32 = vrot.slane %v5225_v3, 2  ;;  %v417_v15 = vrot.slane %v5102_v17, 2  ;;  %v5937_v17 = vpop.permute.xlu2 %3544 }
  0x7a   :  { %9420 = vst [vmem:[#allocation112_spill] sm:$0xff] %v5877_v57  ;;  %v5921_v21 = vpack.i.bf16 %v406_v7, %v404_v6  ;;  %v418_v16 = vrot.slane %v5107_v18, 2  ;;  %v420_v13 = vrot.slane %v5116_v22, 2  ;;  %v5928_v14 = vpack.i.bf16 %v401_v34, %v399_v33 }
  0x7b   :  { %9421 = vst [vmem:[#allocation113_spill] sm:$0xff] %v5895_v11  ;;  %3679 = vrot.lane.b32.xlu1 %v5895_v11, %s4990_s8  ;;  %v413_v60 = vrot.slane %v5054_v1, 2  ;;  %v415_v61 = vrot.slane %v5059_v2, 2  ;;  %v424_v3 = vsel %vm391_vm1, %v422_v52, %v423_v39  ;;  %v426_v35 = vsel %vm391_vm1, %v423_v39, %v425_v32  ;;  %v9464_v11 = vld [vmem:[#allocation40_spill] sm:$0xff] }
  0x7c   :  { %9422 = vst [vmem:[#allocation114_spill] sm:$0xff] %v5901_v58  ;;  %v419_v18 = vsel %vm391_vm1, %v417_v15, %v418_v16  ;;  %v421_v22 = vsel %vm391_vm1, %v418_v16, %v420_v13  ;;  %v5943_v0 = vpack.i.bf16 %v426_v35, %v424_v3  ;;  %v438_v12 = vrot.slane %v5292_v49, 2 }
  0x7d   :  { %9423 = vst [vmem:[#allocation115_spill] sm:$0xff] %v5937_v17  ;;  %v414_v1 = vsel %vm391_vm1, %v412_v10, %v413_v60  ;;  %v416_v2 = vsel %vm391_vm1, %v413_v60, %v415_v61  ;;  %v440_v48 = vrot.slane %v5297_v51, 2  ;;  %v5950_v31 = vpack.i.bf16 %v421_v22, %v419_v18  ;;  %v9470_v17 = vld [vmem:[#allocation81_spill] sm:$0xff] }
  0x7e   :  { %9424 = vst [vmem:[#allocation116_spill] sm:$0xff] %v5943_v0  ;;  %v432_v50 = vrot.slane %v5170_v44, 2  ;;  %v433_v23 = vrot.slane %v5175_v45, 2  ;;  %v5957_v28 = vpack.i.bf16 %v416_v2, %v414_v1  ;;  %v427_v42 = vrot.slane %v5193_v53, 2 }
  0x7f   :  { %9425 = vst [vmem:[#allocation117_spill] sm:$0xff] %v5950_v31  ;;  %v428_v6 = vrot.slane %v5198_v54, 2  ;;  %v439_v7 = vsel %vm391_vm1, %v437_v41, %v438_v12  ;;  %v441_v51 = vsel %vm391_vm1, %v438_v12, %v440_v48  ;;  %v430_v33 = vrot.slane %v5203_v55, 2  ;;  %v9434_v48 = vld [vmem:[#allocation16_spill] sm:$0xff] }
  0x80   :  { %9426 = vst [vmem:[#allocation118_spill] sm:$0xff] %v5957_v28  ;;  %v434_v45 = vsel %vm391_vm1, %v432_v50, %v433_v23  ;;  %v436_v46 = vsel %vm391_vm1, %v433_v23, %v435_v24  ;;  %v5972_v53 = vpack.i.bf16 %v441_v51, %v439_v7  ;;  %v452_v55 = vrot.slane %v5359_v5, 2  ;;  %v9436_v24 = vld [vmem:[#allocation18_spill] sm:$0xff] }
  0x81   :  { %3699 = vrot.lane.b32.xlu2 %v5914_v8, %s4991_s17  ;;  %3689 = vrot.lane.b32.xlu0 %v5928_v14, %s4991_s17  ;;  %v5966_v44 = vpop.permute.xlu2 %3549  ;;  %v429_v54 = vsel %vm391_vm1, %v427_v42, %v428_v6  ;;  %v431_v34 = vsel %vm391_vm1, %v428_v6, %v430_v33  ;;  %v453_v52 = vrot.slane %v5364_v9, 2  ;;  %v455_v39 = vrot.slane %v5369_v59, 2  ;;  %v9437_v6 = vld [vmem:[#allocation19_spill] sm:$0xff]  ;;  %v9438_v33 = vld [vmem:[#allocation20_spill] sm:$0xff] }
  0x82   :  { %9427 = vst [vmem:[#allocation119_spill] sm:$0xff] %v5966_v44  ;;  %v5979_v32 = vpack.i.bf16 %v436_v46, %v434_v45  ;;  %v447_v15 = vrot.slane %v5244_v25, 2  ;;  %v448_v16 = vrot.slane %v5249_v26, 2  ;;  %v450_v13 = vrot.slane %v5254_v27, 2 }
  0x83   :  { %3694 = vrot.lane.b32.xlu1 %v5921_v21, %s4991_s17  ;;  %9428 = vst [vmem:[#allocation120_spill] sm:$0xff] %v5972_v53  ;;  %v5986_v10 = vpack.i.bf16 %v431_v34, %v429_v54  ;;  %v442_v60 = vrot.slane %v5266_v36, 2  ;;  %v443_v61 = vrot.slane %v5271_v37, 2  ;;  %v454_v3 = vsel %vm391_vm1, %v452_v55, %v453_v52  ;;  %v6030_v55 = vpop.permute.xlu1 %3534 }
  0x84   :  { %9429 = vst [vmem:[#allocation121_spill] sm:$0xff] %v5979_v32  ;;  %v456_v59 = vsel %vm391_vm1, %v453_v52, %v455_v39  ;;  %v445_v35 = vrot.slane %v5276_v38, 2  ;;  %v449_v26 = vsel %vm391_vm1, %v447_v15, %v448_v16  ;;  %v451_v27 = vsel %vm391_vm1, %v448_v16, %v450_v13  ;;  %v9442_v16 = vld [vmem:[#allocation44_spill] sm:$0xff] }
  0x85   :  { %9430 = vst [vmem:[#allocation122_spill] sm:$0xff] %v5986_v10  ;;  %v6001_v36 = vpack.i.bf16 %v456_v59, %v454_v3  ;;  %v444_v37 = vsel %vm391_vm1, %v442_v60, %v443_v61  ;;  %v467_v38 = vrot.slane %v5435_v62, 2  ;;  %v468_v22 = vrot.slane %v5440_v43, 2  ;;  %v9443_v60 = vld [vmem:[#allocation45_spill] sm:$0xff]  ;;  %v9444_v3 = vld [vmem:[#allocation46_spill] sm:$0xff] }
  0x86   :  { %v446_v18 = vsel %vm391_vm1, %v443_v61, %v445_v35  ;;  %v470_v1 = vrot.slane %v5445_v19, 2  ;;  %v6008_v2 = vpack.i.bf16 %v451_v27, %v449_v26  ;;  %v462_v41 = vrot.slane %v5310_v63, 2  ;;  %9440 = vst [vmem:[#allocation19_spill] sm:$0xff] %v6030_v55  ;;  %v6039_v35 = vpop.permute.xlu0 %3524  ;;  %v9447_v27 = vld [vmem:[#allocation23_spill] sm:$0xff]  ;;  %v9479_v55 = vld [vmem:[#allocation57_spill] sm:$0xff] }
  0x87   :  { %9432 = vst [vmem:[#allocation124_spill] sm:$0xff] %v6001_v36  ;;  %v463_v12 = vrot.slane %v5315_v4, 2  ;;  %v465_v50 = vrot.slane %v9434_v48, 2  ;;  %v6015_v23 = vpack.i.bf16 %v446_v18, %v444_v37  ;;  %v457_v42 = vrot.slane %v9436_v24, 2  ;;  %v9448_v18 = vld [vmem:[#allocation24_spill] sm:$0xff] }
  0x88   :  { %9433 = vst [vmem:[#allocation125_spill] sm:$0xff] %v6008_v2  ;;  %v458_v7 = vrot.slane %v9437_v6, 2  ;;  %v469_v51 = vsel %vm391_vm1, %v467_v38, %v468_v22  ;;  %v471_v19 = vsel %vm391_vm1, %v468_v22, %v470_v1  ;;  %v460_v45 = vrot.slane %v9438_v33, 2  ;;  %v9449_v22 = vld [vmem:[#allocation25_spill] sm:$0xff] }
  0x89   :  { %3714 = vrot.lane.b32.xlu2 %v5943_v0, %s4991_s17  ;;  %3704 = vrot.lane.b32.xlu0 %v5957_v28, %s4991_s17  ;;  %v5995_v25 = vpop.permute.xlu2 %3564  ;;  %9435 = vst [vmem:[#allocation16_spill] sm:$0xff] %v6015_v23  ;;  %v464_v54 = vsel %vm391_vm1, %v462_v41, %v463_v12  ;;  %v466_v34 = vsel %vm391_vm1, %v463_v12, %v465_v50  ;;  %v482_v13 = vrot.slane %v9442_v16, 2  ;;  %v483_v61 = vrot.slane %v9443_v60, 2  ;;  %v9451_v12 = vld [vmem:[#allocation27_spill] sm:$0xff]  ;;  %v9452_v50 = vld [vmem:[#allocation28_spill] sm:$0xff] }
  0x8a   :  { %9431 = vst [vmem:[#allocation123_spill] sm:$0xff] %v5995_v25  ;;  %v6032_v52 = vpack.i.bf16 %v471_v19, %v469_v51  ;;  %v459_v39 = vsel %vm391_vm1, %v457_v42, %v458_v7  ;;  %v461_v15 = vsel %vm391_vm1, %v458_v7, %v460_v45  ;;  %v485_v59 = vrot.slane %v9444_v3, 2  ;;  %v9453_v19 = vld [vmem:[#allocation29_spill] sm:$0xff]  ;;  %v9456_v3 = vld [vmem:[#allocation62_spill] sm:$0xff] }
  0x8b   :  { %3709 = vrot.lane.b32.xlu1 %v5950_v31, %s4991_s17  ;;  %9445 = vst [vmem:[#allocation44_spill] sm:$0xff] %v6039_v35  ;;  %v6041_v26 = vpack.i.bf16 %v466_v34, %v464_v54  ;;  %v477_v37 = vrot.slane %v9447_v27, 2  ;;  %v478_v38 = vrot.slane %v9448_v18, 2  ;;  %v480_v1 = vrot.slane %v9449_v22, 2  ;;  %v9457_v22 = vld [vmem:[#allocation63_spill] sm:$0xff] }
  0x8c   :  { %9441 = vst [vmem:[#allocation20_spill] sm:$0xff] %v6032_v52  ;;  %v6048_v41 = vpack.i.bf16 %v461_v15, %v459_v39  ;;  %v472_v48 = vrot.slane %v9451_v12, 2  ;;  %v473_v42 = vrot.slane %v9452_v50, 2  ;;  %v484_v7 = vsel %vm391_vm1, %v482_v13, %v483_v61  ;;  %v6063_v39 = vpop.permute.xlu1 %3539  ;;  %v9458_v50 = vld [vmem:[#allocation64_spill] sm:$0xff] }
  0x8d   :  { %9446 = vst [vmem:[#allocation45_spill] sm:$0xff] %v6041_v26  ;;  %v486_v51 = vsel %vm391_vm1, %v483_v61, %v485_v59  ;;  %v475_v33 = vrot.slane %v9453_v19, 2  ;;  %v479_v54 = vsel %vm391_vm1, %v477_v37, %v478_v38  ;;  %v481_v34 = vsel %vm391_vm1, %v478_v38, %v480_v1  ;;  %v9460_v1 = vld [vmem:[#allocation36_spill] sm:$0xff] }
  0x8e   :  { %9450 = vst [vmem:[#allocation46_spill] sm:$0xff] %v6048_v41  ;;  %v6065_v15 = vpack.i.bf16 %v486_v51, %v484_v7  ;;  %v474_v13 = vsel %vm391_vm1, %v472_v48, %v473_v42  ;;  %v497_v59 = vrot.slane %v9456_v3, 2  ;;  %v498_v12 = vrot.slane %v9457_v22, 2  ;;  %v6072_v37 = vpop.permute.xlu0 %3529  ;;  %v9462_v7 = vld [vmem:[#allocation38_spill] sm:$0xff] }
  0x8f   :  { %9455 = vst [vmem:[#allocation24_spill] sm:$0xff] %v6063_v39  ;;  %v476_v61 = vsel %vm391_vm1, %v473_v42, %v475_v33  ;;  %v500_v19 = vrot.slane %v9458_v50, 2  ;;  %v6074_v38 = vpack.i.bf16 %v481_v34, %v479_v54  ;;  %v495_v51 = vrot.slane %v9462_v7, 2  ;;  %v9463_v42 = vld [vmem:[#allocation39_spill] sm:$0xff]  ;;  %v9465_v54 = vld [vmem:[#allocation41_spill] sm:$0xff]  ;;  %v9471_v39 = vld [vmem:[#allocation82_spill] sm:$0xff] }
  0x90   :  { %9459 = vst [vmem:[#allocation25_spill] sm:$0xff] %v6072_v37  ;;  %v3763_v48 = vpack.i.bf16 %v476_v61, %v474_v13  ;;  %v487_v33 = vrot.slane %v9463_v42, 2  ;;  %v488_v44 = vrot.slane %v9464_v11, 2  ;;  %v499_v50 = vsel %vm391_vm1, %v497_v59, %v498_v12 }
  0x91   :  { %3729 = vrot.lane.b32.xlu2 %v5972_v53, %s4991_s17  ;;  %3719 = vrot.lane.b32.xlu0 %v5986_v10, %s4991_s17  ;;  %v6024_v46 = vpop.permute.xlu2 %3579  ;;  %v490_v34 = vrot.slane %v9465_v54, 2  ;;  %v513_v25 = vrot.slane %v9470_v17, 2  ;;  %v515_v10 = vrot.slane %v9471_v39, 2  ;;  %v503_v0 = vrot.slane %v9479_v55, 2  ;;  %v9492_v53 = vld [vmem:[#allocation75_spill] sm:$0xff] }
  0x92   :  { %9439 = vst [vmem:[#allocation18_spill] sm:$0xff] %v6024_v46  ;;  %v492_v46 = vrot.slane %v9460_v1, 2  ;;  %v489_v59 = vsel %vm391_vm1, %v487_v33, %v488_v44  ;;  %v9478_v33 = vld [vmem:[#allocation56_spill] sm:$0xff]  ;;  %v518_v31 = vrot.slane %v9492_v53, 2 }
  0x93   :  { %3724 = vrot.lane.b32.xlu1 %v5979_v32, %s4991_s17  ;;  %v501_v32 = vsel %vm391_vm1, %v498_v12, %v500_v19  ;;  %v491_v12 = vsel %vm391_vm1, %v488_v44, %v490_v34  ;;  %v9469_v19 = vld [vmem:[#allocation80_spill] sm:$0xff]  ;;  %v502_v34 = vrot.slane %v9478_v33, 2 }
  0x94   :  { %v6093_v13 = vpop.permute.xlu1 %3559  ;;  %v6095_v61 = vpack.i.bf16 %v501_v32, %v499_v50  ;;  %v512_v54 = vrot.slane %v9469_v19, 2  ;;  %v9476_v32 = vld [vmem:[#allocation52_spill] sm:$0xff]  ;;  %v6111_v44 = vpack.i.bf16 %v491_v12, %v489_v59 }
  0x95   :  { %9467 = vst [vmem:[#allocation28_spill] sm:$0xff] %v6093_v13  ;;  %v510_v50 = vrot.slane %v9476_v32, 2 }
  0x96   :  { %9468 = vst [vmem:[#allocation29_spill] sm:$0xff] %v6095_v61  ;;  %v514_v39 = vsel %vm391_vm1, %v512_v54, %v513_v25  ;;  %v527_v54 = vrot.slane %v5783_v56, 2 }
  0x97   :  { %9477 = vst [vmem:[#allocation64_spill] sm:$0xff] %v6111_v44 }
  0x99   :  { %3744 = vrot.lane.b32.xlu2 %v6001_v36, %s4991_s17  ;;  %3734 = vrot.lane.b32.xlu0 %v6015_v23, %s4991_s17  ;;  %v6057_v45 = vpop.permute.xlu2 %3594 }
  0x9a   :  { %9454 = vst [vmem:[#allocation23_spill] sm:$0xff] %v6057_v45 }
  0x9b   :  { %3739 = vrot.lane.b32.xlu1 %v6008_v2, %s4991_s17  ;;  %v6102_v2 = vpop.permute.xlu0 %3554 }
  0x9c   :  { %9472 = vst [vmem:[#allocation62_spill] sm:$0xff] %v6102_v2  ;;  %v6126_v12 = vpop.permute.xlu1 %3574 }
  0xa1   :  { %3759 = vrot.lane.b32.xlu2 %v6032_v52, %s4991_s17  ;;  %3749 = vrot.lane.b32.xlu0 %v6048_v41, %s4991_s17  ;;  %v6088_v36 = vpop.permute.xlu2 %3609 }
  0xa2   :  { %9466 = vst [vmem:[#allocation27_spill] sm:$0xff] %v6088_v36 }
  0xa3   :  { %3754 = vrot.lane.b32.xlu1 %v6041_v26, %s4991_s17  ;;  %v9461_v26 = vld [vmem:[#allocation37_spill] sm:$0xff] }
  0xa4   :  { %v493_v41 = vrot.slane %v9461_v26, 2  ;;  %9482 = vst [vmem:[#allocation37_spill] sm:$0xff] %v6126_v12 }
  0xa6   :  { %v494_v7 = vsel %vm391_vm1, %v492_v46, %v493_v41  ;;  %v496_v58 = vsel %vm391_vm1, %v493_v41, %v495_v51  ;;  %v9474_v41 = vld [vmem:[#allocation50_spill] sm:$0xff] }
  0xa7   :  { %v6104_v46 = vpack.i.bf16 %v496_v58, %v494_v7  ;;  %v507_v51 = vrot.slane %v9474_v41, 2  ;;  %v516_v58 = vsel %vm391_vm1, %v513_v25, %v515_v10  ;;  %v9480_v7 = vld [vmem:[#allocation58_spill] sm:$0xff]  ;;  %v504_v10 = vsel %vm391_vm1, %v502_v34, %v503_v0 }
  0xa8   :  { %v505_v2 = vrot.slane %v9480_v7, 2  ;;  %v6128_v23 = vpack.i.bf16 %v516_v58, %v514_v39  ;;  %v528_v7 = vrot.slane %v5788_v30, 2  ;;  %v9489_v39 = vld [vmem:[#allocation70_spill] sm:$0xff] }
  0xa9   :  { %3774 = vrot.lane.b32.xlu2 %v6065_v15, %s4991_s17  ;;  %3764 = vrot.lane.b32.xlu0 %v3763_v48, %s4991_s17  ;;  %9473 = vst [vmem:[#allocation63_spill] sm:$0xff] %v6104_v46  ;;  %v9475_v48 = vld [vmem:[#allocation51_spill] sm:$0xff]  ;;  %v6120_v36 = vpop.permute.xlu2 %3624  ;;  %v525_v58 = vrot.slane %v9489_v39, 2 }
  0xaa   :  { %v508_v13 = vrot.slane %v9475_v48, 2  ;;  %9481 = vst [vmem:[#allocation36_spill] sm:$0xff] %v6120_v36  ;;  %v506_v25 = vsel %vm391_vm1, %v503_v0, %v505_v2  ;;  %v9484_v36 = vld [vmem:[#allocation98_spill] sm:$0xff] }
  0xab   :  { %3769 = vrot.lane.b32.xlu1 %v6074_v38, %s4991_s17  ;;  %9483 = vst [vmem:[#allocation38_spill] sm:$0xff] %v6128_v23  ;;  %v530_v37 = vrot.slane %v9484_v36, 2  ;;  %v6144_v0 = vpack.i.bf16 %v506_v25, %v504_v10  ;;  %v9491_v2 = vld [vmem:[#allocation74_spill] sm:$0xff]  ;;  %v529_v36 = vsel %vm391_vm1, %v527_v54, %v528_v7  ;;  %v6159_v25 = vpop.permute.xlu1 %3589 }
  0xac   :  { %v509_v32 = vsel %vm391_vm1, %v507_v51, %v508_v13  ;;  %v511_v59 = vsel %vm391_vm1, %v508_v13, %v510_v50  ;;  %v6135_v51 = vpop.permute.xlu0 %3569  ;;  %v9487_v50 = vld [vmem:[#allocation68_spill] sm:$0xff]  ;;  %v517_v34 = vrot.slane %v9491_v2, 2  ;;  %9495 = vst [vmem:[#allocation81_spill] sm:$0xff] %v6159_v25 }
  0xad   :  { %9485 = vst [vmem:[#allocation39_spill] sm:$0xff] %v6135_v51  ;;  %v6137_v13 = vpack.i.bf16 %v511_v59, %v509_v32  ;;  %v522_v20 = vrot.slane %v9487_v50, 2  ;;  %v531_v32 = vsel %vm391_vm1, %v528_v7, %v530_v37  ;;  %v9493_v59 = vld [vmem:[#allocation76_spill] sm:$0xff]  ;;  %v542_v7 = vrot.slane %v5854_v29, 2 }
  0xae   :  { %9490 = vst [vmem:[#allocation41_spill] sm:$0xff] %v6144_v0  ;;  %v520_v51 = vrot.slane %v9493_v59, 2  ;;  %v6161_v57 = vpack.i.bf16 %v531_v32, %v529_v36  ;;  %v519_v37 = vsel %vm391_vm1, %v517_v34, %v518_v31  ;;  %v543_v59 = vrot.slane %v5859_v40, 2  ;;  %v9502_v36 = vld [vmem:[#allocation88_spill] sm:$0xff] }
  0xaf   :  { %9486 = vst [vmem:[#allocation40_spill] sm:$0xff] %v6137_v13  ;;  %v540_v32 = vrot.slane %v9502_v36, 2 }
  0xb0   :  { %9496 = vst [vmem:[#allocation82_spill] sm:$0xff] %v6161_v57  ;;  %v521_v54 = vsel %vm391_vm1, %v518_v31, %v520_v51  ;;  %v9503_v51 = vld [vmem:[#allocation92_spill] sm:$0xff]  ;;  %v544_v45 = vsel %vm391_vm1, %v542_v7, %v543_v59 }
  0xb1   :  { %3789 = vrot.lane.b32.xlu2 %v6095_v61, %s4991_s17  ;;  %3779 = vrot.lane.b32.xlu0 %v6111_v44, %s4991_s17  ;;  %v9488_v61 = vld [vmem:[#allocation69_spill] sm:$0xff]  ;;  %v6153_v35 = vpop.permute.xlu2 %3639  ;;  %v6177_v31 = vpack.i.bf16 %v521_v54, %v519_v37  ;;  %v532_v34 = vrot.slane %v9503_v51, 2 }
  0xb2   :  { %v523_v12 = vrot.slane %v9488_v61, 2  ;;  %9494 = vst [vmem:[#allocation80_spill] sm:$0xff] %v6153_v35 }
  0xb3   :  { %3784 = vrot.lane.b32.xlu1 %v6104_v46, %s4991_s17  ;;  %v9501_v46 = vld [vmem:[#allocation87_spill] sm:$0xff]  ;;  %v6192_v54 = vpop.permute.xlu1 %3604 }
  0xb4   :  { %v524_v39 = vsel %vm391_vm1, %v522_v20, %v523_v12  ;;  %v526_v10 = vsel %vm391_vm1, %v523_v12, %v525_v58  ;;  %v6168_v20 = vpop.permute.xlu0 %3584  ;;  %v9500_v58 = vld [vmem:[#allocation86_spill] sm:$0xff]  ;;  %v538_v25 = vrot.slane %v9501_v46, 2  ;;  %9507 = vst [vmem:[#allocation56_spill] sm:$0xff] %v6192_v54  ;;  %v9513_v54 = vld [vmem:[#allocation107_spill] sm:$0xff] }
  0xb5   :  { %9498 = vst [vmem:[#allocation50_spill] sm:$0xff] %v6168_v20  ;;  %v6170_v12 = vpack.i.bf16 %v526_v10, %v524_v39  ;;  %v9504_v20 = vld [vmem:[#allocation93_spill] sm:$0xff]  ;;  %v9505_v10 = vld [vmem:[#allocation94_spill] sm:$0xff] }
  0xb6   :  { %v533_v39 = vrot.slane %v9504_v20, 2  ;;  %v535_v28 = vrot.slane %v9505_v10, 2  ;;  %v541_v37 = vsel %vm391_vm1, %v538_v25, %v540_v32 }
  0xb7   :  { %9499 = vst [vmem:[#allocation51_spill] sm:$0xff] %v6170_v12 }
  0xb9   :  { %3804 = vrot.lane.b32.xlu2 %v6128_v23, %s4991_s17  ;;  %3794 = vrot.lane.b32.xlu0 %v6144_v0, %s4991_s17  ;;  %v537_v0 = vrot.slane %v9500_v58, 2  ;;  %v6186_v44 = vpop.permute.xlu2 %3654 }
  0xba   :  { %9506 = vst [vmem:[#allocation52_spill] sm:$0xff] %v6186_v44  ;;  %v9512_v44 = vld [vmem:[#allocation106_spill] sm:$0xff] }
  0xbb   :  { %3799 = vrot.lane.b32.xlu1 %v6137_v13, %s4991_s17  ;;  %v9497_v13 = vld [vmem:[#allocation111_spill] sm:$0xff]  ;;  %v539_v36 = vsel %vm391_vm1, %v537_v0, %v538_v25  ;;  %v9511_v25 = vld [vmem:[#allocation105_spill] sm:$0xff] }
  0xbc   :  { %v545_v35 = vrot.slane %v9497_v13, 2  ;;  %v6198_v10 = vpop.permute.xlu0 %3599  ;;  %v547_v32 = vrot.slane %v9511_v25, 2 }
  0xbe   :  { %v546_v13 = vsel %vm391_vm1, %v543_v59, %v545_v35  ;;  %v534_v35 = vsel %vm391_vm1, %v532_v34, %v533_v39  ;;  %v536_v59 = vsel %vm391_vm1, %v533_v39, %v535_v28  ;;  %v6215_v28 = vpop.permute.xlu1 %3619  ;;  %v4813_v39 = vld [vmem:[%s9035_s0 + $0x38] sm:$0xff] }
  0xbf   :  { %v6194_v7 = vpack.i.bf16 %v546_v13, %v544_v45  ;;  %v6204_v0 = vpack.i.bf16 %v536_v59, %v534_v35  ;;  %v550_v45 = vrot.slane %v9513_v54, 2  ;;  %9515 = vst [vmem:[#allocation69_spill] sm:$0xff] %v6215_v28  ;;  %v4812_v13 = vld [vmem:[%s9035_s0 + $0x30] sm:$0xff]  ;;  %v4814_v59 = vld [vmem:[%s9035_s0 + $0x18] sm:$0xff]  ;;  %v4824_v28 = vld [vmem:[%s9035_s0 + $0xa8] sm:$0xff] }
  0xc1   :  { %3819 = vrot.lane.b32.xlu2 %v6161_v57, %s4991_s17  ;;  %3809 = vrot.lane.b32.xlu0 %v6177_v31, %s4991_s17  ;;  %9508 = vst [vmem:[#allocation57_spill] sm:$0xff] %v6194_v7  ;;  %v6200_v57 = vpack.i.bf16 %v541_v37, %v539_v36  ;;  %v6211_v34 = vpop.permute.xlu2 %3669  ;;  %v6223_v36 = vpack.i.bf16 %v4813_v39, %v4812_v13 }
  0xc2   :  { %9510 = vst [vmem:[#allocation98_spill] sm:$0xff] %v6204_v0 }
  0xc3   :  { %3814 = vrot.lane.b32.xlu1 %v6170_v12, %s4991_s17  ;;  %9509 = vst [vmem:[#allocation58_spill] sm:$0xff] %v6200_v57  ;;  %v548_v12 = vrot.slane %v9512_v44, 2 }
  0xc4   :  { %9514 = vst [vmem:[#allocation68_spill] sm:$0xff] %v6211_v34  ;;  %v6227_v35 = vpop.permute.xlu0 %3614  ;;  %v4815_v34 = vld [vmem:[%s9035_s0 + $0x20] sm:$0xff] }
  0xc5   :  { %v549_v37 = vsel %vm391_vm1, %v547_v32, %v548_v12  ;;  %v551_v54 = vsel %vm391_vm1, %v548_v12, %v550_v45  ;;  %9516 = vst [vmem:[#allocation70_spill] sm:$0xff] %v6227_v35  ;;  %v4816_v45 = vld [vmem:[%s9035_s0 + $0x78] sm:$0xff] }
  0xc6   :  { %v6237_v13 = vpack.i.bf16 %v551_v54, %v549_v37  ;;  %v6244_v32 = vpop.permute.xlu1 %3634  ;;  %v4819_v54 = vld [vmem:[%s9035_s0 + $0x68] sm:$0xff] }
  0xc7   :  { %9518 = vst [vmem:[#allocation75_spill] sm:$0xff] %v6244_v32 }
  0xc8   :  { %9517 = vst [vmem:[#allocation74_spill] sm:$0xff] %v6237_v13 }
  0xc9   :  { %3834 = vrot.lane.b32.xlu2 %v6194_v7, %s4991_s17  ;;  %3824 = vrot.lane.b32.xlu0 %v6204_v0, %s4991_s17  ;;  %v3843_v7 = vpack.i.bf16 %v4815_v34, %v4814_v59  ;;  %v4817_v34 = vld [vmem:[%s9035_s0 + $0x80] sm:$0xff] }
  0xca   :  { %v6252_v39 = vpack.i.bf16 %v4817_v34, %v4816_v45  ;;  %v4820_v45 = vld [vmem:[%s9035_s0 + $0x48] sm:$0xff]  ;;  %v4821_v34 = vld [vmem:[%s9035_s0 + $0x50] sm:$0xff] }
  0xcb   :  { %3829 = vrot.lane.b32.xlu1 %v6200_v57, %s4991_s17  ;;  %v6272_v32 = vpack.i.bf16 %v4821_v34, %v4820_v45  ;;  %v4826_v57 = vld [vmem:[%s9035_s0 + $0x90] sm:$0xff] }
  0xcc   :  { %v6254_v37 = vpop.permute.xlu0 %3629 }
  0xcd   :  { %9519 = vst [vmem:[#allocation76_spill] sm:$0xff] %v6254_v37 }
  0xd1   :  { %3849 = vrot.lane.b32.xlu2 %v6223_v36, %s4992_s26  ;;  %3839 = vrot.lane.b32.xlu0 %v6237_v13, %s4991_s17  ;;  %v4823_v13 = vld [vmem:[%s9035_s0 + $0xc8] sm:$0xff] }
  0xd3   :  { %3844 = vrot.lane.b32.xlu1 %v3843_v7, %s4992_s26  ;;  %v6240_v12 = vpop.permute.xlu2 %3684  ;;  %v4818_v7 = vld [vmem:[%s9035_s0 + $0x60] sm:$0xff] }
  0xd4   :  { %v6262_v59 = vpack.i.bf16 %v4819_v54, %v4818_v7  ;;  %v6280_v7 = vpop.permute.xlu1 %3649  ;;  %v4822_v54 = vld [vmem:[%s9035_s0 + $0xc0] sm:$0xff] }
  0xd5   :  { %9521 = vst [vmem:[#allocation86_spill] sm:$0xff] %v6280_v7  ;;  %v3878_v45 = vpack.i.bf16 %v4823_v13, %v4822_v54  ;;  %v4827_v13 = vld [vmem:[%s9035_s0 + $0x98] sm:$0xff] }
  0xd6   :  { %v3868_v54 = vpack.i.bf16 %v4827_v13, %v4826_v57  ;;  %v4830_v57 = vld [vmem:[%s9035_s0 + $0xf0] sm:$0xff] }
  0xd7   :  { %v6288_v34 = vpop.permute.xlu0 %3644 }
  0xd8   :  { %9522 = vst [vmem:[#allocation87_spill] sm:$0xff] %v6288_v34 }
  0xd9   :  { %3864 = vrot.lane.b32.xlu2 %v6252_v39, %s4992_s26  ;;  %3854 = vrot.lane.b32.xlu0 %v6272_v32, %s4992_s26 }
  0xdb   :  { %3859 = vrot.lane.b32.xlu1 %v6262_v59, %s4992_s26  ;;  %v6276_v37 = vpop.permute.xlu2 %3699 }
  0xdc   :  { %9520 = vst [vmem:[#allocation111_spill] sm:$0xff] %v6276_v37  ;;  %v4825_v37 = vld [vmem:[%s9035_s0 + $0xb0] sm:$0xff] }
  0xdd   :  { %v3873_v7 = vpack.i.bf16 %v4825_v37, %v4824_v28  ;;  %v4828_v28 = vld [vmem:[%s9035_s0 + $0x108] sm:$0xff]  ;;  %v4829_v37 = vld [vmem:[%s9035_s0 + $0x110] sm:$0xff] }
  0xdf   :  { %v6307_v34 = vpop.permute.xlu1 %3664  ;;  %v6315_v0 = vpop.permute.xlu0 %3659 }
  0xe0   :  { %9524 = vst [vmem:[#allocation92_spill] sm:$0xff] %v6307_v34 }
  0xe1   :  { %3879 = vrot.lane.b32.xlu2 %v3878_v45, %s4992_s26  ;;  %3869 = vrot.lane.b32.xlu0 %v3868_v54, %s4992_s26  ;;  %v3893_v45 = vpack.i.bf16 %v4829_v37, %v4828_v28  ;;  %9525 = vst [vmem:[#allocation93_spill] sm:$0xff] %v6315_v0  ;;  %v3883_v54 = vpack.i.bf16 %v5292_v49, %v5285_v47  ;;  %v9603_v0 = vld [vmem:[#allocation23_spill] sm:$0xff] }
  0xe2   :  { %v3898_v47 = vpack.i.bf16 %v5364_v9, %v5359_v5  ;;  %v3923_v5 = vpack.i.bf16 %v9448_v18, %v9447_v27  ;;  %v3938_v27 = vpack.i.bf16 %v9461_v26, %v9460_v1  ;;  %v3953_v26 = vpack.i.bf16 %v9475_v48, %v9474_v41 }
  0xe3   :  { %3874 = vrot.lane.b32.xlu1 %v3873_v7, %s4992_s26  ;;  %v6304_v35 = vpop.permute.xlu2 %3714  ;;  %v4831_v7 = vld [vmem:[%s9035_s0 + $0xf8] sm:$0xff]  ;;  %v3968_v41 = vpack.i.bf16 %v9488_v61, %v9487_v50  ;;  %v3983_v61 = vpack.i.bf16 %v9501_v46, %v9500_v58 }
  0xe4   :  { %9523 = vst [vmem:[#allocation88_spill] sm:$0xff] %v6304_v35  ;;  %v6323_v13 = vpack.i.bf16 %v4831_v7, %v4830_v57  ;;  %v3908_v35 = vpack.i.bf16 %v5315_v4, %v5310_v63  ;;  %v6350_v57 = vld [vmem:[%s9035_s0 + $0x180] sm:$0xff]  ;;  %v6355_v63 = vld [vmem:[%s9035_s0 + $0x188] sm:$0xff] }
  0xe9   :  { %3894 = vrot.lane.b32.xlu2 %v3893_v45, %s4992_s26  ;;  %3884 = vrot.lane.b32.xlu0 %v3883_v54, %s4992_s26  ;;  %v3903_v45 = vpack.i.bf16 %v9437_v6, %v9436_v24  ;;  %v6366_v24 = vpack.i.bf16 %v6355_v63, %v6350_v57  ;;  %v3913_v6 = vpack.i.bf16 %v5440_v43, %v5435_v62 }
  0xea   :  { %v3933_v54 = vpack.i.bf16 %v9464_v11, %v9463_v42  ;;  %v3928_v62 = vpack.i.bf16 %v9443_v60, %v9442_v16  ;;  %v3948_v11 = vpack.i.bf16 %v9479_v55, %v9478_v33  ;;  %v3943_v16 = vpack.i.bf16 %v9457_v22, %v9456_v3 }
  0xeb   :  { %3889 = vrot.lane.b32.xlu1 %v6323_v13, %s4992_s26  ;;  %v6330_v28 = vpop.permute.xlu2 %3729  ;;  %v6337_v34 = vpop.permute.xlu0 %3674  ;;  %v3963_v55 = vpack.i.bf16 %v9492_v53, %v9491_v2  ;;  %v3958_v3 = vpack.i.bf16 %v9470_v17, %v9469_v19  ;;  %v3978_v53 = vpack.i.bf16 %v9504_v20, %v9503_v51  ;;  %v3973_v17 = vpack.i.bf16 %v5788_v30, %v5783_v56  ;;  %v128_v19 = vld [vmem:[%s9035_s0 + $0x330] sm:$0xff]  ;;  %v129_v2 = vld [vmem:[%s9035_s0 + $0x338] sm:$0xff] }
  0xec   :  { %9526 = vst [vmem:[#allocation94_spill] sm:$0xff] %v6330_v28  ;;  %v3998_v58 = vpack.i.bf16 %v129_v2, %v128_v19  ;;  %v3993_v56 = vpack.i.bf16 %v9512_v44, %v9511_v25  ;;  %v3988_v30 = vpack.i.bf16 %v5859_v40, %v5854_v29  ;;  %v9541_v44 = vld [vmem:[#allocation9_spill] sm:$0xff]  ;;  %v9542_v40 = vld [vmem:[#allocation12_spill] sm:$0xff]  ;;  %v9553_v2 = vld [vmem:[#allocation30_spill] sm:$0xff] }
  0xed   :  { %v6333_v37 = vpop.permute.xlu1 %3679  ;;  %9528 = vst [vmem:[#allocation106_spill] sm:$0xff] %v6337_v34  ;;  %v9558_v34 = vld [vmem:[#allocation21_spill] sm:$0xff] }
  0xee   :  { %9527 = vst [vmem:[#allocation105_spill] sm:$0xff] %v6333_v37  ;;  %v559_v37 = vrot.slane %v6355_v63, 1 }
  0xf1   :  { %3909 = vrot.lane.b32.xlu2 %v3908_v35, %s4992_s26  ;;  %3899 = vrot.lane.b32.xlu0 %v3898_v47, %s4992_s26 }
  0xf3   :  { %3904 = vrot.lane.b32.xlu1 %v3903_v45, %s4992_s26  ;;  %v6345_v49 = vpop.permute.xlu2 %3744  ;;  %v6362_v9 = vpop.permute.xlu0 %3689 }
  0xf4   :  { %9529 = vst [vmem:[#allocation107_spill] sm:$0xff] %v6345_v49  ;;  %v76_v49 = vld [vmem:[%s9035_s0 + $0x190] sm:$0x3] }
  0xf5   :  { %v6358_v4 = vpop.permute.xlu1 %3694 }
  0xf9   :  { %3924 = vrot.lane.b32.xlu2 %v3923_v5, %s4992_s26  ;;  %3914 = vrot.lane.b32.xlu0 %v3913_v6, %s4992_s26 }
  0xfb   :  { %3919 = vrot.lane.b32.xlu1 %v6366_v24, %s4992_s26  ;;  %v6373_v35 = vpop.permute.xlu2 %3759  ;;  %v6380_v18 = vpop.permute.xlu0 %3704 }
  0xfc   :  { %9531 = vst [vmem:[#allocation127_spill] sm:$0xff] %v6380_v18  ;;  %v3601_v18 = vunpack.i.l.bf16 %v6198_v10 }
  0xfd   :  { %v6376_v7 = vpop.permute.xlu1 %3709 }
  0xfe   :  { %9530 = vst [vmem:[#allocation126_spill] sm:$0xff] %v6376_v7 }
 0x101   :  { %3939 = vrot.lane.b32.xlu2 %v3938_v27, %s4992_s26  ;;  %3929 = vrot.lane.b32.xlu0 %v3928_v62, %s4992_s26  ;;  %v9540_v27 = vld [vmem:[#allocation11_spill] sm:$0xff] }
 0x102   :  { %v9544_v62 = vld [vmem:[#allocation15_spill] sm:$0xff] }
 0x103   :  { %3934 = vrot.lane.b32.xlu1 %v3933_v54, %s4992_s26  ;;  %v6388_v43 = vpop.permute.xlu2 %3774  ;;  %v6395_v1 = vpop.permute.xlu0 %3719 }
 0x104   :  { %9532 = vst [vmem:[#allocation128_spill] sm:$0xff] %v6395_v1  ;;  %v568_v1 = vrot.slane %v6350_v57, 2 }
 0x105   :  { %v6391_v45 = vpop.permute.xlu1 %3724 }
 0x109   :  { %3954 = vrot.lane.b32.xlu2 %v3953_v26, %s4992_s26  ;;  %3944 = vrot.lane.b32.xlu0 %v3943_v16, %s4992_s26  ;;  %v9545_v26 = vld [vmem:[#allocation10_spill] sm:$0xff]  ;;  %v9547_v16 = vld [vmem:[#allocation8_spill] sm:$0xff] }
 0x10b   :  { %3949 = vrot.lane.b32.xlu1 %v3948_v11, %s4992_s26  ;;  %v6403_v60 = vpop.permute.xlu2 %3789  ;;  %v6410_v48 = vpop.permute.xlu0 %3734 }
 0x10c   :  { %9533 = vst [vmem:[#allocation129_spill] sm:$0xff] %v6403_v60 }
 0x10d   :  { %v6406_v42 = vpop.permute.xlu1 %3739  ;;  %9535 = vst [vmem:[#allocation131_spill] sm:$0xff] %v6410_v48 }
 0x10e   :  { %9534 = vst [vmem:[#allocation130_spill] sm:$0xff] %v6406_v42  ;;  %v571_v42 = vrot.slane %v76_v49, 2 }
 0x111   :  { %3969 = vrot.lane.b32.xlu2 %v3968_v41, %s4992_s26  ;;  %3959 = vrot.lane.b32.xlu0 %v3958_v3, %s4992_s26  ;;  %v9548_v3 = vld [vmem:[#allocation22_spill] sm:$0xff] }
 0x113   :  { %3964 = vrot.lane.b32.xlu1 %v3963_v55, %s4992_s26  ;;  %v6418_v22 = vpop.permute.xlu2 %3804  ;;  %v6425_v50 = vpop.permute.xlu0 %3749 }
 0x114   :  { %9536 = vst [vmem:[#allocation132_spill] sm:$0xff] %v6425_v50  ;;  %v9556_v50 = vld [vmem:[#allocation17_spill] sm:$0xff] }
 0x115   :  { %v6421_v33 = vpop.permute.xlu1 %3754 }
 0x119   :  { %3984 = vrot.lane.b32.xlu2 %v3983_v61, %s4992_s26  ;;  %3974 = vrot.lane.b32.xlu0 %v3973_v17, %s4992_s26  ;;  %v9549_v61 = vld [vmem:[#allocation13_spill] sm:$0xff]  ;;  %v9551_v17 = vld [vmem:[#allocation14_spill] sm:$0xff] }
 0x11b   :  { %3979 = vrot.lane.b32.xlu1 %v3978_v53, %s4992_s26  ;;  %v6439_v46 = vpop.permute.xlu2 %3819  ;;  %v6444_v51 = vpop.permute.xlu0 %3764 }
 0x11c   :  { %9537 = vst [vmem:[#allocation133_spill] sm:$0xff] %v6439_v46 }
 0x11d   :  { %v6442_v20 = vpop.permute.xlu1 %3769 }
 0x121   :  { %3999 = vrot.lane.b32.xlu2 %v3998_v58, %s4992_s26  ;;  %3989 = vrot.lane.b32.xlu0 %v3988_v30, %s4992_s26  ;;  %v9554_v58 = vld [vmem:[#allocation42_spill] sm:$0xff] }
 0x123   :  { %3994 = vrot.lane.b32.xlu1 %v3993_v56, %s4992_s26  ;;  %v6452_v47 = vpop.permute.xlu2 %3834  ;;  %v6457_v6 = vpop.permute.xlu0 %3779  ;;  %v4058_v56 = vpack.i.bf16 %v9554_v58, %v9553_v2 }
 0x124   :  { %9538 = vst [vmem:[#allocation134_spill] sm:$0xff] %v6452_v47 }
 0x125   :  { %v6455_v5 = vpop.permute.xlu1 %3784 }
 0x126   :  { %9539 = vst [vmem:[#allocation135_spill] sm:$0xff] %v6455_v5 }
 0x129   :  { %4014 = vrot.lane.b32.xlu2 %v9540_v27, %s4993_s27  ;;  %4004 = vrot.lane.b32.xlu0 %v9542_v40, %s4993_s27  ;;  %v558_v40 = vrot.slane %v6350_v57, 1  ;;  %v77_v57 = vld [vmem:[%s9035_s0 + $0x198] sm:$0xff] }
 0x12b   :  { %4009 = vrot.lane.b32.xlu1 %v9541_v44, %s4993_s27  ;;  %v6463_v25 = vpop.permute.xlu2 %3849  ;;  %v6469_v54 = vpop.permute.xlu0 %3794  ;;  %v560_v58 = vsel %vm230_vm0, %v558_v40, %v559_v37 }
 0x12c   :  { %9543 = vst [vmem:[#allocation11_spill] sm:$0xff] %v6469_v54  ;;  %v9560_v54 = vld [vmem:[#allocation43_spill] sm:$0xff] }
 0x12d   :  { %v6467_v29 = vpop.permute.xlu1 %3799 }
 0x131   :  { %4029 = vrot.lane.b32.xlu2 %v9544_v62, %s4993_s27  ;;  %4019 = vrot.lane.b32.xlu0 %v9547_v16, %s4993_s27 }
 0x133   :  { %4024 = vrot.lane.b32.xlu1 %v9545_v26, %s4993_s27  ;;  %v6475_v11 = vpop.permute.xlu2 %3864  ;;  %v6481_v55 = vpop.permute.xlu0 %3809 }
 0x134   :  { %9546 = vst [vmem:[#allocation9_spill] sm:$0xff] %v6475_v11 }
 0x135   :  { %v6479_v41 = vpop.permute.xlu1 %3814 }
 0x139   :  { %4044 = vrot.lane.b32.xlu2 %v9548_v3, %s4993_s27  ;;  %4034 = vrot.lane.b32.xlu0 %v9551_v17, %s4993_s27 }
 0x13b   :  { %4039 = vrot.lane.b32.xlu1 %v9549_v61, %s4993_s27  ;;  %v6487_v53 = vpop.permute.xlu2 %3879  ;;  %v6495_v30 = vpop.permute.xlu0 %3824 }
 0x13c   :  { %9550 = vst [vmem:[#allocation12_spill] sm:$0xff] %v6487_v53 }
 0x13d   :  { %v6491_v19 = vpop.permute.xlu1 %3829  ;;  %9555 = vst [vmem:[#allocation10_spill] sm:$0xff] %v6495_v30  ;;  %v4063_v30 = vpack.i.bf16 %v560_v58, %v9560_v54 }
 0x13e   :  { %9552 = vst [vmem:[#allocation15_spill] sm:$0xff] %v6491_v19  ;;  %v569_v19 = vrot.slane %v6355_v63, 2  ;;  %v79_v63 = vld [vmem:[%s9035_s0 + $0x1a8] sm:$0x3] }
 0x13f   :  { %v587_v48 = vrot.slane %v79_v63, 1 }
 0x141   :  { %4059 = vrot.lane.b32.xlu2 %v4058_v56, %s4993_s27  ;;  %4049 = vrot.lane.b32.xlu0 %v9558_v34, %s4993_s27  ;;  %v561_v56 = vrot.slane %v76_v49, 1  ;;  %v78_v49 = vld [vmem:[%s9035_s0 + $0x1a0] sm:$0xff] }
 0x143   :  { %4054 = vrot.lane.b32.xlu1 %v9556_v50, %s4993_s27  ;;  %v6502_v47 = vpop.permute.xlu2 %3894  ;;  %v6512_v53 = vpop.permute.xlu0 %3839 }
 0x144   :  { %9557 = vst [vmem:[#allocation8_spill] sm:$0xff] %v6502_v47  ;;  %v562_v47 = vsel %vm230_vm0, %v559_v37, %v561_v56  ;;  %v570_v37 = vsel %vm391_vm1, %v568_v1, %v569_v19  ;;  %v9562_v56 = vld [vmem:[#allocation34_spill] sm:$0xff] }
 0x145   :  { %v6509_v2 = vpop.permute.xlu1 %3844  ;;  %9559 = vst [vmem:[#allocation14_spill] sm:$0xff] %v6512_v53  ;;  %v4088_v53 = vpack.i.bf16 %v9562_v56, %v562_v47  ;;  %v4078_v5 = vpack.i.bf16 %v562_v47, %v560_v58  ;;  %v595_v47 = vrot.slane %v78_v49, 2 }
 0x149   :  { %4074 = vrot.lane.b32.xlu2 %v6366_v24, %s4994_s29  ;;  %v572_v24 = vsel %vm391_vm1, %v569_v19, %v571_v42  ;;  %4064 = vrot.lane.b32.xlu0 %v4063_v30, %s4993_s27 }
 0x14a   :  { %v4083_v3 = vpack.i.bf16 %v572_v24, %v570_v37  ;;  %v4098_v37 = vpack.i.bf16 %v78_v49, %v77_v57  ;;  %v9570_v24 = vld [vmem:[#allocation95_spill] sm:$0xff] }
 0x14b   :  { %4069 = vrot.lane.b32.xlu1 %v6032_v52, %s4995_s30  ;;  %v6522_v40 = vpop.permute.xlu2 %3909  ;;  %v584_v52 = vrot.slane %v77_v57, 1  ;;  %v6539_v60 = vpop.permute.xlu0 %3854 }
 0x14c   :  { %9561 = vst [vmem:[#allocation30_spill] sm:$0xff] %v6522_v40  ;;  %v585_v40 = vrot.slane %v78_v49, 1 }
 0x14d   :  { %v6536_v54 = vpop.permute.xlu1 %3859 }
 0x14e   :  { %v586_v46 = vsel %vm230_vm0, %v584_v52, %v585_v40  ;;  %v588_v1 = vsel %vm230_vm0, %v585_v40, %v587_v48  ;;  %v594_v52 = vrot.slane %v77_v57, 2 }
 0x14f   :  { %v4103_v30 = vpack.i.bf16 %v588_v1, %v586_v46 }
 0x151   :  { %4089 = vrot.lane.b32.xlu2 %v4088_v53, %s4993_s27  ;;  %4079 = vrot.lane.b32.xlu0 %v4078_v5, %s4997_s16  ;;  %v597_v53 = vrot.slane %v79_v63, 2  ;;  %v596_v5 = vsel %vm391_vm1, %v594_v52, %v595_v47  ;;  %v9569_v63 = vld [vmem:[#allocation35_spill] sm:$0xff]  ;;  %v4833_v52 = vld [vmem:[%s9035_s0 + $0x1e8] sm:$0xff] }
 0x152   :  { %v4133_v1 = vpack.i.bf16 %v9570_v24, %v9569_v63  ;;  %v9574_v63 = vld [vmem:[#allocation96_spill] sm:$0xff]  ;;  %v9575_v24 = vld [vmem:[#allocation59_spill] sm:$0xff] }
 0x153   :  { %4084 = vrot.lane.b32.xlu1 %v4083_v3, %s4996_s15  ;;  %v6545_v42 = vpop.permute.xlu2 %3924  ;;  %v6550_v56 = vpop.permute.xlu0 %3869  ;;  %v598_v46 = vsel %vm391_vm1, %v595_v47, %v597_v53  ;;  %v4832_v47 = vld [vmem:[%s9035_s0 + $0x1e0] sm:$0xff] }
 0x154   :  { %9564 = vst [vmem:[#allocation17_spill] sm:$0xff] %v6550_v56  ;;  %v4108_v49 = vpack.i.bf16 %v598_v46, %v596_v5  ;;  %v4143_v53 = vpack.i.bf16 %v4833_v52, %v4832_v47  ;;  %v9572_v5 = vld [vmem:[#allocation65_spill] sm:$0xff] }
 0x155   :  { %v6548_v19 = vpop.permute.xlu1 %3874 }
 0x156   :  { %9563 = vst [vmem:[#allocation42_spill] sm:$0xff] %v6548_v19  ;;  %v9588_v19 = vld [vmem:[#allocation53_spill] sm:$0xff] }
 0x159   :  { %4104 = vrot.lane.b32.xlu2 %v4103_v30, %s4997_s16  ;;  %4094 = vrot.lane.b32.xlu0 %v4083_v3, %s4995_s30 }
 0x15b   :  { %4099 = vrot.lane.b32.xlu1 %v4098_v37, %s4994_s29  ;;  %v6554_v48 = vpop.permute.xlu2 %3939  ;;  %v6561_v40 = vpop.permute.xlu0 %3884 }
 0x15c   :  { %9566 = vst [vmem:[#allocation43_spill] sm:$0xff] %v6561_v40 }
 0x15d   :  { %v6557_v58 = vpop.permute.xlu1 %3889 }
 0x15e   :  { %9565 = vst [vmem:[#allocation21_spill] sm:$0xff] %v6557_v58  ;;  %v2693_v58 = vld [vmem:[%s9036_s1 + $0x8] sm:$0xff] }
 0x161   :  { %4119 = vrot.lane.b32.xlu2 %v6223_v36, %s4994_s29  ;;  %4109 = vrot.lane.b32.xlu0 %v4108_v49, %s4996_s15 }
 0x163   :  { %4114 = vrot.lane.b32.xlu1 %v5928_v14, %s4995_s30  ;;  %v6567_v57 = vpop.permute.xlu2 %3954  ;;  %v6574_v30 = vpop.permute.xlu0 %3899 }
 0x164   :  { %9567 = vst [vmem:[#allocation34_spill] sm:$0xff] %v6567_v57 }
 0x165   :  { %v6570_v3 = vpop.permute.xlu1 %3904  ;;  %9571 = vst [vmem:[#allocation35_spill] sm:$0xff] %v6574_v30 }
 0x166   :  { %9568 = vst [vmem:[#allocation136_spill] sm:$0xff] %v6570_v3 }
 0x169   :  { %4134 = vrot.lane.b32.xlu2 %v4133_v1, %s4993_s27  ;;  %4124 = vrot.lane.b32.xlu0 %v9541_v44, %s4997_s16  ;;  %v4153_v1 = vpack.i.bf16 %v9575_v24, %v9574_v63  ;;  %v9579_v24 = vld [vmem:[#allocation97_spill] sm:$0xff] }
 0x16b   :  { %4129 = vrot.lane.b32.xlu1 %v5921_v21, %s4996_s15  ;;  %v6579_v36 = vpop.permute.xlu2 %3969  ;;  %v6585_v37 = vpop.permute.xlu0 %3914 }
 0x16d   :  { %v6583_v14 = vpop.permute.xlu1 %3919 }
 0x171   :  { %4149 = vrot.lane.b32.xlu2 %v9572_v5, %s4997_s16  ;;  %4139 = vrot.lane.b32.xlu0 %v6074_v38, %s4995_s30  ;;  %v4835_v5 = vld [vmem:[%s9035_s0 + $0x290] sm:$0xff] }
 0x173   :  { %4144 = vrot.lane.b32.xlu1 %v4143_v53, %s4994_s29  ;;  %v6596_v46 = vpop.permute.xlu2 %3984  ;;  %v6602_v49 = vpop.permute.xlu0 %3929  ;;  %v4834_v53 = vld [vmem:[%s9035_s0 + $0x288] sm:$0xff] }
 0x174   :  { %9573 = vst [vmem:[#allocation95_spill] sm:$0xff] %v6596_v46  ;;  %v4168_v63 = vpack.i.bf16 %v4835_v5, %v4834_v53 }
 0x175   :  { %v6600_v44 = vpop.permute.xlu1 %3934 }
 0x179   :  { %4164 = vrot.lane.b32.xlu2 %v6128_v23, %s4995_s30  ;;  %4154 = vrot.lane.b32.xlu0 %v4153_v1, %s4993_s27  ;;  %v3596_v23 = vunpack.i.l.bf16 %v9603_v0 }
 0x17b   :  { %4159 = vrot.lane.b32.xlu1 %v6065_v15, %s4996_s15  ;;  %v6610_v47 = vpop.permute.xlu2 %3999  ;;  %v6615_v38 = vpop.permute.xlu0 %3944 }
 0x17c   :  { %9576 = vst [vmem:[#allocation65_spill] sm:$0xff] %v6610_v47 }
 0x17d   :  { %v6613_v52 = vpop.permute.xlu1 %3949  ;;  %9578 = vst [vmem:[#allocation59_spill] sm:$0xff] %v6615_v38 }
 0x17e   :  { %9577 = vst [vmem:[#allocation96_spill] sm:$0xff] %v6613_v52 }
 0x181   :  { %4179 = vrot.lane.b32.xlu2 %v6177_v31, %s4996_s15  ;;  %4169 = vrot.lane.b32.xlu0 %v4168_v63, %s4994_s29  ;;  %v9583_v63 = vld [vmem:[#allocation60_spill] sm:$0xff] }
 0x183   :  { %4174 = vrot.lane.b32.xlu1 %v9579_v24, %s4997_s16  ;;  %v6627_v1 = vpop.permute.xlu2 %4014  ;;  %v6632_v3 = vpop.permute.xlu0 %3959  ;;  %v9584_v24 = vld [vmem:[#allocation89_spill] sm:$0xff] }
 0x184   :  { %v4203_v57 = vpack.i.bf16 %v9584_v24, %v9583_v63  ;;  %v9590_v24 = vld [vmem:[#allocation61_spill] sm:$0xff] }
 0x185   :  { %v6630_v47 = vpop.permute.xlu1 %3964 }
 0x189   :  { %4194 = vrot.lane.b32.xlu2 %v9540_v27, %s4997_s16  ;;  %4184 = vrot.lane.b32.xlu0 %v5921_v21, %s4995_s30  ;;  %v9587_v21 = vld [vmem:[#allocation90_spill] sm:$0xff] }
 0x18a   :  { %v4223_v46 = vpack.i.bf16 %v9588_v19, %v9587_v21  ;;  %v4839_v21 = vld [vmem:[%s9035_s0 + $0x2a8] sm:$0xff] }
 0x18b   :  { %4189 = vrot.lane.b32.xlu1 %v6272_v32, %s4994_s29  ;;  %v6638_v30 = vpop.permute.xlu2 %4029  ;;  %v6644_v5 = vpop.permute.xlu0 %3974 }
 0x18c   :  { %9580 = vst [vmem:[#allocation97_spill] sm:$0xff] %v6638_v30 }
 0x18d   :  { %v6642_v53 = vpop.permute.xlu1 %3979  ;;  %9582 = vst [vmem:[#allocation138_spill] sm:$0xff] %v6644_v5 }
 0x18e   :  { %9581 = vst [vmem:[#allocation137_spill] sm:$0xff] %v6642_v53 }
 0x191   :  { %4209 = vrot.lane.b32.xlu2 %v6065_v15, %s4995_s30  ;;  %4199 = vrot.lane.b32.xlu0 %v5914_v8, %s4996_s15  ;;  %v4836_v15 = vld [vmem:[%s9035_s0 + $0x1f8] sm:$0xff] }
 0x193   :  { %4204 = vrot.lane.b32.xlu1 %v4203_v57, %s4993_s27  ;;  %v6651_v27 = vpop.permute.xlu2 %4044  ;;  %v6659_v52 = vpop.permute.xlu0 %3989  ;;  %v4837_v57 = vld [vmem:[%s9035_s0 + $0x200] sm:$0xff] }
 0x194   :  { %9585 = vst [vmem:[#allocation60_spill] sm:$0xff] %v6651_v27  ;;  %v4213_v63 = vpack.i.bf16 %v4837_v57, %v4836_v15  ;;  %v2696_v15 = vld [vmem:[%s9036_s1 + $0x20] sm:$0xf]  ;;  %v3916_v27 = vunpack.i.l.bf16 %v6585_v37 }
 0x195   :  { %v6655_v32 = vpop.permute.xlu1 %3994  ;;  %9589 = vst [vmem:[#allocation90_spill] sm:$0xff] %v6659_v52  ;;  %v2699_v57 = vpack.c.bf16 %v2696_v15, %v2696_v15 }
 0x196   :  { %9586 = vst [vmem:[#allocation89_spill] sm:$0xff] %v6655_v32 }
 0x199   :  { %4224 = vrot.lane.b32.xlu2 %v4223_v46, %s4993_s27  ;;  %4214 = vrot.lane.b32.xlu0 %v4213_v63, %s4994_s29  ;;  %v4838_v46 = vld [vmem:[%s9035_s0 + $0x2a0] sm:$0xff] }
 0x19a   :  { %v4238_v52 = vpack.i.bf16 %v4839_v21, %v4838_v46  ;;  %v2694_v46 = vld [vmem:[%s9036_s1 + $0x10] sm:$0xff]  ;;  %v2695_v21 = vld [vmem:[%s9036_s1 + $0x18] sm:$0xff] }
 0x19b   :  { %4219 = vrot.lane.b32.xlu1 %v9590_v24, %s4997_s16  ;;  %v6670_v32 = vpop.permute.xlu2 %4059  ;;  %v6681_v30 = vpop.permute.xlu0 %4004  ;;  %v2803_v24 = vsel %vm2801_vm2, %v2699_v57, 0  ;;  %v2698_v53 = vpack.c.bf16 %v2695_v21, %v2694_v46  ;;  %v2692_v57 = vld [vmem:[%s9036_s1] sm:$0xff] }
 0x19c   :  { %9591 = vst [vmem:[#allocation53_spill] sm:$0xff] %v6670_v32  ;;  %3499 = vmatpush.bf16.msra.mxu2 %v2803_v24  ;;  %2810 = vmatpush.bf16.msra.mxu0 %v2803_v24  ;;  %v2697_v56 = vpack.c.bf16 %v2693_v58, %v2692_v57  ;;  %v9595_v21 = vld [vmem:[#allocation91_spill] sm:$0xff]  ;;  %v4840_v57 = vld [vmem:[%s9035_s0 + $0x210] sm:$0xff] }
 0x19d   :  { %v6673_v19 = vpop.permute.xlu1 %4009  ;;  %3500 = vmatpush.bf16.msra.mxu3 %v2803_v24  ;;  %3498 = vmatpush.bf16.msra.mxu1 %v2803_v24  ;;  %v9594_v24 = vld [vmem:[#allocation51_spill] sm:$0xff] }
 0x1a0   :  { %3502 = vmatpush.bf16.msra.mxu2 %v2698_v53  ;;  %2811 = vmatpush.bf16.msra.mxu0 %v2698_v53 }
 0x1a1   :  { %4239 = vrot.lane.b32.xlu2 %v4238_v52, %s4994_s29  ;;  %v9592_v52 = vld [vmem:[#allocation64_spill] sm:$0xff]  ;;  %3503 = vmatpush.bf16.msra.mxu3 %v2698_v53 }
 0x1a2   :  { %4229 = vrot.lane.b32.xlu0 %v9592_v52, %s4996_s15  ;;  %3501 = vmatpush.bf16.msra.mxu1 %v2698_v53 }
 0x1a3   :  { %4234 = vrot.lane.b32.xlu1 %v6177_v31, %s4995_s30  ;;  %v6689_v63 = vpop.permute.xlu2 %4074  ;;  %v6701_v31 = vpop.permute.xlu0 %4019 }
 0x1a4   :  { %3505 = vmatpush.bf16.msra.mxu2 %v2697_v56  ;;  %2812 = vmatpush.bf16.msra.mxu0 %v2697_v56 }
 0x1a5   :  { %v6699_v15 = vpop.permute.xlu1 %4024  ;;  %3506 = vmatpush.bf16.msra.mxu3 %v2697_v56 }
 0x1a6   :  { %9593 = vst [vmem:[#allocation61_spill] sm:$0xff] %v6699_v15  ;;  %3504 = vmatpush.bf16.msra.mxu1 %v2697_v56  ;;  %v4841_v56 = vld [vmem:[%s9035_s0 + $0x218] sm:$0xff]  ;;  %v3757_v15 = vunpack.i.h.bf16 %v6421_v33 }
 0x1a9   :  { %4254 = vrot.lane.b32.xlu2 %v5914_v8, %s4995_s30  ;;  %v9598_v8 = vld [vmem:[#allocation118_spill] sm:$0xff] }
 0x1aa   :  { %4244 = vrot.lane.b32.xlu0 %v9595_v21, %s4997_s16  ;;  %v4283_v21 = vpack.i.bf16 %v4841_v56, %v4840_v57  ;;  %v3917_v56 = vunpack.i.h.bf16 %v6585_v37 }
 0x1ab   :  { %4249 = vrot.lane.b32.xlu1 %v9594_v24, %s4996_s15  ;;  %v6713_v46 = vpop.permute.xlu2 %4089  ;;  %v6719_v7 = vpop.permute.xlu0 %4034 }
 0x1ac   :  { %9597 = vst [vmem:[#allocation51_spill] sm:$0xff] %v6719_v7  ;;  %v9602_v7 = vld [vmem:[#allocation84_spill] sm:$0xff] }
 0x1ad   :  { %v6717_v38 = vpop.permute.xlu1 %4039 }
 0x1ae   :  { %9596 = vst [vmem:[#allocation64_spill] sm:$0xff] %v6717_v38 }
 0x1b1   :  { %4269 = vrot.lane.b32.xlu2 %v9598_v8, %s4996_s15 }
 0x1b2   :  { %4259 = vrot.lane.b32.xlu0 %v6262_v59, %s4994_s29  ;;  %v3597_v59 = vunpack.i.h.bf16 %v9603_v0  ;;  %v9605_v0 = vld [vmem:[#allocation48_spill] sm:$0xff] }
 0x1b3   :  { %4264 = vrot.lane.b32.xlu1 %v9547_v16, %s4997_s16  ;;  %v6725_v58 = vpop.permute.xlu2 %4104  ;;  %v6737_v38 = vpop.permute.xlu0 %4049  ;;  %v9601_v16 = vld [vmem:[#allocation54_spill] sm:$0xff] }
 0x1b4   :  { %9600 = vst [vmem:[#allocation118_spill] sm:$0xff] %v6737_v38  ;;  %v4273_v28 = vpack.i.bf16 %v9602_v7, %v9601_v16  ;;  %v4842_v7 = vld [vmem:[%s9035_s0 + $0x158] sm:$0xff]  ;;  %v9604_v38 = vld [vmem:[#allocation85_spill] sm:$0xff] }
 0x1b5   :  { %v6729_v53 = vpop.permute.xlu1 %4054  ;;  %v4293_v11 = vpack.i.bf16 %v9605_v0, %v9604_v38 }
 0x1b6   :  { %9599 = vst [vmem:[#allocation91_spill] sm:$0xff] %v6729_v53 }
 0x1b9   :  { %4284 = vrot.lane.b32.xlu2 %v4283_v21, %s4994_s29  ;;  %v2170_v21 = vsel %vm2140_vm3, %v4842_v7, %v3597_v59  ;;  %v9606_v7 = vld [vmem:[#allocation63_spill] sm:$0xff] }
 0x1ba   :  { %4274 = vrot.lane.b32.xlu0 %v4273_v28, %s4993_s27  ;;  %v4843_v28 = vld [vmem:[%s9035_s0 + $0x150] sm:$0xff]  ;;  %v2235_v59 = vsel %vm2205_vm4, %v2170_v21, %v3757_v15 }
 0x1bb   :  { %4279 = vrot.lane.b32.xlu1 %v9592_v52, %s4995_s30  ;;  %v6745_v53 = vpop.permute.xlu2 %4119  ;;  %v3756_v52 = vunpack.i.l.bf16 %v6421_v33  ;;  %v6756_v16 = vpop.permute.xlu0 %4064  ;;  %v2169_v61 = vsel %vm2140_vm3, %v4843_v28, %v3596_v23  ;;  %v4062_v33 = vunpack.i.h.bf16 %v6670_v32  ;;  %v2300_v38 = vsel %vm2270_vm5, %v2235_v59, %v3917_v56  ;;  %v9607_v59 = vld [vmem:[#allocation55_spill] sm:$0xff] }
 0x1bc   :  { %v4066_v5 = vunpack.i.l.bf16 %v6756_v16  ;;  %v4077_v32 = vunpack.i.h.bf16 %v6689_v63  ;;  %v4076_v56 = vunpack.i.l.bf16 %v6689_v63  ;;  %v4845_v63 = vld [vmem:[%s9035_s0 + $0x2c0] sm:$0xff] }
 0x1bd   :  { %v4070_v57 = vpop.permute.xlu1 %4069  ;;  %v2234_v23 = vsel %vm2205_vm4, %v2169_v61, %v3756_v52 }
 0x1be   :  { %v4072_v0 = vunpack.i.h.bf16 %v4070_v57  ;;  %v4071_v40 = vunpack.i.l.bf16 %v4070_v57  ;;  %v2365_v37 = vsel %vm2335_vm6, %v2300_v38, %v4066_v5  ;;  %v2299_v15 = vsel %vm2270_vm5, %v2234_v23, %v3916_v27  ;;  %v4844_v27 = vld [vmem:[%s9035_s0 + $0x2b8] sm:$0xff] }
 0x1bf   :  { %v2364_v21 = vsel %vm2335_vm6, %v2299_v15, %v4062_v33  ;;  %v4308_v33 = vpack.i.bf16 %v4845_v63, %v4844_v27 }
 0x1c0   :  { %v2429_v61 = vsel %vm2400_vm7, %v2364_v21, %v4071_v40  ;;  %v2430_v5 = vsel %vm2400_vm7, %v2365_v37, %v4072_v0  ;;  %v9608_v40 = vld [vmem:[#allocation112_spill] sm:$0xff]  ;;  %v3602_v21 = vunpack.i.h.bf16 %v6198_v10 }
 0x1c1   :  { %4299 = vrot.lane.b32.xlu2 %v9606_v7, %s4996_s15  ;;  %v2494_v0 = vsel %vm2465_vm8, %v2429_v61, %v4076_v56  ;;  %v2495_v37 = vsel %vm2465_vm8, %v2430_v5, %v4077_v32  ;;  %v3762_v56 = vunpack.i.h.bf16 %v6373_v35  ;;  %v3761_v32 = vunpack.i.l.bf16 %v6373_v35  ;;  %v4846_v35 = vld [vmem:[%s9035_s0 + $0x170] sm:$0xff] }
 0x1c2   :  { %4289 = vrot.lane.b32.xlu0 %v9607_v59, %s4997_s16  ;;  %v3922_v5 = vunpack.i.h.bf16 %v6583_v14 }
 0x1c3   :  { %4294 = vrot.lane.b32.xlu1 %v4293_v11, %s4993_s27  ;;  %v6774_v28 = vpop.permute.xlu2 %4134  ;;  %v4080_v38 = vpop.permute.xlu0 %4079 }
 0x1c4   :  { %v4082_v23 = vunpack.i.h.bf16 %v4080_v38  ;;  %v4081_v15 = vunpack.i.l.bf16 %v4080_v38 }
 0x1c5   :  { %v4085_v57 = vpop.permute.xlu1 %4084 }
 0x1c6   :  { %v4087_v11 = vunpack.i.h.bf16 %v4085_v57  ;;  %v4086_v52 = vunpack.i.l.bf16 %v4085_v57  ;;  %v2559_v59 = vsel %vm2530_vm9, %v2494_v0, %v4081_v15  ;;  %v2560_v57 = vsel %vm2530_vm9, %v2495_v37, %v4082_v23 }
 0x1c7   :  { %v3921_v23 = vunpack.i.l.bf16 %v6583_v14  ;;  %v4847_v14 = vld [vmem:[%s9035_s0 + $0x168] sm:$0xff] }
 0x1c8   :  { %v2624_v38 = vsel %vm2595_vm10, %v2559_v59, %v4086_v52  ;;  %v2625_v27 = vsel %vm2595_vm10, %v2560_v57, %v4087_v11  ;;  %v4091_v52 = vunpack.i.l.bf16 %v6713_v46  ;;  %v4067_v11 = vunpack.i.h.bf16 %v6756_v16 }
 0x1c9   :  { %4314 = vrot.lane.b32.xlu2 %v9608_v40, %s4997_s16  ;;  %v2674_v61 = vpack.c.bf16 %v2625_v27, %v2624_v38  ;;  %v2172_v40 = vsel %vm2140_vm3, %v4846_v35, %v3602_v21 }
 0x1ca   :  { %4304 = vrot.lane.b32.xlu0 %v9594_v24, %s4995_s30  ;;  %v2171_v24 = vsel %vm2140_vm3, %v4847_v14, %v3601_v18  ;;  %v2237_v16 = vsel %vm2205_vm4, %v2172_v40, %v3762_v56 }
 0x1cb   :  { %4309 = vrot.lane.b32.xlu1 %v4308_v33, %s4994_s29  ;;  %v6801_v63 = vpop.permute.xlu2 %4149  ;;  %3478 = vmatmul.msk.bf16.vlgmr.msra.gmra.mxu2 %vm2704_vm11, %v2674_v61  ;;  %v9609_v33 = vld [vmem:[#allocation44_spill] sm:$0xff]  ;;  %v4095_v0 = vpop.permute.xlu0 %4094  ;;  %v2236_v37 = vsel %vm2205_vm4, %v2171_v24, %v3761_v32  ;;  %v2302_v61 = vsel %vm2270_vm5, %v2237_v16, %v3922_v5  ;;  %v3686_v32 = vunpack.i.l.bf16 %v6240_v12  ;;  %v4107_v5 = vunpack.i.h.bf16 %v6725_v58 }
 0x1cc   :  { %v3527_v15 = vunpack.i.h.bf16 %v9609_v33  ;;  %v4097_v59 = vunpack.i.h.bf16 %v4095_v0  ;;  %v4096_v57 = vunpack.i.l.bf16 %v4095_v0  ;;  %v3526_v38 = vunpack.i.l.bf16 %v9609_v33  ;;  %v9612_v33 = vld [vmem:[#allocation108_spill] sm:$0xff] }
 0x1cd   :  { %v4100_v10 = vpop.permute.xlu1 %4099  ;;  %v2301_v27 = vsel %vm2270_vm5, %v2236_v37, %v3921_v23  ;;  %v2367_v21 = vsel %vm2335_vm6, %v2302_v61, %v4091_v52  ;;  %v9610_v52 = vld [vmem:[#allocation82_spill] sm:$0xff]  ;;  %v4848_v0 = vld [vmem:[%s9035_s0 + $0x8] sm:$0xff]  ;;  %v3846_v61 = vunpack.i.l.bf16 %v6509_v2 }
 0x1ce   :  { %v2366_v18 = vsel %vm2335_vm6, %v2301_v27, %v4067_v11  ;;  %v4102_v35 = vunpack.i.h.bf16 %v4100_v10  ;;  %v4101_v14 = vunpack.i.l.bf16 %v4100_v10  ;;  %v2432_v40 = vsel %vm2400_vm7, %v2367_v21, %v4097_v59  ;;  %v9611_v10 = vld [vmem:[#allocation49_spill] sm:$0xff] }
 0x1cf   :  { %v2431_v56 = vsel %vm2400_vm7, %v2366_v18, %v4096_v57  ;;  %v4343_v24 = vpack.i.bf16 %v9612_v33, %v9611_v10  ;;  %v2142_v37 = vsel %vm2140_vm3, %v4848_v0, %v3527_v15  ;;  %v3687_v57 = vunpack.i.h.bf16 %v6240_v12 }
 0x1d0   :  { %v2497_v59 = vsel %vm2465_vm8, %v2432_v40, %v4102_v35  ;;  %v3847_v18 = vunpack.i.h.bf16 %v6509_v2  ;;  %v4006_v15 = vunpack.i.l.bf16 %v6681_v30  ;;  %v4007_v0 = vunpack.i.h.bf16 %v6681_v30 }
 0x1d1   :  { %4329 = vrot.lane.b32.xlu2 %v6252_v39, %s4994_s29  ;;  %v4106_v39 = vunpack.i.l.bf16 %v6725_v58  ;;  %v2496_v58 = vsel %vm2465_vm8, %v2431_v56, %v4101_v14  ;;  %v2562_v35 = vsel %vm2530_vm9, %v2497_v59, %v4107_v5  ;;  %v2207_v2 = vsel %vm2205_vm4, %v2142_v37, %v3687_v57 }
 0x1d2   :  { %4319 = vrot.lane.b32.xlu0 %v9610_v52, %s4996_s15 }
 0x1d3   :  { %4324 = vrot.lane.b32.xlu1 %v9598_v8, %s4995_s30  ;;  %v6835_v23 = vpop.permute.xlu2 %4164  ;;  %v4849_v8 = vld [vmem:[%s9035_s0] sm:$0xff]  ;;  %v4110_v21 = vpop.permute.xlu0 %4109 }
 0x1d4   :  { %v2141_v16 = vsel %vm2140_vm3, %v4849_v8, %v3526_v38  ;;  %v4112_v10 = vunpack.i.h.bf16 %v4110_v21  ;;  %v4111_v33 = vunpack.i.l.bf16 %v4110_v21  ;;  %v2561_v38 = vsel %vm2530_vm9, %v2496_v58, %v4106_v39  ;;  %v9613_v8 = vld [vmem:[#allocation117_spill] sm:$0xff] }
 0x1d5   :  { %v4115_v11 = vpop.permute.xlu1 %4114  ;;  %v2206_v27 = vsel %vm2205_vm4, %v2141_v16, %v3686_v32  ;;  %v2272_v39 = vsel %vm2270_vm5, %v2207_v2, %v3847_v18  ;;  %v4121_v58 = vunpack.i.l.bf16 %v6745_v53  ;;  %v4850_v18 = vld [vmem:[%s9035_s0 + $0x228] sm:$0xff] }
 0x1d6   :  { %v4117_v12 = vunpack.i.h.bf16 %v4115_v11  ;;  %v4116_v14 = vunpack.i.l.bf16 %v4115_v11  ;;  %v2626_v32 = vsel %vm2595_vm10, %v2561_v38, %v4111_v33  ;;  %v2627_v56 = vsel %vm2595_vm10, %v2562_v35, %v4112_v10  ;;  %v9615_v35 = vld [vmem:[#allocation120_spill] sm:$0xff] }
 0x1d7   :  { %v2271_v40 = vsel %vm2270_vm5, %v2206_v27, %v3846_v61  ;;  %v2675_v30 = vpack.c.bf16 %v2627_v56, %v2626_v32  ;;  %v2337_v11 = vsel %vm2335_vm6, %v2272_v39, %v4007_v0  ;;  %v3767_v32 = vunpack.i.h.bf16 %v6444_v51 }
 0x1d8   :  { %v2336_v5 = vsel %vm2335_vm6, %v2271_v40, %v4006_v15  ;;  %v2402_v57 = vsel %vm2400_vm7, %v2337_v11, %v4117_v12  ;;  %v3766_v56 = vunpack.i.l.bf16 %v6444_v51  ;;  %v3926_v39 = vunpack.i.l.bf16 %v6545_v42  ;;  %v4852_v51 = vld [vmem:[%s9035_s0 + $0x1b8] sm:$0xff] }
 0x1d9   :  { %4344 = vrot.lane.b32.xlu2 %v4343_v24, %s4993_s27  ;;  %v4122_v24 = vunpack.i.h.bf16 %v6745_v53  ;;  %v2401_v59 = vsel %vm2400_vm7, %v2336_v5, %v4116_v14  ;;  %v4851_v53 = vld [vmem:[%s9035_s0 + $0x230] sm:$0xff] }
 0x1da   :  { %4334 = vrot.lane.b32.xlu0 %v9545_v26, %s4997_s16  ;;  %v4353_v15 = vpack.i.bf16 %v4851_v53, %v4850_v18  ;;  %v9614_v26 = vld [vmem:[#allocation56_spill] sm:$0xff]  ;;  %v2466_v12 = vsel %vm2465_vm8, %v2401_v59, %v4121_v58  ;;  %v4853_v59 = vld [vmem:[%s9035_s0 + $0x1b0] sm:$0xff] }
 0x1db   :  { %4339 = vrot.lane.b32.xlu1 %v9613_v8, %s4996_s15  ;;  %v6868_v16 = vpop.permute.xlu2 %4179  ;;  %3479 = vmatmul.msk.bf16.gmra.mxu2 %vm2704_vm11, %v2675_v30  ;;  %v4125_v21 = vpop.permute.xlu0 %4124  ;;  %v3607_v10 = vunpack.i.h.bf16 %v9614_v26  ;;  %v3606_v38 = vunpack.i.l.bf16 %v9614_v26  ;;  %v2467_v14 = vsel %vm2465_vm8, %v2402_v57, %v4122_v24  ;;  %v3927_v30 = vunpack.i.h.bf16 %v6545_v42 }
 0x1dc   :  { %v4127_v33 = vunpack.i.h.bf16 %v4125_v21  ;;  %v4126_v0 = vunpack.i.l.bf16 %v4125_v21  ;;  %v4092_v57 = vunpack.i.h.bf16 %v6713_v46 }
 0x1dd   :  { %v4130_v37 = vpop.permute.xlu1 %4129  ;;  %v2174_v24 = vsel %vm2140_vm3, %v4852_v51, %v3607_v10  ;;  %v2173_v42 = vsel %vm2140_vm3, %v4853_v59, %v3606_v38  ;;  %v9616_v10 = vld [vmem:[#allocation109_spill] sm:$0xff]  ;;  %v9618_v51 = vld [vmem:[#allocation83_spill] sm:$0xff] }
 0x1de   :  { %v4132_v27 = vunpack.i.h.bf16 %v4130_v37  ;;  %v4131_v61 = vunpack.i.l.bf16 %v4130_v37  ;;  %v2531_v2 = vsel %vm2530_vm9, %v2466_v12, %v4126_v0  ;;  %v2532_v40 = vsel %vm2530_vm9, %v2467_v14, %v4127_v33  ;;  %v9617_v33 = vld [vmem:[#allocation77_spill] sm:$0xff] }
 0x1df   :  { %v2239_v21 = vsel %vm2205_vm4, %v2174_v24, %v3767_v32  ;;  %v2238_v18 = vsel %vm2205_vm4, %v2173_v42, %v3766_v56  ;;  %v4368_v46 = vpack.i.bf16 %v9617_v33, %v9616_v10  ;;  %v9619_v24 = vld [vmem:[#allocation80_spill] sm:$0xff]  ;;  %v3961_v33 = vunpack.i.l.bf16 %v6632_v3 }
 0x1e0   :  { %v2596_v5 = vsel %vm2595_vm10, %v2531_v2, %v4131_v61  ;;  %v2597_v11 = vsel %vm2595_vm10, %v2532_v40, %v4132_v27  ;;  %v4136_v61 = vunpack.i.l.bf16 %v6774_v28  ;;  %v2303_v53 = vsel %vm2270_vm5, %v2238_v18, %v3926_v39 }
 0x1e1   :  { %4359 = vrot.lane.b32.xlu2 %v9615_v35, %s4995_s30  ;;  %v2660_v37 = vpack.c.bf16 %v2597_v11, %v2596_v5  ;;  %v4152_v40 = vunpack.i.h.bf16 %v6801_v63  ;;  %v3801_v18 = vunpack.i.l.bf16 %v6467_v29 }
 0x1e2   :  { %4349 = vrot.lane.b32.xlu0 %v9606_v7, %s4995_s30  ;;  %v2368_v7 = vsel %vm2335_vm6, %v2303_v53, %v4092_v57  ;;  %v3641_v57 = vunpack.i.l.bf16 %v9619_v24 }
 0x1e3   :  { %4354 = vrot.lane.b32.xlu1 %v4353_v15, %s4994_s29  ;;  %v6901_v58 = vpop.permute.xlu2 %4194  ;;  %3464 = vmatmul.msk.bf16.vlgmr.msra.gmra.mxu0 %vm2704_vm11, %v2660_v37  ;;  %v2304_v15 = vsel %vm2270_vm5, %v2239_v21, %v3927_v30  ;;  %v4140_v26 = vpop.permute.xlu0 %4139  ;;  %v4151_v30 = vunpack.i.l.bf16 %v6801_v63  ;;  %v3642_v37 = vunpack.i.h.bf16 %v9619_v24  ;;  %v3802_v21 = vunpack.i.h.bf16 %v6467_v29 }
 0x1e4   :  { %v4142_v12 = vunpack.i.h.bf16 %v4140_v26  ;;  %v4141_v14 = vunpack.i.l.bf16 %v4140_v26  ;;  %v2369_v32 = vsel %vm2335_vm6, %v2304_v15, %v4136_v61  ;;  %v3962_v26 = vunpack.i.h.bf16 %v6632_v3 }
 0x1e5   :  { %v4145_v27 = vpop.permute.xlu1 %4144  ;;  %v4137_v3 = vunpack.i.h.bf16 %v6774_v28  ;;  %v4182_v24 = vunpack.i.h.bf16 %v6868_v16 }
 0x1e6   :  { %v4147_v0 = vunpack.i.h.bf16 %v4145_v27  ;;  %v4146_v38 = vunpack.i.l.bf16 %v4145_v27  ;;  %v2433_v56 = vsel %vm2400_vm7, %v2368_v7, %v4141_v14  ;;  %v2434_v2 = vsel %vm2400_vm7, %v2369_v32, %v4142_v12 }
 0x1e8   :  { %v2498_v5 = vsel %vm2465_vm8, %v2433_v56, %v4146_v38  ;;  %v2499_v11 = vsel %vm2465_vm8, %v2434_v2, %v4147_v0  ;;  %v6955_v0 = vld [vmem:[%s9035_s0 + $0x260] sm:$0xff]  ;;  %v6962_v38 = vld [vmem:[%s9035_s0 + $0x258] sm:$0xff]  ;;  %v4167_v56 = vunpack.i.h.bf16 %v6835_v23  ;;  %v4166_v2 = vunpack.i.l.bf16 %v6835_v23 }
 0x1e9   :  { %4374 = vrot.lane.b32.xlu2 %v6323_v13, %s4994_s29  ;;  %v2563_v63 = vsel %vm2530_vm9, %v2498_v5, %v4151_v30  ;;  %v2564_v27 = vsel %vm2530_vm9, %v2499_v11, %v4152_v40  ;;  %v2188_v29 = vsel %vm2140_vm3, %v6955_v0, %v3642_v37  ;;  %v9620_v40 = vld [vmem:[#allocation29_spill] sm:$0xff]  ;;  %v4181_v37 = vunpack.i.l.bf16 %v6868_v16 }
 0x1ea   :  { %4364 = vrot.lane.b32.xlu0 %v9618_v51, %s4997_s16  ;;  %v2253_v14 = vsel %vm2205_vm4, %v2188_v29, %v3802_v21  ;;  %v4857_v21 = vld [vmem:[%s9035_s0 + $0x2d8] sm:$0xff] }
 0x1eb   :  { %4369 = vrot.lane.b32.xlu1 %v4368_v46, %s4993_s27  ;;  %v6931_v39 = vpop.permute.xlu2 %4209  ;;  %v6939_v61 = vpop.permute.xlu0 %4154  ;;  %v2318_v32 = vsel %vm2270_vm5, %v2253_v14, %v3962_v26  ;;  %v3691_v14 = vunpack.i.l.bf16 %v6362_v9 }
 0x1ec   :  { %v4156_v46 = vunpack.i.l.bf16 %v6939_v61 }
 0x1ed   :  { %v4160_v13 = vpop.permute.xlu1 %4159 }
 0x1ee   :  { %v4162_v59 = vunpack.i.h.bf16 %v4160_v13  ;;  %v4161_v42 = vunpack.i.l.bf16 %v4160_v13  ;;  %v2383_v30 = vsel %vm2335_vm6, %v2318_v32, %v4156_v46 }
 0x1f0   :  { %v2628_v53 = vsel %vm2595_vm10, %v2563_v63, %v4161_v42  ;;  %v2629_v15 = vsel %vm2595_vm10, %v2564_v27, %v4162_v59  ;;  %v9621_v63 = vld [vmem:[#allocation110_spill] sm:$0xff] }
 0x1f1   :  { %4389 = vrot.lane.b32.xlu2 %v9558_v34, %s4997_s16  ;;  %v2676_v10 = vpack.c.bf16 %v2629_v15, %v2628_v53  ;;  %v2187_v34 = vsel %vm2140_vm3, %v6962_v38, %v3641_v57  ;;  %v2448_v57 = vsel %vm2400_vm7, %v2383_v30, %v4167_v56  ;;  %v4856_v27 = vld [vmem:[%s9035_s0 + $0x2d0] sm:$0xff]  ;;  %v3852_v56 = vunpack.i.h.bf16 %v6463_v25 }
 0x1f2   :  { %v2252_v7 = vsel %vm2205_vm4, %v2187_v34, %v3801_v18  ;;  %4379 = vrot.lane.b32.xlu0 %v9620_v40, %s4996_s15  ;;  %v4393_v18 = vpack.i.bf16 %v4857_v21, %v4856_v27  ;;  %v9622_v15 = vld [vmem:[#allocation25_spill] sm:$0xff] }
 0x1f3   :  { %4384 = vrot.lane.b32.xlu1 %v9610_v52, %s4995_s30  ;;  %3480 = vmatmul.msk.bf16.gmra.mxu2 %vm2704_vm11, %v2676_v10  ;;  %v6970_v12 = vpop.permute.xlu2 %4224  ;;  %v2317_v52 = vsel %vm2270_vm5, %v2252_v7, %v3961_v33  ;;  %v4170_v13 = vpop.permute.xlu0 %4169  ;;  %v3532_v26 = vunpack.i.h.bf16 %v9622_v15  ;;  %v3531_v10 = vunpack.i.l.bf16 %v9622_v15  ;;  %v9623_v33 = vld [vmem:[#allocation16_spill] sm:$0xff]  ;;  %v4858_v30 = vld [vmem:[%s9035_s0 + $0x90] sm:$0xff] }
 0x1f4   :  { %v2382_v5 = vsel %vm2335_vm6, %v2317_v52, %v4137_v3  ;;  %v4172_v59 = vunpack.i.h.bf16 %v4170_v13  ;;  %v4171_v42 = vunpack.i.l.bf16 %v4170_v13  ;;  %v3692_v3 = vunpack.i.h.bf16 %v6362_v9  ;;  %v4859_v9 = vld [vmem:[%s9035_s0 + $0x98] sm:$0xff] }
 0x1f5   :  { %v4175_v28 = vpop.permute.xlu1 %4174  ;;  %v2447_v23 = vsel %vm2400_vm7, %v2382_v5, %v4166_v2  ;;  %v3851_v2 = vunpack.i.l.bf16 %v6463_v25  ;;  %v4418_v5 = vpack.i.bf16 %v4859_v9, %v4858_v30  ;;  %v4860_v25 = vld [vmem:[%s9035_s0 + $0x20] sm:$0xff] }
 0x1f6   :  { %v4177_v11 = vunpack.i.h.bf16 %v4175_v28  ;;  %v4176_v51 = vunpack.i.l.bf16 %v4175_v28  ;;  %v2512_v16 = vsel %vm2465_vm8, %v2447_v23, %v4171_v42  ;;  %v2513_v53 = vsel %vm2465_vm8, %v2448_v57, %v4172_v59 }
 0x1f7   :  { %v2144_v13 = vsel %vm2140_vm3, %v4860_v25, %v3532_v26 }
 0x1f8   :  { %v2577_v29 = vsel %vm2530_vm9, %v2512_v16, %v4176_v51  ;;  %v2578_v34 = vsel %vm2530_vm9, %v2513_v53, %v4177_v11  ;;  %v4012_v11 = vunpack.i.h.bf16 %v6673_v19  ;;  %v4011_v51 = vunpack.i.l.bf16 %v6673_v19 }
 0x1f9   :  { %4404 = vrot.lane.b32.xlu2 %v9621_v63, %s4997_s16  ;;  %v2642_v7 = vsel %vm2595_vm10, %v2577_v29, %v4181_v37  ;;  %v2643_v32 = vsel %vm2595_vm10, %v2578_v34, %v4182_v24  ;;  %v4861_v24 = vld [vmem:[%s9035_s0 + $0x18] sm:$0xff]  ;;  %v2209_v23 = vsel %vm2205_vm4, %v2144_v13, %v3692_v3  ;;  %v4197_v29 = vunpack.i.h.bf16 %v6901_v58 }
 0x1fa   :  { %4394 = vrot.lane.b32.xlu0 %v4393_v18, %s4994_s29  ;;  %v2683_v52 = vpack.c.bf16 %v2643_v32, %v2642_v7  ;;  %v2143_v37 = vsel %vm2140_vm3, %v4861_v24, %v3531_v10  ;;  %v2274_v27 = vsel %vm2270_vm5, %v2209_v23, %v3852_v56  ;;  %v4196_v34 = vunpack.i.l.bf16 %v6901_v58  ;;  %v9624_v3 = vld [vmem:[#allocation98_spill] sm:$0xff] }
 0x1fb   :  { %4399 = vrot.lane.b32.xlu1 %v9623_v33, %s4996_s15  ;;  %v7000_v46 = vpop.permute.xlu2 %4239  ;;  %v4185_v59 = vpop.permute.xlu0 %4184  ;;  %v2208_v42 = vsel %vm2205_vm4, %v2143_v37, %v3691_v14  ;;  %v2339_v18 = vsel %vm2335_vm6, %v2274_v27, %v4012_v11  ;;  %v9625_v7 = vld [vmem:[#allocation78_spill] sm:$0xff]  ;;  %v3771_v24 = vunpack.i.l.bf16 %v6442_v20  ;;  %v9628_v37 = vld [vmem:[#allocation116_spill] sm:$0xff]  ;;  %v3772_v23 = vunpack.i.h.bf16 %v6442_v20 }
 0x1fc   :  { %3487 = vmatmul.msk.bf16.vlgmr.msra.gmra.mxu3 %vm2704_vm11, %v2683_v52  ;;  %v4187_v19 = vunpack.i.h.bf16 %v4185_v59  ;;  %v4186_v57 = vunpack.i.l.bf16 %v4185_v59  ;;  %v2273_v63 = vsel %vm2270_vm5, %v2208_v42, %v3851_v2  ;;  %v9626_v32 = vld [vmem:[#allocation102_spill] sm:$0xff] }
 0x1fd   :  { %v4190_v28 = vpop.permute.xlu1 %4189  ;;  %v2338_v21 = vsel %vm2335_vm6, %v2273_v63, %v4011_v51  ;;  %v4433_v56 = vpack.i.bf16 %v9626_v32, %v9625_v7  ;;  %v4157_v63 = vunpack.i.h.bf16 %v6939_v61 }
 0x1fe   :  { %v4192_v16 = vunpack.i.h.bf16 %v4190_v28  ;;  %v4191_v53 = vunpack.i.l.bf16 %v4190_v28  ;;  %v2403_v15 = vsel %vm2400_vm7, %v2338_v21, %v4186_v57  ;;  %v2404_v26 = vsel %vm2400_vm7, %v2339_v18, %v4187_v19  ;;  %v4862_v21 = vld [vmem:[%s9035_s0 + $0x1c8] sm:$0xff] }
 0x1ff   :  { %v3931_v19 = vunpack.i.l.bf16 %v6602_v49  ;;  %v3932_v57 = vunpack.i.h.bf16 %v6602_v49  ;;  %v4863_v49 = vld [vmem:[%s9035_s0 + $0x1d0] sm:$0xff] }
 0x200   :  { %v2468_v2 = vsel %vm2465_vm8, %v2403_v15, %v4191_v53  ;;  %v2469_v28 = vsel %vm2465_vm8, %v2404_v26, %v4192_v16  ;;  %v4864_v53 = vld [vmem:[%s9035_s0 + $0x240] sm:$0xff]  ;;  %v4865_v15 = vld [vmem:[%s9035_s0 + $0x248] sm:$0xff] }
 0x201   :  { %4419 = vrot.lane.b32.xlu2 %v4418_v5, %s4994_s29  ;;  %v2533_v9 = vsel %vm2530_vm9, %v2468_v2, %v4196_v34  ;;  %v2534_v58 = vsel %vm2530_vm9, %v2469_v28, %v4197_v29  ;;  %v9627_v5 = vld [vmem:[#allocation27_spill] sm:$0xff]  ;;  %v4443_v26 = vpack.i.bf16 %v4865_v15, %v4864_v53  ;;  %v4212_v28 = vunpack.i.h.bf16 %v6931_v39 }
 0x202   :  { %4409 = vrot.lane.b32.xlu0 %v9624_v3, %s4996_s15  ;;  %v3611_v11 = vunpack.i.l.bf16 %v9627_v5  ;;  %v3612_v13 = vunpack.i.h.bf16 %v9627_v5  ;;  %v9629_v29 = vld [vmem:[#allocation87_spill] sm:$0xff]  ;;  %v3807_v5 = vunpack.i.h.bf16 %v6418_v22  ;;  %v3966_v15 = vunpack.i.l.bf16 %v6630_v47 }
 0x203   :  { %4414 = vrot.lane.b32.xlu1 %v9613_v8, %s4995_s30  ;;  %v7039_v10 = vpop.permute.xlu2 %4254  ;;  %v4200_v52 = vpop.permute.xlu0 %4199  ;;  %v3647_v34 = vunpack.i.h.bf16 %v9629_v29 }
 0x204   :  { %v4202_v8 = vunpack.i.h.bf16 %v4200_v52  ;;  %v4201_v30 = vunpack.i.l.bf16 %v4200_v52  ;;  %v2175_v18 = vsel %vm2140_vm3, %v4862_v21, %v3611_v11  ;;  %v2176_v61 = vsel %vm2140_vm3, %v4863_v49, %v3612_v13 }
 0x205   :  { %v7045_v14 = vpop.permute.xlu1 %4204  ;;  %v2240_v16 = vsel %vm2205_vm4, %v2175_v18, %v3771_v24  ;;  %v2241_v7 = vsel %vm2205_vm4, %v2176_v61, %v3772_v23  ;;  %v4866_v24 = vld [vmem:[%s9035_s0 + $0x108] sm:$0xff]  ;;  %v3806_v18 = vunpack.i.l.bf16 %v6418_v22  ;;  %v3967_v49 = vunpack.i.h.bf16 %v6630_v47 }
 0x206   :  { %v2598_v51 = vsel %vm2595_vm10, %v2533_v9, %v4201_v30  ;;  %v2599_v25 = vsel %vm2595_vm10, %v2534_v58, %v4202_v8  ;;  %v4206_v20 = vunpack.i.l.bf16 %v7045_v14  ;;  %v2305_v32 = vsel %vm2270_vm5, %v2240_v16, %v3931_v19  ;;  %v7114_v19 = vld [vmem:[%s9035_s0 + $0x278] sm:$0xff] }
 0x207   :  { %v2661_v59 = vpack.c.bf16 %v2599_v25, %v2598_v51  ;;  %v2306_v2 = vsel %vm2270_vm5, %v2241_v7, %v3932_v57  ;;  %v2370_v52 = vsel %vm2335_vm6, %v2305_v32, %v4157_v63  ;;  %v3646_v8 = vunpack.i.l.bf16 %v9629_v29  ;;  %v9630_v16 = vld [vmem:[#allocation103_spill] sm:$0xff] }
 0x208   :  { %v2371_v30 = vsel %vm2335_vm6, %v2306_v2, %v4206_v20  ;;  %v2190_v57 = vsel %vm2140_vm3, %v7114_v19, %v3647_v34  ;;  %v4207_v7 = vunpack.i.h.bf16 %v7045_v14 }
 0x209   :  { %4434 = vrot.lane.b32.xlu2 %v4433_v56, %s4993_s27  ;;  %3465 = vmatmul.msk.bf16.gmra.mxu0 %vm2704_vm11, %v2661_v59  ;;  %v4211_v56 = vunpack.i.l.bf16 %v6931_v39  ;;  %v2436_v13 = vsel %vm2400_vm7, %v2371_v30, %v4212_v28  ;;  %v4867_v59 = vld [vmem:[%s9035_s0 + $0x110] sm:$0xff]  ;;  %v2255_v20 = vsel %vm2205_vm4, %v2190_v57, %v3807_v5 }
 0x20a   :  { %4424 = vrot.lane.b32.xlu0 %v9544_v62, %s4997_s16  ;;  %v4463_v23 = vpack.i.bf16 %v4867_v59, %v4866_v24 }
 0x20b   :  { %4429 = vrot.lane.b32.xlu1 %v9628_v37, %s4996_s15  ;;  %v7061_v42 = vpop.permute.xlu2 %4269  ;;  %v4215_v62 = vpop.permute.xlu0 %4214  ;;  %v2435_v51 = vsel %vm2400_vm7, %v2370_v52, %v4211_v56 }
 0x20c   :  { %v4217_v9 = vunpack.i.h.bf16 %v4215_v62  ;;  %v4216_v58 = vunpack.i.l.bf16 %v4215_v62  ;;  %v9631_v62 = vld [vmem:[#allocation71_spill] sm:$0xff] }
 0x20d   :  { %v4220_v27 = vpop.permute.xlu1 %4219  ;;  %v4458_v53 = vpack.i.bf16 %v9631_v62, %v9630_v16  ;;  %v3856_v62 = vunpack.i.l.bf16 %v6539_v60 }
 0x20e   :  { %v4222_v39 = vunpack.i.h.bf16 %v4220_v27  ;;  %v4221_v25 = vunpack.i.l.bf16 %v4220_v27  ;;  %v2500_v27 = vsel %vm2465_vm8, %v2435_v51, %v4216_v58  ;;  %v2501_v21 = vsel %vm2465_vm8, %v2436_v13, %v4217_v9 }
 0x20f   :  { %v2320_v9 = vsel %vm2270_vm5, %v2255_v20, %v3967_v49  ;;  %v3697_v20 = vunpack.i.h.bf16 %v6358_v4  ;;  %v3696_v49 = vunpack.i.l.bf16 %v6358_v4  ;;  %v4871_v4 = vld [vmem:[%s9035_s0 + $0x30] sm:$0xff] }
 0x210   :  { %v2565_v22 = vsel %vm2530_vm9, %v2500_v27, %v4221_v25  ;;  %v2566_v32 = vsel %vm2530_vm9, %v2501_v21, %v4222_v39  ;;  %v4242_v39 = vunpack.i.h.bf16 %v7000_v46  ;;  %v4241_v25 = vunpack.i.l.bf16 %v7000_v46 }
 0x211   :  { %4449 = vrot.lane.b32.xlu2 %v9623_v33, %s4995_s30 }
 0x212   :  { %4439 = vrot.lane.b32.xlu0 %v9620_v40, %s4995_s30  ;;  %v7121_v40 = vld [vmem:[%s9035_s0 + $0x270] sm:$0xff] }
 0x213   :  { %4444 = vrot.lane.b32.xlu1 %v4443_v26, %s4994_s29  ;;  %v7099_v11 = vpop.permute.xlu2 %4284  ;;  %v2189_v63 = vsel %vm2140_vm3, %v7121_v40, %v3646_v8  ;;  %v4226_v26 = vunpack.i.l.bf16 %v6970_v12  ;;  %v9632_v8 = vld [vmem:[#allocation19_spill] sm:$0xff] }
 0x214   :  { %v4230_v61 = vpop.permute.xlu0 %4229  ;;  %v3537_v47 = vunpack.i.h.bf16 %v9632_v8  ;;  %v2254_v30 = vsel %vm2205_vm4, %v2189_v63, %v3806_v18  ;;  %v3536_v59 = vunpack.i.l.bf16 %v9632_v8  ;;  %v4870_v63 = vld [vmem:[%s9035_s0 + $0x38] sm:$0xff] }
 0x215   :  { %v4235_v33 = vpop.permute.xlu1 %4234  ;;  %v4232_v29 = vunpack.i.h.bf16 %v4230_v61  ;;  %v4231_v34 = vunpack.i.l.bf16 %v4230_v61  ;;  %v2319_v5 = vsel %vm2270_vm5, %v2254_v30, %v3966_v15  ;;  %v2385_v51 = vsel %vm2335_vm6, %v2320_v9, %v4226_v26  ;;  %v9634_v30 = vld [vmem:[#allocation41_spill] sm:$0xff] }
 0x216   :  { %v4237_v56 = vunpack.i.h.bf16 %v4235_v33  ;;  %v4236_v2 = vunpack.i.l.bf16 %v4235_v33  ;;  %v2384_v13 = vsel %vm2335_vm6, %v2319_v5, %v4207_v7  ;;  %v9633_v33 = vld [vmem:[#allocation79_spill] sm:$0xff]  ;;  %v2146_v46 = vsel %vm2140_vm3, %v4870_v63, %v3537_v47  ;;  %v4872_v63 = vld [vmem:[%s9035_s0 + $0x2e8] sm:$0xff] }
 0x217   :  { %v2630_v28 = vsel %vm2595_vm10, %v2565_v22, %v4231_v34  ;;  %v2631_v52 = vsel %vm2595_vm10, %v2566_v32, %v4232_v29  ;;  %v3857_v26 = vunpack.i.h.bf16 %v6539_v60  ;;  %v4016_v29 = vunpack.i.l.bf16 %v6627_v1 }
 0x218   :  { %v2677_v14 = vpack.c.bf16 %v2631_v52, %v2630_v28  ;;  %v2450_v57 = vsel %vm2400_vm7, %v2385_v51, %v4237_v56  ;;  %v2145_v22 = vsel %vm2140_vm3, %v4871_v4, %v3536_v59  ;;  %v4017_v32 = vunpack.i.h.bf16 %v6627_v1  ;;  %v4875_v4 = vld [vmem:[%s9035_s0 + $0xb0] sm:$0xff] }
 0x219   :  { %4464 = vrot.lane.b32.xlu2 %v4463_v23, %s4994_s29  ;;  %v2449_v23 = vsel %vm2400_vm7, %v2384_v13, %v4236_v2  ;;  %v2515_v15 = vsel %vm2465_vm8, %v2450_v57, %v4242_v39  ;;  %v2210_v2 = vsel %vm2205_vm4, %v2145_v22, %v3696_v49  ;;  %v2211_v28 = vsel %vm2205_vm4, %v2146_v46, %v3697_v20  ;;  %v9635_v57 = vld [vmem:[#allocation104_spill] sm:$0xff]  ;;  %v4873_v46 = vld [vmem:[%s9035_s0 + $0x2f0] sm:$0xff] }
 0x21a   :  { %4454 = vrot.lane.b32.xlu0 %v9633_v33, %s4997_s16  ;;  %3481 = vmatmul.msk.bf16.gmra.mxu2 %vm2704_vm11, %v2677_v14  ;;  %v2275_v8 = vsel %vm2270_vm5, %v2210_v2, %v3856_v62  ;;  %v4257_v47 = vunpack.i.h.bf16 %v7039_v10  ;;  %v4256_v1 = vunpack.i.l.bf16 %v7039_v10  ;;  %v2276_v9 = vsel %vm2270_vm5, %v2211_v28, %v3857_v26  ;;  %v4876_v28 = vld [vmem:[%s9035_s0 + $0x1e8] sm:$0xff] }
 0x21b   :  { %4459 = vrot.lane.b32.xlu1 %v4458_v53, %s4993_s27  ;;  %v7144_v58 = vpop.permute.xlu2 %4299  ;;  %v2514_v53 = vsel %vm2465_vm8, %v2449_v23, %v4241_v25  ;;  %v2340_v14 = vsel %vm2335_vm6, %v2275_v8, %v4016_v29  ;;  %v2341_v5 = vsel %vm2335_vm6, %v2276_v9, %v4017_v32  ;;  %v4272_v13 = vunpack.i.h.bf16 %v7061_v42 }
 0x21c   :  { %v4245_v18 = vpop.permute.xlu0 %4244  ;;  %v4271_v33 = vunpack.i.l.bf16 %v7061_v42  ;;  %v2405_v59 = vsel %vm2400_vm7, %v2340_v14, %v4256_v1  ;;  %v2406_v23 = vsel %vm2400_vm7, %v2341_v5, %v4257_v47  ;;  %v3777_v26 = vunpack.i.h.bf16 %v6388_v43 }
 0x21d   :  { %v4250_v24 = vpop.permute.xlu1 %4249  ;;  %v4247_v61 = vunpack.i.h.bf16 %v4245_v18  ;;  %v4246_v16 = vunpack.i.l.bf16 %v4245_v18  ;;  %v9636_v18 = vld [vmem:[#allocation125_spill] sm:$0xff]  ;;  %v3936_v8 = vunpack.i.l.bf16 %v6600_v44 }
 0x21e   :  { %v4252_v27 = vunpack.i.h.bf16 %v4250_v24  ;;  %v4251_v21 = vunpack.i.l.bf16 %v4250_v24 }
 0x21f   :  { %v2579_v34 = vsel %vm2530_vm9, %v2514_v53, %v4246_v16  ;;  %v2580_v7 = vsel %vm2530_vm9, %v2515_v15, %v4247_v61  ;;  %v9637_v16 = vld [vmem:[#allocation70_spill] sm:$0xff] }
 0x220   :  { %v2645_v60 = vsel %vm2595_vm10, %v2580_v7, %v4252_v27  ;;  %v4483_v27 = vpack.i.bf16 %v4873_v46, %v4872_v63  ;;  %v3617_v62 = vunpack.i.h.bf16 %v9637_v16  ;;  %v4874_v7 = vld [vmem:[%s9035_s0 + $0xa8] sm:$0xff]  ;;  %v3616_v32 = vunpack.i.l.bf16 %v9637_v16 }
 0x221   :  { %4479 = vrot.lane.b32.xlu2 %v9556_v50, %s4997_s16  ;;  %v2644_v50 = vsel %vm2595_vm10, %v2579_v34, %v4251_v21  ;;  %v4508_v22 = vpack.i.bf16 %v4875_v4, %v4874_v7 }
 0x222   :  { %v2684_v52 = vpack.c.bf16 %v2645_v60, %v2644_v50  ;;  %4469 = vrot.lane.b32.xlu0 %v9634_v30, %s4996_s15  ;;  %v3937_v50 = vunpack.i.h.bf16 %v6600_v44  ;;  %v3776_v60 = vunpack.i.l.bf16 %v6388_v43  ;;  %v4877_v43 = vld [vmem:[%s9035_s0 + $0x1e0] sm:$0xff] }
 0x223   :  { %4474 = vrot.lane.b32.xlu1 %v9624_v3, %s4995_s30  ;;  %v7181_v56 = vpop.permute.xlu2 %4314  ;;  %v2177_v9 = vsel %vm2140_vm3, %v4877_v43, %v3616_v32  ;;  %v3811_v32 = vunpack.i.l.bf16 %v6481_v55 }
 0x224   :  { %3488 = vmatmul.msk.bf16.gmra.mxu3 %vm2704_vm11, %v2684_v52  ;;  %v4260_v25 = vpop.permute.xlu0 %4259  ;;  %v2178_v52 = vsel %vm2140_vm3, %v4876_v28, %v3617_v62  ;;  %v2242_v44 = vsel %vm2205_vm4, %v2177_v9, %v3776_v60  ;;  %v3972_v60 = vunpack.i.h.bf16 %v6579_v36  ;;  %v3971_v28 = vunpack.i.l.bf16 %v6579_v36  ;;  %v4879_v36 = vld [vmem:[%s9035_s0 + $0x288] sm:$0xff] }
 0x225   :  { %v4265_v3 = vpop.permute.xlu1 %4264  ;;  %v4262_v10 = vunpack.i.h.bf16 %v4260_v25  ;;  %v4261_v24 = vunpack.i.l.bf16 %v4260_v25  ;;  %v2243_v1 = vsel %vm2205_vm4, %v2178_v52, %v3777_v26  ;;  %v2307_v25 = vsel %vm2270_vm5, %v2242_v44, %v3936_v8 }
 0x226   :  { %v4267_v51 = vunpack.i.h.bf16 %v4265_v3  ;;  %v4266_v39 = vunpack.i.l.bf16 %v4265_v3  ;;  %v4227_v3 = vunpack.i.h.bf16 %v6970_v12  ;;  %v2308_v14 = vsel %vm2270_vm5, %v2243_v1, %v3937_v50  ;;  %v9643_v1 = vld [vmem:[#allocation24_spill] sm:$0xff] }
 0x227   :  { %v2470_v42 = vsel %vm2465_vm8, %v2405_v59, %v4261_v24  ;;  %v2471_v21 = vsel %vm2465_vm8, %v2406_v23, %v4262_v10  ;;  %v4286_v10 = vunpack.i.l.bf16 %v7099_v11  ;;  %v9638_v24 = vld [vmem:[#allocation58_spill] sm:$0xff]  ;;  %v9639_v23 = vld [vmem:[#allocation72_spill] sm:$0xff] }
 0x228   :  { %v2535_v49 = vsel %vm2530_vm9, %v2470_v42, %v4266_v39  ;;  %v2536_v61 = vsel %vm2530_vm9, %v2471_v21, %v4267_v51  ;;  %v4301_v42 = vunpack.i.l.bf16 %v7144_v58 }
 0x229   :  { %4494 = vrot.lane.b32.xlu2 %v9635_v57, %s4997_s16  ;;  %v2600_v53 = vsel %vm2595_vm10, %v2535_v49, %v4271_v33  ;;  %v2601_v15 = vsel %vm2595_vm10, %v2536_v61, %v4272_v13  ;;  %v2372_v13 = vsel %vm2335_vm6, %v2307_v25, %v4227_v3  ;;  %v4287_v33 = vunpack.i.h.bf16 %v7099_v11  ;;  %v9640_v57 = vld [vmem:[#allocation100_spill] sm:$0xff] }
 0x22a   :  { %4484 = vrot.lane.b32.xlu0 %v4483_v27, %s4994_s29  ;;  %v2662_v34 = vpack.c.bf16 %v2601_v15, %v2600_v53  ;;  %v4523_v63 = vpack.i.bf16 %v9640_v57, %v9639_v23  ;;  %v4302_v27 = vunpack.i.h.bf16 %v7144_v58  ;;  %v9641_v15 = vld [vmem:[#allocation86_spill] sm:$0xff]  ;;  %v3542_v3 = vunpack.i.h.bf16 %v9643_v1  ;;  %v9644_v23 = vld [vmem:[#allocation111_spill] sm:$0xff] }
 0x22b   :  { %4489 = vrot.lane.b32.xlu1 %v9636_v18, %s4996_s15  ;;  %v7210_v20 = vpop.permute.xlu2 %4329  ;;  %v3652_v26 = vunpack.i.h.bf16 %v9641_v15  ;;  %v3702_v57 = vunpack.i.h.bf16 %v9644_v23 }
 0x22c   :  { %v7228_v2 = vpop.permute.xlu0 %4274  ;;  %3466 = vmatmul.msk.bf16.gmra.mxu0 %vm2704_vm11, %v2662_v34  ;;  %v9642_v34 = vld [vmem:[#allocation122_spill] sm:$0xff] }
 0x22d   :  { %v4280_v29 = vpop.permute.xlu1 %4279  ;;  %v4276_v47 = vunpack.i.l.bf16 %v7228_v2  ;;  %v4277_v8 = vunpack.i.h.bf16 %v7228_v2  ;;  %v4533_v2 = vpack.i.bf16 %v6955_v0, %v6962_v38 }
 0x22e   :  { %v4282_v5 = vunpack.i.h.bf16 %v4280_v29  ;;  %v4281_v51 = vunpack.i.l.bf16 %v4280_v29  ;;  %v3651_v29 = vunpack.i.l.bf16 %v9641_v15 }
 0x22f   :  { %v2373_v39 = vsel %vm2335_vm6, %v2308_v14, %v4276_v47 }
 0x230   :  { %v2438_v46 = vsel %vm2400_vm7, %v2373_v39, %v4282_v5  ;;  %v3541_v39 = vunpack.i.l.bf16 %v9643_v1 }
 0x231   :  { %4509 = vrot.lane.b32.xlu2 %v4508_v22, %s4994_s29  ;;  %v2503_v16 = vsel %vm2465_vm8, %v2438_v46, %v4287_v33  ;;  %v3812_v22 = vunpack.i.h.bf16 %v6481_v55  ;;  %v4878_v55 = vld [vmem:[%s9035_s0 + $0x290] sm:$0xff] }
 0x232   :  { %4499 = vrot.lane.b32.xlu0 %v9638_v24, %s4996_s15  ;;  %v2192_v43 = vsel %vm2140_vm3, %v4878_v55, %v3652_v26  ;;  %v3701_v26 = vunpack.i.l.bf16 %v9644_v23 }
 0x233   :  { %4504 = vrot.lane.b32.xlu1 %v9628_v37, %s4995_s30  ;;  %v7249_v12 = vpop.permute.xlu2 %4344  ;;  %v2437_v37 = vsel %vm2400_vm7, %v2372_v13, %v4281_v51  ;;  %v2257_v14 = vsel %vm2205_vm4, %v2192_v43, %v3812_v22  ;;  %v9646_v22 = vld [vmem:[#allocation66_spill] sm:$0xff] }
 0x234   :  { %v4290_v21 = vpop.permute.xlu0 %4289  ;;  %v2502_v11 = vsel %vm2465_vm8, %v2437_v37, %v4286_v10  ;;  %v2322_v13 = vsel %vm2270_vm5, %v2257_v14, %v3972_v60  ;;  %v4022_v60 = vunpack.i.h.bf16 %v6701_v31 }
 0x235   :  { %v7257_v59 = vpop.permute.xlu1 %4294  ;;  %v4292_v49 = vunpack.i.h.bf16 %v4290_v21  ;;  %v4291_v61 = vunpack.i.l.bf16 %v4290_v21  ;;  %v4880_v21 = vld [vmem:[%s9035_s0 + $0x120] sm:$0xff] }
 0x236   :  { %v4296_v47 = vunpack.i.l.bf16 %v7257_v59 }
 0x237   :  { %v2567_v62 = vsel %vm2530_vm9, %v2502_v11, %v4291_v61  ;;  %v2568_v53 = vsel %vm2530_vm9, %v2503_v16, %v4292_v49  ;;  %v4881_v49 = vld [vmem:[%s9035_s0 + $0x128] sm:$0xff]  ;;  %v4882_v11 = vld [vmem:[%s9035_s0 + $0x50] sm:$0xff] }
 0x238   :  { %v2632_v58 = vsel %vm2595_vm10, %v2567_v62, %v4301_v42  ;;  %v2633_v7 = vsel %vm2595_vm10, %v2568_v53, %v4302_v27  ;;  %v2387_v10 = vsel %vm2335_vm6, %v2322_v13, %v4296_v47  ;;  %v4317_v27 = vunpack.i.h.bf16 %v7181_v56 }
 0x239   :  { %4524 = vrot.lane.b32.xlu2 %v4523_v63, %s4993_s27  ;;  %v2678_v50 = vpack.c.bf16 %v2633_v7, %v2632_v58  ;;  %v4553_v61 = vpack.i.bf16 %v4881_v49, %v4880_v21  ;;  %v2148_v16 = vsel %vm2140_vm3, %v4882_v11, %v3542_v3  ;;  %v9645_v7 = vld [vmem:[#allocation101_spill] sm:$0xff] }
 0x23a   :  { %4514 = vrot.lane.b32.xlu0 %v9551_v17, %s4997_s16  ;;  %v2191_v17 = vsel %vm2140_vm3, %v4879_v36, %v3651_v29  ;;  %v2213_v15 = vsel %vm2205_vm4, %v2148_v16, %v3702_v57  ;;  %v3862_v29 = vunpack.i.h.bf16 %v6536_v54 }
 0x23b   :  { %4519 = vrot.lane.b32.xlu1 %v9642_v34, %s4996_s15  ;;  %v7276_v4 = vpop.permute.xlu2 %4359  ;;  %3482 = vmatmul.msk.bf16.gmra.mxu2 %vm2704_vm11, %v2678_v50  ;;  %v2256_v5 = vsel %vm2205_vm4, %v2191_v17, %v3811_v32  ;;  %v4548_v32 = vpack.i.bf16 %v9646_v22, %v9645_v7  ;;  %v3861_v50 = vunpack.i.l.bf16 %v6536_v54 }
 0x23c   :  { %v4305_v9 = vpop.permute.xlu0 %4304  ;;  %v2321_v25 = vsel %vm2270_vm5, %v2256_v5, %v3971_v28  ;;  %v2278_v17 = vsel %vm2270_vm5, %v2213_v15, %v3862_v29  ;;  %v9650_v15 = vld [vmem:[#allocation123_spill] sm:$0xff]  ;;  %v9651_v29 = vld [vmem:[#allocation52_spill] sm:$0xff] }
 0x23d   :  { %v4310_v52 = vpop.permute.xlu1 %4309  ;;  %v4307_v51 = vunpack.i.h.bf16 %v4305_v9  ;;  %v4306_v44 = vunpack.i.l.bf16 %v4305_v9  ;;  %v2386_v33 = vsel %vm2335_vm6, %v2321_v25, %v4277_v8  ;;  %v4021_v8 = vunpack.i.l.bf16 %v6701_v31 }
 0x23e   :  { %v4312_v0 = vunpack.i.h.bf16 %v4310_v52  ;;  %v4311_v38 = vunpack.i.l.bf16 %v4310_v52  ;;  %v2343_v14 = vsel %vm2335_vm6, %v2278_v17, %v4022_v60  ;;  %v3656_v7 = vunpack.i.l.bf16 %v9651_v29  ;;  %v9653_v60 = vld [vmem:[#allocation115_spill] sm:$0xff] }
 0x23f   :  { %v2451_v63 = vsel %vm2400_vm7, %v2386_v33, %v4306_v44  ;;  %v2452_v37 = vsel %vm2400_vm7, %v2387_v10, %v4307_v51  ;;  %v4332_v51 = vunpack.i.h.bf16 %v7210_v20  ;;  %v4331_v44 = vunpack.i.l.bf16 %v7210_v20  ;;  %v7364_v10 = vld [vmem:[%s9037_s2] ss:$0 sm:$0xff] }
 0x240   :  { %v2516_v62 = vsel %vm2465_vm8, %v2451_v63, %v4311_v38  ;;  %v2517_v53 = vsel %vm2465_vm8, %v2452_v37, %v4312_v0  ;;  %v3727_v17 = vunpack.i.h.bf16 %v6391_v45 }
 0x241   :  { %4539 = vrot.lane.b32.xlu2 %v9636_v18, %s4995_s30  ;;  %v4316_v18 = vunpack.i.l.bf16 %v7181_v56  ;;  %v4883_v56 = vld [vmem:[%s9035_s0 + $0x48] sm:$0xff]  ;;  %v2582_v1 = vsel %vm2530_vm9, %v2517_v53, %v4317_v27 }
 0x242   :  { %4529 = vrot.lane.b32.xlu0 %v9634_v30, %s4995_s30  ;;  %v2147_v30 = vsel %vm2140_vm3, %v4883_v56, %v3541_v39  ;;  %v9647_v39 = vld [vmem:[#allocation73_spill] sm:$0xff] }
 0x243   :  { %4534 = vrot.lane.b32.xlu1 %v4533_v2, %s4994_s29  ;;  %v7311_v46 = vpop.permute.xlu2 %4374  ;;  %v2581_v47 = vsel %vm2530_vm9, %v2516_v62, %v4316_v18  ;;  %v2212_v54 = vsel %vm2205_vm4, %v2147_v30, %v3701_v26  ;;  %v9648_v18 = vld [vmem:[#allocation33_spill] sm:$0xff]  ;;  %v9649_v62 = vld [vmem:[#allocation40_spill] sm:$0xff]  ;;  %v3567_v26 = vunpack.i.h.bf16 %v9650_v15 }
 0x244   :  { %v4320_v58 = vpop.permute.xlu0 %4319  ;;  %v2277_v2 = vsel %vm2270_vm5, %v2212_v54, %v3861_v50 }
 0x245   :  { %v4325_v42 = vpop.permute.xlu1 %4324  ;;  %v4322_v28 = vunpack.i.h.bf16 %v4320_v58  ;;  %v4321_v52 = vunpack.i.l.bf16 %v4320_v58  ;;  %v2342_v5 = vsel %vm2335_vm6, %v2277_v2, %v4021_v8  ;;  %v3657_v58 = vunpack.i.h.bf16 %v9651_v29  ;;  %v4887_v2 = vld [vmem:[%s9035_s0 + $0xc0] sm:$0xff] }
 0x246   :  { %v4327_v3 = vunpack.i.h.bf16 %v4325_v42  ;;  %v4326_v55 = vunpack.i.l.bf16 %v4325_v42  ;;  %v4346_v29 = vunpack.i.l.bf16 %v7249_v12 }
 0x247   :  { %v2646_v43 = vsel %vm2595_vm10, %v2581_v47, %v4321_v52  ;;  %v2647_v36 = vsel %vm2595_vm10, %v2582_v1, %v4322_v28  ;;  %v3547_v28 = vunpack.i.h.bf16 %v9653_v60  ;;  %v9654_v47 = vld [vmem:[#allocation114_spill] sm:$0xff]  ;;  %v4884_v1 = vld [vmem:[%s9035_s0 + $0x300] sm:$0xff] }
 0x248   :  { %v2685_v9 = vpack.c.bf16 %v2647_v36, %v2646_v43  ;;  %v2407_v13 = vsel %vm2400_vm7, %v2342_v5, %v4326_v55  ;;  %v2408_v33 = vsel %vm2400_vm7, %v2343_v14, %v4327_v3  ;;  %v4885_v3 = vld [vmem:[%s9035_s0 + $0x308] sm:$0xff]  ;;  %v3546_v43 = vunpack.i.l.bf16 %v9653_v60 }
 0x249   :  { %4554 = vrot.lane.b32.xlu2 %v4553_v61, %s4994_s29  ;;  %v2472_v63 = vsel %vm2465_vm8, %v2407_v13, %v4331_v44  ;;  %v2473_v37 = vsel %vm2465_vm8, %v2408_v33, %v4332_v51  ;;  %v4573_v55 = vpack.i.bf16 %v4885_v3, %v4884_v1  ;;  %v4886_v36 = vld [vmem:[%s9035_s0 + $0xc8] sm:$0xff]  ;;  %v4889_v44 = vld [vmem:[%s9035_s0 + $0x2a0] sm:$0xff] }
 0x24a   :  { %4544 = vrot.lane.b32.xlu0 %v9647_v39, %s4997_s16  ;;  %3489 = vmatmul.msk.bf16.gmra.mxu3 %vm2704_vm11, %v2685_v9  ;;  %v2158_v54 = vsel %vm2140_vm3, %v4886_v36, %v3567_v26  ;;  %v4888_v5 = vld [vmem:[%s9035_s0 + $0x2a8] sm:$0xff]  ;;  %v7431_v39 = vsel %vm2140_vm3, %v4889_v44, %v3656_v7 }
 0x24b   :  { %4549 = vrot.lane.b32.xlu1 %v4548_v32, %s4993_s27  ;;  %v7349_v31 = vpop.permute.xlu2 %4389  ;;  %v9652_v32 = vld [vmem:[#allocation69_spill] sm:$0xff]  ;;  %v2194_v51 = vsel %vm2140_vm3, %v4888_v5, %v3657_v58  ;;  %v9655_v13 = vld [vmem:[#allocation124_spill] sm:$0xff] }
 0x24c   :  { %v4335_v23 = vpop.permute.xlu0 %4334  ;;  %v3622_v50 = vunpack.i.h.bf16 %v9652_v32  ;;  %v3621_v52 = vunpack.i.l.bf16 %v9652_v32  ;;  %v3816_v32 = vunpack.i.l.bf16 %v6479_v41  ;;  %v9659_v5 = vld [vmem:[#allocation60_spill] sm:$0xff] }
 0x24d   :  { %v4340_v25 = vpop.permute.xlu1 %4339  ;;  %v4337_v57 = vunpack.i.h.bf16 %v4335_v23  ;;  %v4336_v20 = vunpack.i.l.bf16 %v4335_v23  ;;  %v3782_v23 = vunpack.i.h.bf16 %v6457_v6 }
 0x24e   :  { %v4342_v0 = vunpack.i.h.bf16 %v4340_v25  ;;  %v4341_v38 = vunpack.i.l.bf16 %v4340_v25  ;;  %v2884_v27 = vpop.f32.mrf.mxu2  ;;  %v3726_v25 = vunpack.i.l.bf16 %v6391_v45  ;;  %v4891_v45 = vld [vmem:[%s9035_s0 + $0x1f8] sm:$0xff] }
 0x24f   :  { %v2537_v42 = vsel %vm2530_vm9, %v2472_v63, %v4336_v20  ;;  %v2538_v21 = vsel %vm2530_vm9, %v2473_v37, %v4337_v57  ;;  %v7373_v49 = vadd.f32 %v7364_v10, %v2884_v27  ;;  %v3781_v57 = vunpack.i.l.bf16 %v6457_v6 }
 0x250   :  { %v2602_v61 = vsel %vm2595_vm10, %v2537_v42, %v4341_v38  ;;  %v2603_v11 = vsel %vm2595_vm10, %v2538_v21, %v4342_v0  ;;  %v4890_v0 = vld [vmem:[%s9035_s0 + $0x200] sm:$0xff]  ;;  %v2179_v63 = vsel %vm2140_vm3, %v4891_v45, %v3621_v52  ;;  %v3817_v37 = vunpack.i.h.bf16 %v6479_v41 }
 0x251   :  { %4569 = vrot.lane.b32.xlu2 %v9648_v18, %s4997_s16  ;;  %v3002_v56 = vmax.f32 %v7373_v49, 0.0  ;;  %v2663_v30 = vpack.c.bf16 %v2603_v11, %v2602_v61  ;;  %v2180_v38 = vsel %vm2140_vm3, %v4890_v0, %v3622_v50  ;;  %v3941_v27 = vunpack.i.l.bf16 %v6554_v48  ;;  %v9656_v21 = vld [vmem:[#allocation127_spill] sm:$0xff] }
 0x252   :  { %4559 = vrot.lane.b32.xlu0 %v9649_v62, %s4996_s15  ;;  %v4598_v42 = vpack.i.bf16 %v4886_v36, %v4887_v2  ;;  %v3706_v61 = vunpack.i.l.bf16 %v9656_v21  ;;  %v2223_v6 = vsel %vm2205_vm4, %v2158_v54, %v3727_v17  ;;  %v3942_v11 = vunpack.i.h.bf16 %v6554_v48 }
 0x253   :  { %4564 = vrot.lane.b32.xlu1 %v9638_v24, %s4995_s30  ;;  %v7379_v16 = vpop.permute.xlu2 %4404  ;;  %3066 = vst.msk [vmem:[%s9040_s5 + $0xe0] sm:$0xff] %vm2595_vm10, %v3002_v56  ;;  %3467 = vmatmul.msk.bf16.gmra.mxu0 %vm2704_vm11, %v2663_v30  ;;  %v3566_v24 = vunpack.i.l.bf16 %v9650_v15  ;;  %v9657_v30 = vld [vmem:[#allocation43_spill] sm:$0xff]  ;;  %v2245_v7 = vsel %vm2205_vm4, %v2180_v38, %v3782_v23  ;;  %v2244_v48 = vsel %vm2205_vm4, %v2179_v63, %v3781_v57  ;;  %v4297_v50 = vunpack.i.h.bf16 %v7257_v59 }
 0x254   :  { %v7397_v22 = vpop.permute.xlu0 %4349  ;;  %v3887_v15 = vunpack.i.h.bf16 %v9657_v30  ;;  %v7472_v52 = vsel %vm2205_vm4, %v2194_v51, %v3817_v37  ;;  %v4046_v51 = vunpack.i.l.bf16 %v9659_v5 }
 0x255   :  { %v7384_v53 = vpop.permute.xlu1 %4354  ;;  %v2157_v14 = vsel %vm2140_vm3, %v4887_v2, %v3566_v24  ;;  %v3886_v24 = vunpack.i.l.bf16 %v9657_v30  ;;  %v4352_v1 = vunpack.i.h.bf16 %v7397_v22  ;;  %v4351_v54 = vunpack.i.l.bf16 %v7397_v22  ;;  %v9658_v2 = vld [vmem:[#allocation138_spill] sm:$0xff] }
 0x256   :  { %v2886_v8 = vpop.f32.mrf.mxu2  ;;  %v2222_v26 = vsel %vm2205_vm4, %v2157_v14, %v3726_v25  ;;  %v2288_v36 = vsel %vm2270_vm5, %v2223_v6, %v3887_v15  ;;  %v3977_v14 = vunpack.i.h.bf16 %v9658_v2  ;;  %v4357_v22 = vunpack.i.h.bf16 %v7384_v53  ;;  %v9662_v6 = vld [vmem:[#allocation31_spill] sm:$0xff] }
 0x257   :  { %v7417_v9 = vadd.f32 %v7364_v10, %v2886_v8  ;;  %v2309_v8 = vsel %vm2270_vm5, %v2244_v48, %v3941_v27  ;;  %v2287_v59 = vsel %vm2270_vm5, %v2222_v26, %v3886_v24  ;;  %v4356_v45 = vunpack.i.l.bf16 %v7384_v53  ;;  %v9660_v27 = vld [vmem:[#allocation57_spill] sm:$0xff] }
 0x258   :  { %v2374_v38 = vsel %vm2335_vm6, %v2309_v8, %v4297_v50  ;;  %v3976_v30 = vunpack.i.l.bf16 %v9658_v2  ;;  %v4047_v24 = vunpack.i.h.bf16 %v9659_v5  ;;  %v4361_v50 = vunpack.i.l.bf16 %v7276_v4 }
 0x259   :  { %4584 = vrot.lane.b32.xlu2 %v9654_v47, %s4997_s16  ;;  %v3003_v20 = vmax.f32 %v7417_v9, 0.0  ;;  %v2439_v15 = vsel %vm2400_vm7, %v2374_v38, %v4351_v54  ;;  %v4376_v8 = vunpack.i.l.bf16 %v7311_v46  ;;  %v4392_v38 = vunpack.i.h.bf16 %v7349_v31 }
 0x25a   :  { %4574 = vrot.lane.b32.xlu0 %v4573_v55, %s4994_s29  ;;  %v2310_v55 = vsel %vm2270_vm5, %v2245_v7, %v3942_v11  ;;  %v4362_v7 = vunpack.i.h.bf16 %v7276_v4  ;;  %v4377_v4 = vunpack.i.h.bf16 %v7311_v46 }
 0x25b   :  { %4579 = vrot.lane.b32.xlu1 %v9655_v13, %s4996_s15  ;;  %v7436_v33 = vpop.permute.xlu2 %4419  ;;  %3067 = vst.msk [vmem:[%s9040_s5 + $0xe8] sm:$0xff] %vm2595_vm10, %v3003_v20  ;;  %v2375_v44 = vsel %vm2335_vm6, %v2310_v55, %v4346_v29  ;;  %v2352_v29 = vsel %vm2335_vm6, %v2287_v59, %v4046_v51 }
 0x25c   :  { %v4365_v58 = vpop.permute.xlu0 %4364  ;;  %v2440_v63 = vsel %vm2400_vm7, %v2375_v44, %v4352_v1 }
 0x25d   :  { %v7452_v18 = vpop.permute.xlu1 %4369  ;;  %v4367_v37 = vunpack.i.h.bf16 %v4365_v58  ;;  %v4366_v26 = vunpack.i.l.bf16 %v4365_v58  ;;  %v2505_v58 = vsel %vm2465_vm8, %v2440_v63, %v4357_v22  ;;  %v4391_v22 = vunpack.i.l.bf16 %v7349_v31 }
 0x25e   :  { %v2889_v3 = vpop.f32.mrf.mxu2 }
 0x25f   :  { %v7481_v17 = vadd.f32 %v7364_v10, %v2889_v3  ;;  %v2504_v3 = vsel %vm2465_vm8, %v2439_v15, %v4356_v45  ;;  %v2570_v55 = vsel %vm2530_vm9, %v2505_v58, %v4367_v37  ;;  %v9663_v45 = vld [vmem:[#allocation121_spill] sm:$0xff]  ;;  %v2417_v37 = vsel %vm2400_vm7, %v2352_v29, %v4361_v50 }
 0x260   :  { %v2814_v25 = vpop.f32.mrf.mxu0  ;;  %v2569_v5 = vsel %vm2530_vm9, %v2504_v3, %v4366_v26  ;;  %v2482_v31 = vsel %vm2465_vm8, %v2417_v37, %v4376_v8  ;;  %v9664_v26 = vld [vmem:[#allocation13_spill] sm:$0xff]  ;;  %v4371_v3 = vunpack.i.l.bf16 %v7452_v18  ;;  %v4895_v37 = vld [vmem:[%s9035_s0 + $0x140] sm:$0xff] }
 0x261   :  { %4599 = vrot.lane.b32.xlu2 %v4598_v42, %s4994_s29  ;;  %v9315_v23 = vmax.f32 %v7481_v17, 0.0  ;;  %v2815_v57 = vadd.f32 %v7364_v10, %v2814_v25  ;;  %v2353_v25 = vsel %vm2335_vm6, %v2288_v36, %v4047_v24  ;;  %v4347_v36 = vunpack.i.h.bf16 %v7249_v12 }
 0x262   :  { %4589 = vrot.lane.b32.xlu0 %v9660_v27, %s4996_s15  ;;  %v2418_v15 = vsel %vm2400_vm7, %v2353_v25, %v4362_v7  ;;  %v2547_v50 = vsel %vm2530_vm9, %v2482_v31, %v4391_v22  ;;  %v4892_v22 = vld [vmem:[%s9035_s0 + $0x68] sm:$0xff]  ;;  %v9732_v49 = vmax.f32 %v7481_v17, 0.0 }
 0x263   :  { %4594 = vrot.lane.b32.xlu1 %v9642_v34, %s4995_s30  ;;  %v7489_v0 = vpop.permute.xlu2 %4434  ;;  %v9661_v34 = vld [vmem:[#allocation67_spill] sm:$0xff]  ;;  %3068 = vst.msk [vmem:[%s9040_s5 + $0xf0] sm:$0xff] %vm2595_vm10, %v9315_v23  ;;  %v2974_v53 = vmax.f32 %v2815_v57, 0.0  ;;  %v9665_v31 = vld [vmem:[#allocation9_spill] sm:$0xff] }
 0x264   :  { %v4613_v11 = vpack.i.bf16 %v9662_v6, %v9661_v34  ;;  %v4380_v48 = vpop.permute.xlu0 %4379 }
 0x265   :  { %v7499_v42 = vpop.permute.xlu1 %4384  ;;  %3038 = vst.msk [vmem:[%s9040_s5] sm:$0xff] %vm2595_vm10, %v2974_v53  ;;  %v4382_v1 = vunpack.i.h.bf16 %v4380_v48  ;;  %v4381_v54 = vunpack.i.l.bf16 %v4380_v48  ;;  %v2483_v48 = vsel %vm2465_vm8, %v2418_v15, %v4377_v4 }
 0x266   :  { %v2891_v59 = vpop.f32.mrf.mxu2  ;;  %v2548_v8 = vsel %vm2530_vm9, %v2483_v48, %v4392_v38  ;;  %v4387_v4 = vunpack.i.h.bf16 %v7499_v42 }
 0x267   :  { %v7527_v51 = vadd.f32 %v7364_v10, %v2891_v59  ;;  %v2635_v44 = vsel %vm2595_vm10, %v2570_v55, %v4382_v1  ;;  %v2634_v63 = vsel %vm2595_vm10, %v2569_v5, %v4381_v54  ;;  %v4623_v1 = vpack.i.bf16 %v7114_v19, %v7121_v40 }
 0x268   :  { %v2816_v57 = vpop.f32.mrf.mxu0  ;;  %v3102_v55 = vsel %vm2595_vm10, %v2974_v53, 0.0  ;;  %v4386_v5 = vunpack.i.l.bf16 %v7499_v42  ;;  %v2258_v40 = vsel %vm2205_vm4, %v7431_v39, %v3816_v32  ;;  %v2150_v42 = vsel %vm2140_vm3, %v4892_v22, %v3547_v28  ;;  %v4893_v32 = vld [vmem:[%s9035_s0 + $0x60] sm:$0xff] }
 0x269   :  { %4614 = vrot.lane.b32.xlu2 %v4613_v11, %s4993_s27  ;;  %v9314_v34 = vmax.f32 %v7527_v51, 0.0  ;;  %v2817_v6 = vadd.f32 %v7364_v10, %v2816_v57  ;;  %v2679_v11 = vpack.c.bf16 %v2635_v44, %v2634_v63  ;;  %v2323_v41 = vsel %vm2270_vm5, %v2258_v40, %v3976_v30 }
 0x26a   :  { %4604 = vrot.lane.b32.xlu0 %v9664_v26, %s4997_s16  ;;  %v2149_v28 = vsel %vm2140_vm3, %v4893_v32, %v3546_v43  ;;  %v2388_v57 = vsel %vm2335_vm6, %v2323_v41, %v4347_v36  ;;  %v4894_v43 = vld [vmem:[%s9035_s0 + $0x138] sm:$0xff]  ;;  %v3867_v26 = vunpack.i.h.bf16 %v9665_v31  ;;  %v4422_v22 = vunpack.i.h.bf16 %v7436_v33 }
 0x26b   :  { %4609 = vrot.lane.b32.xlu1 %v9663_v45, %s4996_s15  ;;  %v7536_v46 = vpop.permute.xlu2 %4449  ;;  %3069 = vst.msk [vmem:[%s9040_s5 + $0xf8] sm:$0xff] %vm2595_vm10, %v9314_v34  ;;  %v2975_v29 = vmax.f32 %v2817_v6, 0.0  ;;  %3483 = vmatmul.msk.bf16.gmra.mxu2 %vm2704_vm11, %v2679_v11  ;;  %v2453_v30 = vsel %vm2400_vm7, %v2388_v57, %v4386_v5  ;;  %v4643_v6 = vpack.i.bf16 %v4895_v37, %v4894_v43  ;;  %v3707_v11 = vunpack.i.h.bf16 %v9656_v21 }
 0x26c   :  { %v4395_v58 = vpop.permute.xlu0 %4394 }
 0x26d   :  { %v4400_v24 = vpop.permute.xlu1 %4399  ;;  %3039 = vst.msk [vmem:[%s9040_s5 + $0x8] sm:$0xff] %vm2595_vm10, %v2975_v29  ;;  %v3103_v54 = vsel %vm2595_vm10, %v2975_v29, 0.0  ;;  %v4397_v53 = vunpack.i.h.bf16 %v4395_v58  ;;  %v4396_v25 = vunpack.i.l.bf16 %v4395_v58 }
 0x26e   :  { %v4402_v12 = vunpack.i.h.bf16 %v4400_v24  ;;  %v4401_v7 = vunpack.i.l.bf16 %v4400_v24  ;;  %v7568_v44 = vadd.f32 %v3103_v54, %v3102_v55  ;;  %v3866_v24 = vunpack.i.l.bf16 %v9665_v31 }
 0x26f   :  { %v2518_v36 = vsel %vm2465_vm8, %v2453_v30, %v4396_v25  ;;  %v9668_v30 = vld [vmem:[#allocation119_spill] sm:$0xff] }
 0x270   :  { %v2612_v59 = vsel %vm2595_vm10, %v2547_v50, %v4401_v7  ;;  %v2613_v19 = vsel %vm2595_vm10, %v2548_v8, %v4402_v12  ;;  %v9666_v12 = vld [vmem:[#allocation61_spill] sm:$0xff] }
 0x271   :  { %4629 = vrot.lane.b32.xlu2 %v9655_v13, %s4995_s30  ;;  %v2668_v38 = vpack.c.bf16 %v2613_v19, %v2612_v59  ;;  %v2324_v13 = vsel %vm2270_vm5, %v7472_v52, %v3977_v14  ;;  %v4407_v52 = vunpack.i.h.bf16 %v7379_v16  ;;  %v4406_v14 = vunpack.i.l.bf16 %v7379_v16 }
 0x272   :  { %v2389_v2 = vsel %vm2335_vm6, %v2324_v13, %v4371_v3  ;;  %4619 = vrot.lane.b32.xlu0 %v9649_v62, %s4995_s30  ;;  %v2214_v16 = vsel %vm2205_vm4, %v2149_v28, %v3706_v61  ;;  %v4027_v7 = vunpack.i.h.bf16 %v9666_v12  ;;  %v4026_v50 = vunpack.i.l.bf16 %v9666_v12  ;;  %v9667_v13 = vld [vmem:[#allocation99_spill] sm:$0xff] }
 0x273   :  { %4624 = vrot.lane.b32.xlu1 %v4623_v1, %s4994_s29  ;;  %v7591_v39 = vpop.permute.xlu2 %4464  ;;  %3472 = vmatmul.msk.bf16.vlgmr.msra.gmra.mxu1 %vm2704_vm11, %v2668_v38  ;;  %v2454_v63 = vsel %vm2400_vm7, %v2389_v2, %v4387_v4  ;;  %v2583_v61 = vsel %vm2530_vm9, %v2518_v36, %v4406_v14  ;;  %v2215_v4 = vsel %vm2205_vm4, %v2150_v42, %v3707_v11  ;;  %v4421_v42 = vunpack.i.l.bf16 %v7436_v33  ;;  %v9669_v11 = vld [vmem:[#allocation32_spill] sm:$0xff] }
 0x274   :  { %v2519_v62 = vsel %vm2465_vm8, %v2454_v63, %v4397_v53  ;;  %v4410_v48 = vpop.permute.xlu0 %4409  ;;  %v2279_v5 = vsel %vm2270_vm5, %v2214_v16, %v3866_v24  ;;  %v2280_v53 = vsel %vm2270_vm5, %v2215_v4, %v3867_v26  ;;  %v3552_v63 = vunpack.i.h.bf16 %v9668_v30 }
 0x275   :  { %v4415_v60 = vpop.permute.xlu1 %4414  ;;  %v4412_v8 = vunpack.i.h.bf16 %v4410_v48  ;;  %v4411_v21 = vunpack.i.l.bf16 %v4410_v48  ;;  %v2584_v1 = vsel %vm2530_vm9, %v2519_v62, %v4407_v52  ;;  %v2344_v25 = vsel %vm2335_vm6, %v2279_v5, %v4026_v50 }
 0x276   :  { %v2894_v15 = vpop.f32.mrf.mxu2  ;;  %v4417_v3 = vunpack.i.h.bf16 %v4415_v60  ;;  %v4416_v55 = vunpack.i.l.bf16 %v4415_v60  ;;  %v2345_v38 = vsel %vm2335_vm6, %v2280_v53, %v4027_v7  ;;  %v3551_v16 = vunpack.i.l.bf16 %v9668_v30  ;;  %v9670_v7 = vld [vmem:[#allocation36_spill] sm:$0xff] }
 0x277   :  { %v2895_v29 = vadd.f32 %v7364_v10, %v2894_v15  ;;  %v2648_v54 = vsel %vm2595_vm10, %v2583_v61, %v4411_v21  ;;  %v2649_v59 = vsel %vm2595_vm10, %v2584_v1, %v4412_v8  ;;  %v3627_v50 = vunpack.i.h.bf16 %v9670_v7  ;;  %v9671_v61 = vld [vmem:[#allocation39_spill] sm:$0xff] }
 0x278   :  { %v2686_v19 = vpack.c.bf16 %v2649_v59, %v2648_v54  ;;  %v2410_v32 = vsel %vm2400_vm7, %v2345_v38, %v4417_v3  ;;  %v3626_v8 = vunpack.i.l.bf16 %v9670_v7  ;;  %v3572_v1 = vunpack.i.h.bf16 %v9671_v61  ;;  %v9673_v59 = vld [vmem:[#allocation93_spill] sm:$0xff]  ;;  %v9675_v38 = vld [vmem:[#allocation126_spill] sm:$0xff]  ;;  %v4900_v30 = vld [vmem:[%s9035_s0 + $0xe0] sm:$0xff] }
 0x279   :  { %v3006_v58 = vmax.f32 %v2895_v29, 0.0  ;;  %4644 = vrot.lane.b32.xlu2 %v4643_v6, %s4994_s29  ;;  %v2475_v37 = vsel %vm2465_vm8, %v2410_v32, %v4422_v22  ;;  %v3571_v3 = vunpack.i.l.bf16 %v9671_v61  ;;  %v3662_v4 = vunpack.i.h.bf16 %v9673_v59 }
 0x27a   :  { %4634 = vrot.lane.b32.xlu0 %v9667_v13, %s4997_s16  ;;  %3490 = vmatmul.msk.bf16.gmra.mxu3 %vm2704_vm11, %v2686_v19  ;;  %v3661_v5 = vunpack.i.l.bf16 %v9673_v59  ;;  %v9674_v19 = vld [vmem:[#allocation94_spill] sm:$0xff]  ;;  %v3712_v22 = vunpack.i.h.bf16 %v9675_v38  ;;  %v4896_v13 = vld [vmem:[%s9035_s0 + $0x80] sm:$0xff] }
 0x27b   :  { %3070 = vst.msk [vmem:[%s9040_s5 + $0x100] sm:$0xff] %vm2595_vm10, %v3006_v58  ;;  %4639 = vrot.lane.b32.xlu1 %v9654_v47, %s4993_s27  ;;  %v7638_v40 = vpop.permute.xlu2 %4479  ;;  %v2409_v47 = vsel %vm2400_vm7, %v2344_v25, %v4416_v55  ;;  %v3171_v36 = vsel %vm2595_vm10, %v3006_v58, 0.0  ;;  %v3731_v53 = vunpack.i.l.bf16 %v9674_v19  ;;  %v3732_v25 = vunpack.i.h.bf16 %v9674_v19 }
 0x27c   :  { %v4425_v2 = vpop.permute.xlu0 %4424  ;;  %v2474_v43 = vsel %vm2465_vm8, %v2409_v47, %v4421_v42  ;;  %v4897_v47 = vld [vmem:[%s9035_s0 + $0x78] sm:$0xff] }
 0x27d   :  { %v4430_v41 = vpop.permute.xlu1 %4429  ;;  %v4427_v60 = vunpack.i.h.bf16 %v4425_v2  ;;  %v4426_v33 = vunpack.i.l.bf16 %v4425_v2  ;;  %v2151_v32 = vsel %vm2140_vm3, %v4897_v47, %v3551_v16  ;;  %v4899_v2 = vld [vmem:[%s9035_s0 + $0x210] sm:$0xff] }
 0x27e   :  { %v2896_v28 = vpop.f32.mrf.mxu2  ;;  %v4432_v57 = vunpack.i.h.bf16 %v4430_v41  ;;  %v4431_v52 = vunpack.i.l.bf16 %v4430_v41  ;;  %v2152_v41 = vsel %vm2140_vm3, %v4896_v13, %v3552_v63  ;;  %v2160_v63 = vsel %vm2140_vm3, %v4900_v30, %v3572_v1 }
 0x27f   :  { %v2897_v14 = vadd.f32 %v7364_v10, %v2896_v28  ;;  %v2539_v62 = vsel %vm2530_vm9, %v2474_v43, %v4426_v33  ;;  %v2540_v15 = vsel %vm2530_vm9, %v2475_v37, %v4427_v60  ;;  %v2929_v31 = vpop.f32.mrf.mxu3  ;;  %v4898_v28 = vld [vmem:[%s9035_s0 + $0x218] sm:$0xff]  ;;  %v9676_v43 = vld [vmem:[#allocation113_spill] sm:$0xff] }
 0x280   :  { %v7666_v24 = vadd.f32 %v7364_v10, %v2929_v31  ;;  %v2604_v48 = vsel %vm2595_vm10, %v2539_v62, %v4431_v52  ;;  %v2605_v29 = vsel %vm2595_vm10, %v2540_v15, %v4432_v57  ;;  %v2182_v57 = vsel %vm2140_vm3, %v4898_v28, %v3627_v50  ;;  %v4901_v60 = vld [vmem:[%s9035_s0 + $0xd8] sm:$0xff] }
 0x281   :  { %v3007_v6 = vmax.f32 %v2897_v14, 0.0  ;;  %4659 = vrot.lane.b32.xlu2 %v9669_v11, %s4997_s16  ;;  %v2664_v58 = vpack.c.bf16 %v2605_v29, %v2604_v48  ;;  %v3711_v52 = vunpack.i.l.bf16 %v9675_v38  ;;  %v2181_v14 = vsel %vm2140_vm3, %v4899_v2, %v3626_v8  ;;  %v4902_v37 = vld [vmem:[%s9035_s0 + $0x318] sm:$0xff]  ;;  %v9677_v48 = vld [vmem:[#allocation133_spill] sm:$0xff] }
 0x282   :  { %v3020_v55 = vmax.f32 %v7666_v24, 0.0  ;;  %v2159_v33 = vsel %vm2140_vm3, %v4901_v60, %v3571_v3  ;;  %v4905_v15 = vld [vmem:[%s9035_s0 + $0x2b8] sm:$0xff]  ;;  %v3821_v29 = vunpack.i.l.bf16 %v9677_v48  ;;  %v7743_v8 = vsel %vm2205_vm4, %v2160_v63, %v3732_v25 }
 0x283   :  { %3071 = vst.msk [vmem:[%s9040_s5 + $0x108] sm:$0xff] %vm2595_vm10, %v3007_v6  ;;  %v3172_v26 = vsel %vm2595_vm10, %v3007_v6, 0.0  ;;  %4654 = vrot.lane.b32.xlu1 %v9660_v27, %s4995_s30  ;;  %v7672_v12 = vpop.permute.xlu2 %4494  ;;  %v9672_v27 = vld [vmem:[#allocation38_spill] sm:$0xff]  ;;  %3468 = vmatmul.msk.bf16.gmra.mxu0 %vm2704_vm11, %v2664_v58  ;;  %v4903_v6 = vld [vmem:[%s9035_s0 + $0x320] sm:$0xff]  ;;  %v2195_v31 = vsel %vm2140_vm3, %v4905_v15, %v3661_v5  ;;  %v7746_v58 = vsel %vm2205_vm4, %v2152_v41, %v3712_v22  ;;  %v4436_v15 = vunpack.i.l.bf16 %v7489_v0 }
 0x284   :  { %v7676_v21 = vadd.f32 %v3172_v26, %v3171_v36  ;;  %4649 = vrot.lane.b32.xlu0 %v9672_v27, %s4996_s15  ;;  %3084 = vst.msk [vmem:[%s9040_s5 + $0x170] sm:$0xff] %vm2595_vm10, %v3020_v55  ;;  %v7697_v42 = vpop.permute.xlu0 %4439  ;;  %v4663_v16 = vpack.i.bf16 %v4903_v6, %v4902_v37  ;;  %v4904_v36 = vld [vmem:[%s9035_s0 + $0x2c0] sm:$0xff]  ;;  %v2224_v26 = vsel %vm2205_vm4, %v2159_v33, %v3731_v53  ;;  %v9678_v3 = vld [vmem:[#allocation46_spill] sm:$0xff] }
 0x285   :  { %v7683_v54 = vpop.permute.xlu1 %4444  ;;  %v2196_v62 = vsel %vm2140_vm3, %v4904_v36, %v3662_v4  ;;  %v7757_v59 = vsel %vm2205_vm4, %v2151_v32, %v3711_v52  ;;  %v3822_v4 = vunpack.i.h.bf16 %v9677_v48  ;;  %v7763_v5 = vld [vmem:[%s9035_s0 + $0x338] sm:$0xff]  ;;  %v4688_v47 = vpack.i.bf16 %v4900_v30, %v4901_v60  ;;  %v7779_v52 = vld [vmem:[%s9035_s0 + $0x330] sm:$0xff] }
 0x286   :  { %v2819_v7 = vpop.f32.mrf.mxu0  ;;  %v564_v19 = vrot.slane %v7763_v5, 1  ;;  %v9679_v53 = vld [vmem:[#allocation135_spill] sm:$0xff]  ;;  %v7773_v32 = vsel %vm2205_vm4, %v2195_v31, %v3821_v29  ;;  %v574_v28 = vrot.slane %v7763_v5, 2  ;;  %v563_v2 = vrot.slane %v7779_v52, 1 }
 0x287   :  { %v2931_v50 = vpop.f32.mrf.mxu3  ;;  %v2820_v61 = vadd.f32 %v7364_v10, %v2819_v7  ;;  %v3787_v25 = vunpack.i.h.bf16 %v9679_v53  ;;  %v3786_v38 = vunpack.i.l.bf16 %v9679_v53  ;;  %v573_v63 = vrot.slane %v7779_v52, 2  ;;  %v9680_v33 = vld [vmem:[#allocation59_spill] sm:$0xff] }
 0x288   :  { %v7750_v1 = vadd.f32 %v7364_v10, %v2931_v50  ;;  %v3947_v37 = vunpack.i.h.bf16 %v9680_v33  ;;  %v3946_v6 = vunpack.i.l.bf16 %v9680_v33  ;;  %v4372_v36 = vunpack.i.h.bf16 %v7452_v18  ;;  %v9681_v18 = vld [vmem:[#allocation17_spill] sm:$0xff] }
 0x289   :  { %4674 = vrot.lane.b32.xlu2 %v9676_v43, %s4997_s16  ;;  %v2976_v22 = vmax.f32 %v2820_v61, 0.0  ;;  %v2247_v48 = vsel %vm2205_vm4, %v2182_v57, %v3787_v25  ;;  %v2246_v29 = vsel %vm2205_vm4, %v2181_v14, %v3786_v38  ;;  %v3872_v7 = vunpack.i.h.bf16 %v9681_v18 }
 0x28a   :  { %v3021_v13 = vmax.f32 %v7750_v1, 0.0  ;;  %v3871_v50 = vunpack.i.l.bf16 %v9681_v18  ;;  %v2312_v33 = vsel %vm2270_vm5, %v2247_v48, %v3947_v37  ;;  %v2311_v57 = vsel %vm2270_vm5, %v2246_v29, %v3946_v6  ;;  %v9683_v6 = vld [vmem:[#allocation74_spill] sm:$0xff] }
 0x28b   :  { %4669 = vrot.lane.b32.xlu1 %v9678_v3, %s4996_s15  ;;  %v7754_v27 = vpop.permute.xlu2 %4509  ;;  %3040 = vst.msk [vmem:[%s9040_s5 + $0x10] sm:$0xff] %vm2595_vm10, %v2976_v22  ;;  %v3105_v30 = vsel %vm2595_vm10, %v2976_v22, 0.0  ;;  %v2376_v38 = vsel %vm2335_vm6, %v2311_v57, %v4372_v36  ;;  %v4496_v18 = vunpack.i.l.bf16 %v7672_v12 }
 0x28c   :  { %4664 = vrot.lane.b32.xlu0 %v4663_v16, %s4994_s29  ;;  %v4455_v60 = vpop.permute.xlu0 %4454  ;;  %v7791_v16 = vsel %vm2205_vm4, %v2196_v62, %v3822_v4  ;;  %v3106_v31 = vadd.f32 %v3105_v30, %v7568_v44  ;;  %3085 = vst.msk [vmem:[%s9040_s5 + $0x178] sm:$0xff] %vm2595_vm10, %v3021_v13  ;;  %v4442_v62 = vunpack.i.h.bf16 %v7697_v42  ;;  %v9682_v44 = vld [vmem:[#allocation21_spill] sm:$0xff]  ;;  %v4441_v4 = vunpack.i.l.bf16 %v7697_v42 }
 0x28d   :  { %v7770_v41 = vpop.permute.xlu1 %4459  ;;  %v3891_v61 = vunpack.i.l.bf16 %v9682_v44  ;;  %v3892_v22 = vunpack.i.h.bf16 %v9682_v44  ;;  %v4447_v42 = vunpack.i.h.bf16 %v7683_v54  ;;  %v4446_v30 = vunpack.i.l.bf16 %v7683_v54 }
 0x28e   :  { %v2821_v53 = vpop.f32.mrf.mxu0  ;;  %v4457_v37 = vunpack.i.h.bf16 %v4455_v60  ;;  %v2441_v36 = vsel %vm2400_vm7, %v2376_v38, %v4441_v4  ;;  %v4452_v54 = vunpack.i.h.bf16 %v7536_v46 }
 0x28f   :  { %v2822_v14 = vadd.f32 %v7364_v10, %v2821_v53  ;;  %v9684_v53 = vld [vmem:[#allocation118_spill] sm:$0xff] }
 0x290   :  { %v4052_v34 = vunpack.i.h.bf16 %v9684_v53 }
 0x291   :  { %4689 = vrot.lane.b32.xlu2 %v4688_v47, %s4994_s29  ;;  %v2377_v47 = vsel %vm2335_vm6, %v2312_v33, %v4436_v15  ;;  %v2977_v48 = vmax.f32 %v2822_v14, 0.0  ;;  %v4456_v15 = vunpack.i.l.bf16 %v4455_v60  ;;  %v4051_v33 = vunpack.i.l.bf16 %v9684_v53 }
 0x292   :  { %v2442_v44 = vsel %vm2400_vm7, %v2377_v47, %v4442_v62  ;;  %v4451_v14 = vunpack.i.l.bf16 %v7536_v46  ;;  %v2506_v60 = vsel %vm2465_vm8, %v2441_v36, %v4446_v30  ;;  %v4467_v53 = vunpack.i.h.bf16 %v7591_v39 }
 0x293   :  { %4684 = vrot.lane.b32.xlu1 %v9663_v45, %s4995_s30  ;;  %v7816_v25 = vpop.permute.xlu2 %4524  ;;  %v2289_v45 = vsel %vm2270_vm5, %v2224_v26, %v3891_v61  ;;  %3041 = vst.msk [vmem:[%s9040_s5 + $0x18] sm:$0xff] %vm2595_vm10, %v2977_v48  ;;  %v3107_v62 = vsel %vm2595_vm10, %v2977_v48, 0.0  ;;  %v2507_v26 = vsel %vm2465_vm8, %v2442_v44, %v4447_v42  ;;  %v4466_v48 = vunpack.i.l.bf16 %v7591_v39 }
 0x294   :  { %4679 = vrot.lane.b32.xlu0 %v9683_v6, %s4996_s15  ;;  %v4470_v57 = vpop.permute.xlu0 %4469  ;;  %v7839_v61 = vadd.f32 %v3107_v62, %v3106_v31  ;;  %v2572_v38 = vsel %vm2530_vm9, %v2507_v26, %v4457_v37  ;;  %v2571_v23 = vsel %vm2530_vm9, %v2506_v60, %v4456_v15  ;;  %v2290_v31 = vsel %vm2270_vm5, %v7743_v8, %v3892_v22  ;;  %v9685_v37 = vld [vmem:[#allocation137_spill] sm:$0xff] }
 0x295   :  { %v7825_v29 = vpop.permute.xlu1 %4474  ;;  %v4472_v4 = vunpack.i.h.bf16 %v4470_v57  ;;  %v4471_v47 = vunpack.i.l.bf16 %v4470_v57  ;;  %v4482_v42 = vunpack.i.h.bf16 %v7638_v40  ;;  %v4481_v30 = vunpack.i.l.bf16 %v7638_v40  ;;  %v9686_v57 = vld [vmem:[#allocation22_spill] sm:$0xff] }
 0x296   :  { %v3982_v39 = vunpack.i.h.bf16 %v9685_v37  ;;  %v2354_v36 = vsel %vm2335_vm6, %v2289_v45, %v4051_v33  ;;  %v2355_v15 = vsel %vm2335_vm6, %v2290_v31, %v4052_v34  ;;  %v3981_v8 = vunpack.i.l.bf16 %v9685_v37  ;;  %v4909_v45 = vld [vmem:[%s9035_s0 + $0x158] sm:$0xff] }
 0x297   :  { %v2637_v46 = vsel %vm2595_vm10, %v2572_v38, %v4472_v4  ;;  %v2419_v22 = vsel %vm2400_vm7, %v2354_v36, %v4451_v14  ;;  %v2420_v40 = vsel %vm2400_vm7, %v2355_v15, %v4452_v54  ;;  %v4437_v4 = vunpack.i.h.bf16 %v7489_v0 }
 0x298   :  { %v2484_v33 = vsel %vm2465_vm8, %v2419_v22, %v4466_v48  ;;  %v2485_v26 = vsel %vm2465_vm8, %v2420_v40, %v4467_v53  ;;  %v4477_v53 = vunpack.i.h.bf16 %v7825_v29  ;;  %v4476_v37 = vunpack.i.l.bf16 %v7825_v29 }
 0x299   :  { %4704 = vrot.lane.b32.xlu2 %v9669_v11, %s4993_s27  ;;  %v2636_v11 = vsel %vm2595_vm10, %v2571_v23, %v4471_v47  ;;  %v4908_v23 = vld [vmem:[%s9035_s0 + $0x150] sm:$0xff]  ;;  %v2549_v60 = vsel %vm2530_vm9, %v2484_v33, %v4481_v30  ;;  %v2550_v38 = vsel %vm2530_vm9, %v2485_v26, %v4482_v42  ;;  %v130_v42 = vld [vmem:[%s9035_s0 + $0x340] sm:$0x3]  ;;  %v2282_v30 = vsel %vm2270_vm5, %v7746_v58, %v3872_v7 }
 0x29a   :  { %v2680_v62 = vpack.c.bf16 %v2637_v46, %v2636_v11  ;;  %v4718_v34 = vpack.i.bf16 %v4909_v45, %v4908_v23  ;;  %v4461_v46 = vunpack.i.l.bf16 %v7770_v41  ;;  %v2325_v15 = vsel %vm2270_vm5, %v7773_v32, %v3981_v8  ;;  %v9687_v8 = vld [vmem:[#allocation97_spill] sm:$0xff] }
 0x29b   :  { %4699 = vrot.lane.b32.xlu1 %v9615_v35, %s4996_s15  ;;  %v7856_v44 = vpop.permute.xlu2 %4539  ;;  %v2281_v29 = vsel %vm2270_vm5, %v7757_v59, %v3871_v50  ;;  %v2326_v40 = vsel %vm2270_vm5, %v7791_v16, %v3982_v39  ;;  %v4497_v32 = vunpack.i.h.bf16 %v7672_v12  ;;  %v576_v59 = vrot.slane %v130_v42, 2 }
 0x29c   :  { %4694 = vrot.lane.b32.xlu0 %v9686_v57, %s4997_s16  ;;  %3484 = vmatmul.msk.bf16.gmra.mxu2 %vm2704_vm11, %v2680_v62  ;;  %v4485_v47 = vpop.permute.xlu0 %4484  ;;  %v2390_v57 = vsel %vm2335_vm6, %v2325_v15, %v4437_v4  ;;  %v2391_v7 = vsel %vm2335_vm6, %v2326_v40, %v4461_v46  ;;  %v4733_v12 = vpack.i.bf16 %v7763_v5, %v7779_v52  ;;  %v4032_v23 = vunpack.i.h.bf16 %v9687_v8  ;;  %v9688_v15 = vld [vmem:[#allocation26_spill] sm:$0xff] }
 0x29d   :  { %v4490_v35 = vpop.permute.xlu1 %4489  ;;  %v2899_v31 = vpop.f32.mrf.mxu2  ;;  %v4487_v62 = vunpack.i.h.bf16 %v4485_v47  ;;  %v4486_v22 = vunpack.i.l.bf16 %v4485_v47  ;;  %v2455_v50 = vsel %vm2400_vm7, %v2390_v57, %v4476_v37  ;;  %v2456_v16 = vsel %vm2400_vm7, %v2391_v7, %v4477_v53 }
 0x29e   :  { %v4492_v54 = vunpack.i.h.bf16 %v4490_v35  ;;  %v4491_v14 = vunpack.i.l.bf16 %v4490_v35  ;;  %v2900_v36 = vadd.f32 %v7364_v10, %v2899_v31  ;;  %v4031_v26 = vunpack.i.l.bf16 %v9687_v8 }
 0x29f   :  { %v2520_v45 = vsel %vm2465_vm8, %v2455_v50, %v4486_v22  ;;  %v577_v47 = vsel %vm391_vm1, %v574_v28, %v576_v59  ;;  %v4512_v22 = vunpack.i.h.bf16 %v7754_v27 }
 0x2a0   :  { %v2614_v11 = vsel %vm2595_vm10, %v2549_v60, %v4491_v14  ;;  %v2615_v48 = vsel %vm2595_vm10, %v2550_v38, %v4492_v54  ;;  %v3008_v35 = vmax.f32 %v2900_v36, 0.0  ;;  %v566_v14 = vrot.slane %v130_v42, 1 }
 0x2a1   :  { %4719 = vrot.lane.b32.xlu2 %v4718_v34, %s4994_s29  ;;  %v2669_v0 = vpack.c.bf16 %v2615_v48, %v2614_v11  ;;  %v2521_v34 = vsel %vm2465_vm8, %v2456_v16, %v4487_v62  ;;  %v2585_v11 = vsel %vm2530_vm9, %v2520_v45, %v4496_v18 }
 0x2a2   :  { %3072 = vst.msk [vmem:[%s9040_s5 + $0x110] sm:$0xff] %vm2595_vm10, %v3008_v35  ;;  %v2586_v48 = vsel %vm2530_vm9, %v2521_v34, %v4497_v32  ;;  %v4511_v32 = vunpack.i.l.bf16 %v7754_v27 }
 0x2a3   :  { %4714 = vrot.lane.b32.xlu1 %v9676_v43, %s4993_s27  ;;  %3473 = vmatmul.msk.bf16.gmra.mxu1 %vm2704_vm11, %v2669_v0  ;;  %v7904_v58 = vpop.permute.xlu2 %4554  ;;  %v3174_v43 = vsel %vm2595_vm10, %v3008_v35, 0.0  ;;  %v2347_v0 = vsel %vm2335_vm6, %v2282_v30, %v4032_v23  ;;  %v567_v30 = vsel %vm230_vm0, %v564_v19, %v566_v14 }
 0x2a4   :  { %4709 = vrot.lane.b32.xlu0 %v9678_v3, %s4995_s30  ;;  %v3175_v33 = vadd.f32 %v3174_v43, %v7676_v21  ;;  %v4500_v54 = vpop.permute.xlu0 %4499  ;;  %v575_v3 = vsel %vm391_vm1, %v573_v63, %v574_v28  ;;  %v2346_v28 = vsel %vm2335_vm6, %v2281_v29, %v4031_v26  ;;  %v565_v29 = vsel %vm230_vm0, %v563_v2, %v564_v19 }
 0x2a5   :  { %v4505_v39 = vpop.permute.xlu1 %4504  ;;  %v4502_v4 = vunpack.i.h.bf16 %v4500_v54  ;;  %v4501_v60 = vunpack.i.l.bf16 %v4500_v54  ;;  %v2901_v38 = vpop.f32.mrf.mxu2  ;;  %v7968_v5 = vpack.i.bf16 %v577_v47, %v575_v3  ;;  %v4743_v43 = vpack.i.bf16 %v567_v30, %v565_v29  ;;  %v9694_v30 = vld [vmem:[#allocation129_spill] sm:$0xff] }
 0x2a6   :  { %v4507_v46 = vunpack.i.h.bf16 %v4505_v39  ;;  %v2902_v21 = vadd.f32 %v7364_v10, %v2901_v38  ;;  %v4506_v53 = vunpack.i.l.bf16 %v4505_v39 }
 0x2a7   :  { %v2934_v31 = vpop.f32.mrf.mxu3  ;;  %v2650_v63 = vsel %vm2595_vm10, %v2585_v11, %v4501_v60  ;;  %v2651_v36 = vsel %vm2595_vm10, %v2586_v48, %v4502_v4  ;;  %v9691_v48 = vld [vmem:[#allocation37_spill] sm:$0xff] }
 0x2a8   :  { %v7938_v37 = vadd.f32 %v7364_v10, %v2934_v31  ;;  %v3009_v42 = vmax.f32 %v2902_v21, 0.0  ;;  %v2687_v62 = vpack.c.bf16 %v2651_v36, %v2650_v63  ;;  %v2411_v19 = vsel %vm2400_vm7, %v2346_v28, %v4506_v53  ;;  %v9690_v31 = vld [vmem:[#allocation45_spill] sm:$0xff] }
 0x2a9   :  { %4734 = vrot.lane.b32.xlu2 %v4733_v12, %s4994_s29  ;;  %v2824_v57 = vpop.f32.mrf.mxu0  ;;  %v2412_v27 = vsel %vm2400_vm7, %v2347_v0, %v4507_v46  ;;  %v2476_v23 = vsel %vm2465_vm8, %v2411_v19, %v4511_v32  ;;  %v9689_v46 = vld [vmem:[#allocation62_spill] sm:$0xff]  ;;  %v3577_v53 = vunpack.i.h.bf16 %v9691_v48  ;;  %v3576_v63 = vunpack.i.l.bf16 %v9691_v48 }
 0x2aa   :  { %v3022_v40 = vmax.f32 %v7938_v37, 0.0  ;;  %3073 = vst.msk [vmem:[%s9040_s5 + $0x118] sm:$0xff] %vm2595_vm10, %v3009_v42  ;;  %v3176_v18 = vsel %vm2595_vm10, %v3009_v42, 0.0  ;;  %v2825_v7 = vadd.f32 %v7364_v10, %v2824_v57  ;;  %3491 = vmatmul.msk.bf16.gmra.mxu3 %vm2704_vm11, %v2687_v62  ;;  %v2477_v45 = vsel %vm2465_vm8, %v2412_v27, %v4512_v22  ;;  %v9693_v57 = vld [vmem:[#allocation92_spill] sm:$0xff]  ;;  %v4911_v27 = vld [vmem:[%s9035_s0 + $0xf8] sm:$0xff] }
 0x2ab   :  { %4729 = vrot.lane.b32.xlu1 %v9688_v15, %s4997_s16  ;;  %v7948_v35 = vpop.permute.xlu2 %4569  ;;  %v7972_v2 = vadd.f32 %v3176_v18, %v3175_v33  ;;  %v3557_v21 = vunpack.i.h.bf16 %v9689_v46  ;;  %v3556_v22 = vunpack.i.l.bf16 %v9689_v46  ;;  %v3667_v29 = vunpack.i.h.bf16 %v9693_v57  ;;  %v4910_v18 = vld [vmem:[%s9035_s0 + $0x98] sm:$0xff] }
 0x2ac   :  { %4724 = vrot.lane.b32.xlu0 %v9683_v6, %s4995_s30  ;;  %3086 = vst.msk [vmem:[%s9040_s5 + $0x180] sm:$0xff] %vm2595_vm10, %v3022_v40  ;;  %v2978_v59 = vmax.f32 %v2825_v7, 0.0  ;;  %v4515_v16 = vpop.permute.xlu0 %4514  ;;  %v3791_v32 = vunpack.i.l.bf16 %v9694_v30 }
 0x2ad   :  { %v4520_v52 = vpop.permute.xlu1 %4519  ;;  %v4517_v39 = vunpack.i.h.bf16 %v4515_v16  ;;  %v4516_v12 = vunpack.i.l.bf16 %v4515_v16  ;;  %v8027_v7 = vsel %vm2140_vm3, %v4910_v18, %v3557_v21  ;;  %v4526_v18 = vunpack.i.l.bf16 %v7816_v25 }
 0x2ae   :  { %v4522_v6 = vunpack.i.h.bf16 %v4520_v52  ;;  %v4521_v50 = vunpack.i.l.bf16 %v4520_v52  ;;  %3042 = vst.msk [vmem:[%s9040_s5 + $0x20] sm:$0xff] %vm2595_vm10, %v2978_v59  ;;  %v3109_v8 = vsel %vm2595_vm10, %v2978_v59, 0.0  ;;  %v3792_v52 = vunpack.i.h.bf16 %v9694_v30 }
 0x2af   :  { %v2936_v34 = vpop.f32.mrf.mxu3  ;;  %v3110_v33 = vadd.f32 %v3109_v8, %v7839_v61  ;;  %v2541_v26 = vsel %vm2530_vm9, %v2476_v23, %v4516_v12  ;;  %v2542_v54 = vsel %vm2530_vm9, %v2477_v45, %v4517_v39  ;;  %v2162_v59 = vsel %vm2140_vm3, %v4911_v27, %v3577_v53  ;;  %v4912_v12 = vld [vmem:[%s9035_s0 + $0xf0] sm:$0xff]  ;;  %v4914_v45 = vld [vmem:[%s9035_s0 + $0x228] sm:$0xff] }
 0x2b0   :  { %v7993_v14 = vadd.f32 %v7364_v10, %v2936_v34  ;;  %v2606_v4 = vsel %vm2595_vm10, %v2541_v26, %v4521_v50  ;;  %v2607_v60 = vsel %vm2595_vm10, %v2542_v54, %v4522_v6  ;;  %v9695_v6 = vld [vmem:[#allocation131_spill] sm:$0xff]  ;;  %v2161_v8 = vsel %vm2140_vm3, %v4912_v12, %v3576_v63 }
 0x2b1   :  { %4749 = vrot.lane.b32.xlu2 %v7968_v5, %s4996_s15  ;;  %v2826_v3 = vpop.f32.mrf.mxu0  ;;  %v2665_v47 = vpack.c.bf16 %v2607_v60, %v2606_v4  ;;  %v3737_v50 = vunpack.i.h.bf16 %v9695_v6  ;;  %v3736_v16 = vunpack.i.l.bf16 %v9695_v6  ;;  %v4915_v54 = vld [vmem:[%s9035_s0 + $0x2d8] sm:$0xff]  ;;  %v3666_v60 = vunpack.i.l.bf16 %v9693_v57  ;;  %v4920_v57 = vld [vmem:[%s9035_s0 + $0x90] sm:$0xff] }
 0x2b2   :  { %v3023_v38 = vmax.f32 %v7993_v14, 0.0  ;;  %v2827_v61 = vadd.f32 %v7364_v10, %v2826_v3  ;;  %v9692_v10 = vld [vmem:[#allocation76_spill] sm:$0xff]  ;;  %v8063_v4 = vsel %vm2140_vm3, %v4915_v54, %v3667_v29  ;;  %v9699_v29 = vld [vmem:[#allocation10_spill] sm:$0xff] }
 0x2b3   :  { %4744 = vrot.lane.b32.xlu1 %v4743_v43, %s4997_s16  ;;  %3469 = vmatmul.msk.bf16.gmra.mxu0 %vm2704_vm11, %v2665_v47  ;;  %v8014_v36 = vpop.permute.xlu2 %4584  ;;  %v3632_v28 = vunpack.i.h.bf16 %v9692_v10  ;;  %v3631_v0 = vunpack.i.l.bf16 %v9692_v10  ;;  %v2227_v63 = vsel %vm2205_vm4, %v2162_v59, %v3737_v50  ;;  %v2226_v10 = vsel %vm2205_vm4, %v2161_v8, %v3736_v16 }
 0x2b4   :  { %4739 = vrot.lane.b32.xlu0 %v9690_v31, %s4996_s15  ;;  %3087 = vst.msk [vmem:[%s9040_s5 + $0x188] sm:$0xff] %vm2595_vm10, %v3023_v38  ;;  %v2979_v42 = vmax.f32 %v2827_v61, 0.0  ;;  %v8018_v62 = vpop.permute.xlu0 %4529  ;;  %v9697_v61 = vld [vmem:[#allocation96_spill] sm:$0xff]  ;;  %v3827_v30 = vunpack.i.h.bf16 %v9699_v29  ;;  %v3204_v1 = vsel %vm2595_vm10, %v3023_v38, 0.0 }
 0x2b5   :  { %v8003_v11 = vpop.permute.xlu1 %4534  ;;  %v2183_v34 = vsel %vm2140_vm3, %v4914_v45, %v3631_v0  ;;  %v3952_v48 = vunpack.i.h.bf16 %v9697_v61  ;;  %v3951_v53 = vunpack.i.l.bf16 %v9697_v61  ;;  %v4532_v8 = vunpack.i.h.bf16 %v8018_v62  ;;  %v4917_v45 = vld [vmem:[%s9035_s0 + $0x170] sm:$0xff] }
 0x2b6   :  { %3043 = vst.msk [vmem:[%s9040_s5 + $0x28] sm:$0xff] %vm2595_vm10, %v2979_v42  ;;  %v3111_v19 = vsel %vm2595_vm10, %v2979_v42, 0.0  ;;  %v2248_v3 = vsel %vm2205_vm4, %v2183_v34, %v3791_v32  ;;  %v4462_v42 = vunpack.i.h.bf16 %v7770_v41  ;;  %v4531_v41 = vunpack.i.l.bf16 %v8018_v62  ;;  %v8115_v62 = vld [vmem:[%s9037_s2] ss:$0 sm:$0xff] }
 0x2b7   :  { %v8042_v39 = vadd.f32 %v3111_v19, %v3110_v33  ;;  %v9696_v33 = vld [vmem:[#allocation8_spill] sm:$0xff]  ;;  %v8090_v19 = vld [vmem:[%s9035_s0 + $0x350] sm:$0xff]  ;;  %v2313_v16 = vsel %vm2270_vm5, %v2248_v3, %v3951_v53  ;;  %v4537_v53 = vunpack.i.h.bf16 %v8003_v11 }
 0x2b8   :  { %v3896_v26 = vunpack.i.l.bf16 %v9696_v33  ;;  %v3897_v47 = vunpack.i.h.bf16 %v9696_v33  ;;  %v590_v6 = vrot.slane %v8090_v19, 1  ;;  %v9700_v33 = vld [vmem:[#allocation47_spill] sm:$0xff]  ;;  %v2378_v3 = vsel %vm2335_vm6, %v2313_v16, %v4462_v42 }
 0x2b9   :  { %4764 = vrot.lane.b32.xlu2 %v4743_v43, %s4993_s27  ;;  %v4913_v43 = vld [vmem:[%s9035_s0 + $0x230] sm:$0xff] }
 0x2ba   :  { %v2184_v23 = vsel %vm2140_vm3, %v4913_v43, %v3632_v28  ;;  %v9698_v28 = vld [vmem:[#allocation91_spill] sm:$0xff]  ;;  %v2291_v32 = vsel %vm2270_vm5, %v2226_v10, %v3896_v26  ;;  %v2292_v27 = vsel %vm2270_vm5, %v2227_v63, %v3897_v47  ;;  %v4536_v10 = vunpack.i.l.bf16 %v8003_v11 }
 0x2bb   :  { %4759 = vrot.lane.b32.xlu1 %v9690_v31, %s4995_s30  ;;  %v2249_v21 = vsel %vm2205_vm4, %v2184_v23, %v3792_v52  ;;  %v4056_v0 = vunpack.i.l.bf16 %v9698_v28  ;;  %v8094_v59 = vpop.permute.xlu2 %4599  ;;  %v4916_v23 = vld [vmem:[%s9035_s0 + $0x168] sm:$0xff]  ;;  %v4057_v26 = vunpack.i.h.bf16 %v9698_v28  ;;  %v2443_v28 = vsel %vm2400_vm7, %v2378_v3, %v4531_v41 }
 0x2bc   :  { %4754 = vrot.lane.b32.xlu0 %v9688_v15, %s4993_s27  ;;  %v4545_v52 = vpop.permute.xlu0 %4544  ;;  %v8085_v15 = vld [vmem:[%s9035_s0 + $0x348] sm:$0xff]  ;;  %v2314_v12 = vsel %vm2270_vm5, %v2249_v21, %v3952_v48  ;;  %v4768_v34 = vpack.i.bf16 %v4917_v45, %v4916_v23  ;;  %v133_v21 = vld [vmem:[%s9035_s0 + $0x358] sm:$0x3]  ;;  %v4542_v48 = vunpack.i.h.bf16 %v7856_v44  ;;  %v4557_v23 = vunpack.i.h.bf16 %v7904_v58 }
 0x2bd   :  { %v8073_v31 = vpop.permute.xlu1 %4549  ;;  %v589_v50 = vrot.slane %v8085_v15, 1  ;;  %v2356_v54 = vsel %vm2335_vm6, %v2291_v32, %v4056_v0  ;;  %v2379_v61 = vsel %vm2335_vm6, %v2314_v12, %v4526_v18  ;;  %v592_v63 = vrot.slane %v133_v21, 1 }
 0x2be   :  { %v2904_v43 = vpop.f32.mrf.mxu2  ;;  %v2444_v32 = vsel %vm2400_vm7, %v2379_v61, %v4532_v8  ;;  %v4547_v16 = vunpack.i.h.bf16 %v4545_v52  ;;  %v4556_v11 = vunpack.i.l.bf16 %v7904_v58  ;;  %v4783_v8 = vpack.i.bf16 %v8090_v19, %v8085_v15 }
 0x2bf   :  { %v2905_v47 = vadd.f32 %v8115_v62, %v2904_v43  ;;  %v591_v42 = vsel %vm230_vm0, %v589_v50, %v590_v6  ;;  %v4546_v43 = vunpack.i.l.bf16 %v4545_v52  ;;  %v593_v12 = vsel %vm230_vm0, %v590_v6, %v592_v63 }
 0x2c0   :  { %v4793_v6 = vpack.i.bf16 %v593_v12, %v591_v42  ;;  %v2509_v45 = vsel %vm2465_vm8, %v2444_v32, %v4537_v53  ;;  %v600_v61 = vrot.slane %v8090_v19, 2  ;;  %v2357_v42 = vsel %vm2335_vm6, %v2292_v27, %v4057_v26  ;;  %v9701_v19 = vld [vmem:[#allocation20_spill] sm:$0xff] }
 0x2c1   :  { %4779 = vrot.lane.b32.xlu2 %v9700_v33, %s4997_s16  ;;  %v3010_v0 = vmax.f32 %v2905_v47, 0.0  ;;  %v2574_v3 = vsel %vm2530_vm9, %v2509_v45, %v4547_v16  ;;  %v4572_v32 = vunpack.i.h.bf16 %v7948_v35  ;;  %v4571_v16 = vunpack.i.l.bf16 %v7948_v35 }
 0x2c3   :  { %4774 = vrot.lane.b32.xlu1 %v7968_v5, %s4995_s30  ;;  %v4541_v5 = vunpack.i.l.bf16 %v7856_v44  ;;  %3074 = vst.msk [vmem:[%s9040_s5 + $0x120] sm:$0xff] %vm2595_vm10, %v3010_v0  ;;  %v3178_v41 = vsel %vm2595_vm10, %v3010_v0, 0.0  ;;  %v2508_v44 = vsel %vm2465_vm8, %v2443_v28, %v4536_v10  ;;  %v8152_v63 = vpop.permute.xlu2 %4614  ;;  %v602_v28 = vrot.slane %v133_v21, 2  ;;  %s5000_s30 = smov 1  }
 0x2c4   :  { %4769 = vrot.lane.b32.xlu0 %v4768_v34, %s4994_s29  ;;  %v3179_v52 = vadd.f32 %v3178_v41, %v7972_v2  ;;  %v4560_v50 = vpop.permute.xlu0 %4559  ;;  %v2573_v33 = vsel %vm2530_vm9, %v2508_v44, %v4546_v43  ;;  %v599_v2 = vrot.slane %v8085_v15, 2  ;;  %v3826_v43 = vunpack.i.l.bf16 %v9699_v29 }
 0x2c5   :  { %v8131_v18 = vpop.permute.xlu1 %4564  ;;  %v4562_v34 = vunpack.i.h.bf16 %v4560_v50  ;;  %v4561_v58 = vunpack.i.l.bf16 %v4560_v50  ;;  %v2421_v12 = vsel %vm2400_vm7, %v2356_v54, %v4541_v5  ;;  %v2422_v41 = vsel %vm2400_vm7, %v2357_v42, %v4542_v48 }
 0x2c6   :  { %v2906_v47 = vpop.f32.mrf.mxu2  ;;  %v2486_v21 = vsel %vm2465_vm8, %v2421_v12, %v4556_v11  ;;  %v2487_v27 = vsel %vm2465_vm8, %v2422_v41, %v4557_v23  ;;  %v601_v26 = vsel %vm391_vm1, %v599_v2, %v600_v61  ;;  %v603_v11 = vsel %vm391_vm1, %v600_v61, %v602_v28 }
 0x2c7   :  { %v2907_v0 = vadd.f32 %v8115_v62, %v2906_v47  ;;  %v2638_v10 = vsel %vm2595_vm10, %v2573_v33, %v4561_v58  ;;  %v2639_v53 = vsel %vm2595_vm10, %v2574_v3, %v4562_v34  ;;  %v2552_v45 = vsel %vm2530_vm9, %v2487_v27, %v4572_v32 }
 0x2c8   :  { %v2681_v15 = vpack.c.bf16 %v2639_v53, %v2638_v10  ;;  %v4527_v33 = vunpack.i.h.bf16 %v7816_v25  ;;  %v4551_v3 = vunpack.i.l.bf16 %v8073_v31  ;;  %v4567_v61 = vunpack.i.h.bf16 %v8131_v18 }
 0x2c9   :  { %4794 = vrot.lane.b32.xlu2 %v4793_v6, %s4997_s16  ;;  %v3011_v50 = vmax.f32 %v2907_v0, 0.0  ;;  %v9702_v6 = vld [vmem:[#allocation95_spill] sm:$0xff]  ;;  %v4798_v53 = vpack.i.bf16 %v603_v11, %v601_v26  ;;  %v2263_v42 = vsel %vm2205_vm4, %v8063_v4, %v3827_v30  ;;  %v4566_v32 = vunpack.i.l.bf16 %v8131_v18  ;;  %s3446_s16 = sshll.u32 %s5004_s28, 4  ;;  %s3447_s16 = int_to_ptr.vmem [resolvable:$true] %s3446_s16 }
 0x2ca   :  { %v3987_v44 = vunpack.i.h.bf16 %v9702_v6  ;;  %3485 = vmatmul.msk.bf16.gmra.mxu2 %vm2704_vm11, %v2681_v15  ;;  %v3986_v23 = vunpack.i.l.bf16 %v9702_v6  ;;  %v2153_v4 = vsel %vm2140_vm3, %v4920_v57, %v3556_v22  ;;  %v4586_v22 = vunpack.i.l.bf16 %v8014_v36 }
 0x2cb   :  { %4789 = vrot.lane.b32.xlu1 %v9701_v19, %s4996_s15  ;;  %3075 = vst.msk [vmem:[%s9040_s5 + $0x128] sm:$0xff] %vm2595_vm10, %v3011_v50  ;;  %v3180_v54 = vsel %vm2595_vm10, %v3011_v50, 0.0  ;;  %v8213_v30 = vpop.permute.xlu2 %4629 }
 0x2cc   :  { %4784 = vrot.lane.b32.xlu0 %v4783_v8, %s4994_s29  ;;  %v2551_v8 = vsel %vm2530_vm9, %v2486_v21, %v4571_v16  ;;  %v8180_v34 = vadd.f32 %v3180_v54, %v3179_v52  ;;  %v4575_v58 = vpop.permute.xlu0 %4574  ;;  %v4919_v52 = vld [vmem:[%s9035_s0 + $0x2d0] sm:$0xff]  ;;  %v2328_v15 = vsel %vm2270_vm5, %v2263_v42, %v3987_v44  ;;  %v4587_v21 = vunpack.i.h.bf16 %v8014_v36 }
 0x2cd   :  { %v4580_v35 = vpop.permute.xlu1 %4579  ;;  %v2939_v47 = vpop.f32.mrf.mxu3  ;;  %v2197_v25 = vsel %vm2140_vm3, %v4919_v52, %v3666_v60  ;;  %v4577_v16 = vunpack.i.h.bf16 %v4575_v58  ;;  %v4576_v12 = vunpack.i.l.bf16 %v4575_v58  ;;  %v2393_v29 = vsel %vm2335_vm6, %v2328_v15, %v4551_v3  ;;  %v9705_v58 = vld [vmem:[#allocation51_spill] sm:$0xff] }
 0x2ce   :  { %v4582_v48 = vunpack.i.h.bf16 %v4580_v35  ;;  %v4581_v5 = vunpack.i.l.bf16 %v4580_v35  ;;  %v8188_v10 = vadd.f32 %v8115_v62, %v2939_v47  ;;  %v2262_v19 = vsel %vm2205_vm4, %v2197_v25, %v3826_v43  ;;  %v9703_v43 = vld [vmem:[#allocation88_spill] sm:$0xff] }
 0x2cf   :  { %v2327_v60 = vsel %vm2270_vm5, %v2262_v19, %v3986_v23  ;;  %v3717_v6 = vunpack.i.h.bf16 %v9703_v43  ;;  %v2458_v27 = vsel %vm2400_vm7, %v2393_v29, %v4567_v61  ;;  %v4036_v3 = vunpack.i.l.bf16 %v9705_v58 }
 0x2d0   :  { %v2616_v2 = vsel %vm2595_vm10, %v2551_v8, %v4581_v5  ;;  %v2617_v0 = vsel %vm2595_vm10, %v2552_v45, %v4582_v48  ;;  %v3024_v41 = vmax.f32 %v8188_v10, 0.0  ;;  %v2829_v50 = vpop.f32.mrf.mxu0  ;;  %v2392_v44 = vsel %vm2335_vm6, %v2327_v60, %v4527_v33  ;;  %v9704_v5 = vld [vmem:[#allocation42_spill] sm:$0xff] }
 0x2d1   :  { %v2670_v28 = vpack.c.bf16 %v2617_v0, %v2616_v2  ;;  %v2830_v18 = vadd.f32 %v8115_v62, %v2829_v50  ;;  %v2457_v35 = vsel %vm2400_vm7, %v2392_v44, %v4566_v32  ;;  %v2523_v26 = vsel %vm2465_vm8, %v2458_v27, %v4577_v16 }
 0x2d2   :  { %3088 = vst.msk [vmem:[%s9040_s5 + $0x190] sm:$0xff] %vm2595_vm10, %v3024_v41  ;;  %v3716_v48 = vunpack.i.l.bf16 %v9703_v43  ;;  %v3877_v11 = vunpack.i.h.bf16 %v9704_v5  ;;  %v3876_v23 = vunpack.i.l.bf16 %v9704_v5  ;;  %v2522_v8 = vsel %vm2465_vm8, %v2457_v35, %v4576_v12 }
 0x2d3   :  { %3474 = vmatmul.msk.bf16.gmra.mxu1 %vm2704_vm11, %v2670_v28  ;;  %v2980_v54 = vmax.f32 %v2830_v18, 0.0  ;;  %v4037_v33 = vunpack.i.h.bf16 %v9705_v58  ;;  %v2588_v28 = vsel %vm2530_vm9, %v2523_v26, %v4587_v21  ;;  %v2587_v42 = vsel %vm2530_vm9, %v2522_v8, %v4586_v22  ;;  %v8268_v27 = vpop.permute.xlu2 %4644 }
 0x2d4   :  { %4799 = vrot.lane.b32.xlu0 %v4798_v53, %s4996_s15  ;;  %v4590_v45 = vpop.permute.xlu0 %4589  ;;  %v2218_v16 = vsel %vm2205_vm4, %v2153_v4, %v3716_v48  ;;  %v2219_v19 = vsel %vm2205_vm4, %v8027_v7, %v3717_v6  ;;  %v4602_v4 = vunpack.i.h.bf16 %v8094_v59  ;;  %v4601_v7 = vunpack.i.l.bf16 %v8094_v59  ;;  %s3437_s15 = sshll.u32 %s9041_s6, 4  ;;  %s3438_s15 = int_to_ptr.hbm [resolvable:$true] %s3437_s15 }
 0x2d5   :  { %v4595_v46 = vpop.permute.xlu1 %4594  ;;  %3044 = vst.msk [vmem:[%s9040_s5 + $0x30] sm:$0xff] %vm2595_vm10, %v2980_v54  ;;  %v3113_v36 = vsel %vm2595_vm10, %v2980_v54, 0.0  ;;  %v4592_v47 = vunpack.i.h.bf16 %v4590_v45  ;;  %v2941_v2 = vpop.f32.mrf.mxu3  ;;  %v4591_v61 = vunpack.i.l.bf16 %v4590_v45  ;;  %v2283_v50 = vsel %vm2270_vm5, %v2218_v16, %v3876_v23 }
 0x2d6   :  { %v3114_v0 = vadd.f32 %v3113_v36, %v8042_v39  ;;  %v8243_v53 = vadd.f32 %v8115_v62, %v2941_v2  ;;  %v4597_v52 = vunpack.i.h.bf16 %v4595_v46  ;;  %v4596_v25 = vunpack.i.l.bf16 %v4595_v46 }
 0x2d7   :  { %v2653_v32 = vsel %vm2595_vm10, %v2588_v28, %v4592_v47  ;;  %v2652_v12 = vsel %vm2595_vm10, %v2587_v42, %v4591_v61  ;;  %v2284_v57 = vsel %vm2270_vm5, %v2219_v19, %v3877_v11  ;;  %v2348_v18 = vsel %vm2335_vm6, %v2283_v50, %v4036_v3  ;;  %v9708_v42 = vld [vmem:[#allocation75_spill] sm:$0xff]  ;;  %v9709_v19 = vld [vmem:[#allocation68_spill] sm:$0xff] }
 0x2d8   :  { %v3025_v15 = vmax.f32 %v8243_v53, 0.0  ;;  %v2831_v39 = vpop.f32.mrf.mxu0  ;;  %v2688_v29 = vpack.c.bf16 %v2653_v32, %v2652_v12  ;;  %v2349_v43 = vsel %vm2335_vm6, %v2284_v57, %v4037_v33  ;;  %v2413_v44 = vsel %vm2400_vm7, %v2348_v18, %v4596_v25  ;;  %v9710_v12 = vld [vmem:[#allocation11_spill] sm:$0xff]  ;;  %v4922_v18 = vld [vmem:[%s9035_s0 + $0x108] sm:$0xff] }
 0x2d9   :  { %v2832_v60 = vadd.f32 %v8115_v62, %v2831_v39  ;;  %v2414_v21 = vsel %vm2400_vm7, %v2349_v43, %v4597_v52  ;;  %v2478_v11 = vsel %vm2465_vm8, %v2413_v44, %v4601_v7  ;;  %v9707_v52 = vld [vmem:[#allocation28_spill] sm:$0xff]  ;;  %v3637_v32 = vunpack.i.h.bf16 %v9708_v42 }
 0x2da   :  { %3089 = vst.msk [vmem:[%s9040_s5 + $0x198] sm:$0xff] %vm2595_vm10, %v3025_v15  ;;  %3492 = vmatmul.msk.bf16.gmra.mxu3 %vm2704_vm11, %v2688_v29  ;;  %v2479_v23 = vsel %vm2465_vm8, %v2414_v21, %v4602_v4  ;;  %v3562_v25 = vunpack.i.h.bf16 %v9707_v52  ;;  %v3636_v16 = vunpack.i.l.bf16 %v9708_v42  ;;  %v3672_v39 = vunpack.i.h.bf16 %v9709_v19  ;;  %v9711_v4 = vld [vmem:[#allocation34_spill] sm:$0xff] }
 0x2db   :  { %v2981_v46 = vmax.f32 %v2832_v60, 0.0  ;;  %v8287_v2 = vpop.permute.xlu2 %4659  ;;  %v3797_v50 = vunpack.i.h.bf16 %v9710_v12  ;;  %v3796_v57 = vunpack.i.l.bf16 %v9710_v12  ;;  %v4921_v60 = vld [vmem:[%s9035_s0 + $0x110] sm:$0xff]  ;;  %v3957_v7 = vunpack.i.h.bf16 %v9711_v4 }
 0x2dc   :  { %v4605_v59 = vpop.permute.xlu0 %4604  ;;  %v4923_v21 = vld [vmem:[%s9035_s0 + $0xb0] sm:$0xff]  ;;  %v3208_v14 = vsel %vm2595_vm10, %v3025_v15, 0.0  ;;  %v3250_v15 = vld [vmem:[%s9038_s3 + $0x8] sm:$0xff] }
 0x2dd   :  { %v4610_v6 = vpop.permute.xlu1 %4609  ;;  %3045 = vst.msk [vmem:[%s9040_s5 + $0x38] sm:$0xff] %vm2595_vm10, %v2981_v46  ;;  %v3115_v26 = vsel %vm2595_vm10, %v2981_v46, 0.0  ;;  %v4607_v54 = vunpack.i.h.bf16 %v4605_v59  ;;  %v4606_v48 = vunpack.i.l.bf16 %v4605_v59  ;;  %v8313_v46 = vsel %vm2140_vm3, %v4923_v21, %v3562_v25 }
 0x2de   :  { %v4612_v22 = vunpack.i.h.bf16 %v4610_v6  ;;  %v4611_v35 = vunpack.i.l.bf16 %v4610_v6  ;;  %v8276_v5 = vadd.f32 %v3115_v26, %v3114_v0  ;;  %v9706_v0 = vld [vmem:[#allocation18_spill] sm:$0xff]  ;;  %v3956_v6 = vunpack.i.l.bf16 %v9711_v4  ;;  %v4925_v26 = vld [vmem:[%s9035_s0 + $0x240] sm:$0xff] }
 0x2df   :  { %v2543_v8 = vsel %vm2530_vm9, %v2478_v11, %v4606_v48  ;;  %v2544_v45 = vsel %vm2530_vm9, %v2479_v23, %v4607_v54  ;;  %v3582_v61 = vunpack.i.h.bf16 %v9706_v0  ;;  %v3581_v28 = vunpack.i.l.bf16 %v9706_v0  ;;  %v9712_v48 = vld [vmem:[#allocation130_spill] sm:$0xff] }
 0x2e0   :  { %v2608_v58 = vsel %vm2595_vm10, %v2543_v8, %v4611_v35  ;;  %v2609_v33 = vsel %vm2595_vm10, %v2544_v45, %v4612_v22  ;;  %v3561_v22 = vunpack.i.l.bf16 %v9707_v52  ;;  %v4924_v35 = vld [vmem:[%s9035_s0 + $0x248] sm:$0xff]  ;;  %v2185_v54 = vsel %vm2140_vm3, %v4925_v26, %v3636_v16 }
 0x2e1   :  { %v2666_v3 = vpack.c.bf16 %v2609_v33, %v2608_v58  ;;  %v2164_v29 = vsel %vm2140_vm3, %v4921_v60, %v3582_v61  ;;  %v2163_v43 = vsel %vm2140_vm3, %v4922_v18, %v3581_v28  ;;  %v2186_v59 = vsel %vm2140_vm3, %v4924_v35, %v3637_v32  ;;  %v4926_v33 = vld [vmem:[%s9035_s0 + $0x2f0] sm:$0xff]  ;;  %v9713_v60 = vld [vmem:[#allocation35_spill] sm:$0xff] }
 0x2e2   :  { %v3742_v11 = vunpack.i.h.bf16 %v9712_v48  ;;  %v3741_v23 = vunpack.i.l.bf16 %v9712_v48  ;;  %v4552_v8 = vunpack.i.h.bf16 %v8073_v31  ;;  %v4616_v45 = vunpack.i.l.bf16 %v8152_v63 }
 0x2e3   :  { %3470 = vmatmul.msk.bf16.gmra.mxu0 %vm2704_vm11, %v2666_v3  ;;  %v8332_v3 = vsel %vm2140_vm3, %v4926_v33, %v3672_v39  ;;  %v3671_v0 = vunpack.i.l.bf16 %v9709_v19  ;;  %v2251_v61 = vsel %vm2205_vm4, %v2186_v59, %v3797_v50  ;;  %v2250_v28 = vsel %vm2205_vm4, %v2185_v54, %v3796_v57  ;;  %v8341_v39 = vpop.permute.xlu2 %4674  ;;  %v4928_v19 = vld [vmem:[%s9035_s0 + $0xa8] sm:$0xff] }
 0x2e4   :  { %v4620_v47 = vpop.permute.xlu0 %4619  ;;  %v2315_v25 = vsel %vm2270_vm5, %v2250_v28, %v3956_v6  ;;  %v2316_v31 = vsel %vm2270_vm5, %v2251_v61, %v3957_v7  ;;  %v3902_v18 = vunpack.i.h.bf16 %v9713_v60  ;;  %v3901_v4 = vunpack.i.l.bf16 %v9713_v60 }
 0x2e5   :  { %v8284_v36 = vpop.permute.xlu1 %4624  ;;  %v4622_v42 = vunpack.i.h.bf16 %v4620_v47  ;;  %v4621_v32 = vunpack.i.l.bf16 %v4620_v47  ;;  %v2229_v57 = vsel %vm2205_vm4, %v2164_v29, %v3742_v11  ;;  %v2228_v6 = vsel %vm2205_vm4, %v2163_v43, %v3741_v23  ;;  %v9714_v23 = vld [vmem:[#allocation53_spill] sm:$0xff] }
 0x2e6   :  { %v2380_v7 = vsel %vm2335_vm6, %v2315_v25, %v4552_v8  ;;  %v2381_v47 = vsel %vm2335_vm6, %v2316_v31, %v4616_v45  ;;  %v4627_v35 = vunpack.i.h.bf16 %v8284_v36  ;;  %v4626_v59 = vunpack.i.l.bf16 %v8284_v36 }
 0x2e7   :  { %v2445_v48 = vsel %vm2400_vm7, %v2380_v7, %v4621_v32  ;;  %v2446_v33 = vsel %vm2400_vm7, %v2381_v47, %v4622_v42  ;;  %v2294_v43 = vsel %vm2270_vm5, %v2229_v57, %v3902_v18  ;;  %v2293_v11 = vsel %vm2270_vm5, %v2228_v6, %v3901_v4 }
 0x2e8   :  { %v4061_v8 = vunpack.i.l.bf16 %v9714_v23  ;;  %v4617_v45 = vunpack.i.h.bf16 %v8152_v63  ;;  %v4632_v25 = vunpack.i.h.bf16 %v8213_v30  ;;  %v2510_v32 = vsel %vm2465_vm8, %v2445_v48, %v4626_v59 }
 0x2e9   :  { %v4647_v60 = vunpack.i.h.bf16 %v8268_v27  ;;  %v4662_v59 = vunpack.i.h.bf16 %v8287_v2 }
 0x2ea   :  { %v2359_v48 = vsel %vm2335_vm6, %v2294_v43, %v4617_v45 }
 0x2ec   :  { %v4635_v58 = vpop.permute.xlu0 %4634 }
 0x2ed   :  { %v8307_v44 = vpop.permute.xlu1 %4639  ;;  %v4637_v61 = vunpack.i.h.bf16 %v4635_v58  ;;  %v4636_v28 = vunpack.i.l.bf16 %v4635_v58  ;;  %v4631_v58 = vunpack.i.l.bf16 %v8213_v30  ;;  %v4646_v30 = vunpack.i.l.bf16 %v8268_v27 }
 0x2ee   :  { %v2909_v16 = vpop.f32.mrf.mxu2  ;;  %v4661_v27 = vunpack.i.l.bf16 %v8287_v2 }
 0x2ef   :  { %v2910_v21 = vadd.f32 %v8115_v62, %v2909_v16  ;;  %v2511_v16 = vsel %vm2465_vm8, %v2446_v33, %v4627_v35  ;;  %v2358_v35 = vsel %vm2335_vm6, %v2293_v11, %v4061_v8  ;;  %v2424_v11 = vsel %vm2400_vm7, %v2359_v48, %v4632_v25 }
 0x2f0   :  { %v2854_v12 = vpop.f32.mrf.mxu1  ;;  %v2576_v18 = vsel %vm2530_vm9, %v2511_v16, %v4637_v61  ;;  %v2423_v33 = vsel %vm2400_vm7, %v2358_v35, %v4631_v58  ;;  %v8393_v61 = vpop.permute.xlu2 %4689  ;;  %v2489_v43 = vsel %vm2465_vm8, %v2424_v11, %v4647_v60 }
 0x2f1   :  { %v8345_v50 = vadd.f32 %v8115_v62, %v2854_v12  ;;  %v3012_v26 = vmax.f32 %v2910_v21, 0.0  ;;  %v2488_v8 = vsel %vm2465_vm8, %v2423_v33, %v4646_v30  ;;  %v2554_v30 = vsel %vm2530_vm9, %v2489_v43, %v4662_v59 }
 0x2f2   :  { %v2553_v25 = vsel %vm2530_vm9, %v2488_v8, %v4661_v27  ;;  %v4927_v27 = vld [vmem:[%s9035_s0 + $0x2e8] sm:$0xff] }
 0x2f3   :  { %v2990_v54 = vmax.f32 %v8345_v50, 0.0  ;;  %3076 = vst.msk [vmem:[%s9040_s5 + $0x130] sm:$0xff] %vm2595_vm10, %v3012_v26  ;;  %v3182_v36 = vsel %vm2595_vm10, %v3012_v26, 0.0 }
 0x2f4   :  { %v3183_v31 = vadd.f32 %v3182_v36, %v8180_v34  ;;  %v2575_v34 = vsel %vm2530_vm9, %v2510_v32, %v4636_v28  ;;  %v9715_v36 = vld [vmem:[#allocation15_spill] sm:$0xff] }
 0x2f5   :  { %v8356_v29 = vpop.permute.xlu1 %4654  ;;  %3054 = vst.msk [vmem:[%s9040_s5 + $0x80] sm:$0xff] %vm2595_vm10, %v2990_v54  ;;  %v3831_v32 = vunpack.i.l.bf16 %v9715_v36 }
 0x2f6   :  { %v4650_v42 = vpop.permute.xlu0 %4649  ;;  %v2911_v4 = vpop.f32.mrf.mxu2  ;;  %v4656_v33 = vunpack.i.l.bf16 %v8356_v29 }
 0x2f7   :  { %v4652_v12 = vunpack.i.h.bf16 %v4650_v42  ;;  %v4651_v63 = vunpack.i.l.bf16 %v4650_v42  ;;  %v2912_v57 = vadd.f32 %v8115_v62, %v2911_v4  ;;  %v3832_v42 = vunpack.i.h.bf16 %v9715_v36 }
 0x2f8   :  { %v2856_v21 = vpop.f32.mrf.mxu1  ;;  %v4642_v4 = vunpack.i.h.bf16 %v8307_v44 }
 0x2f9   :  { %v8384_v6 = vadd.f32 %v8115_v62, %v2856_v21  ;;  %v2640_v7 = vsel %vm2595_vm10, %v2575_v34, %v4651_v63  ;;  %v2641_v47 = vsel %vm2595_vm10, %v2576_v18, %v4652_v12  ;;  %v3013_v28 = vmax.f32 %v2912_v57, 0.0  ;;  %v9716_v12 = vld [vmem:[#allocation90_spill] sm:$0xff] }
 0x2fa   :  { %v2682_v26 = vpack.c.bf16 %v2641_v47, %v2640_v7  ;;  %v3992_v63 = vunpack.i.h.bf16 %v9716_v12  ;;  %v3991_v18 = vunpack.i.l.bf16 %v9716_v12  ;;  %v4657_v47 = vunpack.i.h.bf16 %v8356_v29 }
 0x2fb   :  { %v2991_v23 = vmax.f32 %v8384_v6, 0.0  ;;  %3077 = vst.msk [vmem:[%s9040_s5 + $0x138] sm:$0xff] %vm2595_vm10, %v3013_v28  ;;  %v3184_v45 = vsel %vm2595_vm10, %v3013_v28, 0.0  ;;  %v2265_v48 = vsel %vm2205_vm4, %v8332_v3, %v3832_v42  ;;  %v2155_v3 = vsel %vm2140_vm3, %v4928_v19, %v3561_v22 }
 0x2fc   :  { %3486 = vmatmul.msk.bf16.gmra.mxu2 %vm2704_vm11, %v2682_v26  ;;  %v8410_v34 = vadd.f32 %v3184_v45, %v3183_v31  ;;  %v4641_v31 = vunpack.i.l.bf16 %v8307_v44  ;;  %v2199_v26 = vsel %vm2140_vm3, %v4927_v27, %v3671_v0  ;;  %v2330_v36 = vsel %vm2270_vm5, %v2265_v48, %v3992_v63  ;;  %v8461_v63 = vpop.permute.xlu2 %4704 }
 0x2fd   :  { %v4670_v2 = vpop.permute.xlu1 %4669  ;;  %3055 = vst.msk [vmem:[%s9040_s5 + $0x88] sm:$0xff] %vm2595_vm10, %v2991_v23  ;;  %v2944_v21 = vpop.f32.mrf.mxu3  ;;  %v2264_v28 = vsel %vm2205_vm4, %v2199_v26, %v3831_v32  ;;  %v2395_v29 = vsel %vm2335_vm6, %v2330_v36, %v4642_v4  ;;  %v9717_v32 = vld [vmem:[#allocation128_spill] sm:$0xff]  ;;  %v4677_v45 = vunpack.i.h.bf16 %v8341_v39  ;;  %v4676_v22 = vunpack.i.l.bf16 %v8341_v39 }
 0x2fe   :  { %v4672_v58 = vunpack.i.h.bf16 %v4670_v2  ;;  %v4671_v16 = vunpack.i.l.bf16 %v4670_v2  ;;  %v4665_v60 = vpop.permute.xlu0 %4664  ;;  %v8425_v35 = vadd.f32 %v8115_v62, %v2944_v21  ;;  %v2329_v0 = vsel %vm2270_vm5, %v2264_v28, %v3991_v18  ;;  %v9718_v18 = vld [vmem:[#allocation12_spill] sm:$0xff] }
 0x2ff   :  { %v4667_v44 = vunpack.i.h.bf16 %v4665_v60  ;;  %v4666_v11 = vunpack.i.l.bf16 %v4665_v60  ;;  %v3722_v43 = vunpack.i.h.bf16 %v9717_v32  ;;  %v3721_v60 = vunpack.i.l.bf16 %v9717_v32 }
 0x300   :  { %v2618_v57 = vsel %vm2595_vm10, %v2553_v25, %v4671_v16  ;;  %v2619_v7 = vsel %vm2595_vm10, %v2554_v30, %v4672_v58  ;;  %v3026_v8 = vmax.f32 %v8425_v35, 0.0  ;;  %v2834_v2 = vpop.f32.mrf.mxu0  ;;  %v2394_v58 = vsel %vm2335_vm6, %v2329_v0, %v4641_v31  ;;  %v9719_v31 = vld [vmem:[#allocation64_spill] sm:$0xff] }
 0x301   :  { %v2671_v59 = vpack.c.bf16 %v2619_v7, %v2618_v57  ;;  %v2835_v42 = vadd.f32 %v8115_v62, %v2834_v2  ;;  %v2460_v16 = vsel %vm2400_vm7, %v2395_v29, %v4657_v47  ;;  %v2459_v12 = vsel %vm2400_vm7, %v2394_v58, %v4656_v33 }
 0x302   :  { %3090 = vst.msk [vmem:[%s9040_s5 + $0x1a0] sm:$0xff] %vm2595_vm10, %v3026_v8  ;;  %v2525_v25 = vsel %vm2465_vm8, %v2460_v16, %v4667_v44  ;;  %v3882_v4 = vunpack.i.h.bf16 %v9718_v18  ;;  %v3881_v21 = vunpack.i.l.bf16 %v9718_v18  ;;  %v2524_v57 = vsel %vm2465_vm8, %v2459_v12, %v4666_v11 }
 0x303   :  { %3475 = vmatmul.msk.bf16.gmra.mxu1 %vm2704_vm11, %v2671_v59  ;;  %v2982_v30 = vmax.f32 %v2835_v42, 0.0  ;;  %v4042_v47 = vunpack.i.h.bf16 %v9719_v31  ;;  %v4041_v39 = vunpack.i.l.bf16 %v9719_v31  ;;  %v2590_v28 = vsel %vm2530_vm9, %v2525_v25, %v4677_v45 }
 0x304   :  { %v2589_v2 = vsel %vm2530_vm9, %v2524_v57, %v4676_v22  ;;  %v2221_v0 = vsel %vm2205_vm4, %v8313_v46, %v3722_v43  ;;  %v2220_v29 = vsel %vm2205_vm4, %v2155_v3, %v3721_v60  ;;  %v4692_v46 = vunpack.i.h.bf16 %v8393_v61  ;;  %v8503_v57 = vpop.permute.xlu2 %4719 }
 0x305   :  { %v4685_v52 = vpop.permute.xlu1 %4684  ;;  %3046 = vst.msk [vmem:[%s9040_s5 + $0x40] sm:$0xff] %vm2595_vm10, %v2982_v30  ;;  %v3117_v59 = vsel %vm2595_vm10, %v2982_v30, 0.0  ;;  %v2946_v26 = vpop.f32.mrf.mxu3  ;;  %v2285_v58 = vsel %vm2270_vm5, %v2220_v29, %v3881_v21  ;;  %v2286_v45 = vsel %vm2270_vm5, %v2221_v0, %v3882_v4  ;;  %v4691_v3 = vunpack.i.l.bf16 %v8393_v61  ;;  %v9721_v29 = vld [vmem:[#allocation106_spill] sm:$0xff] }
 0x306   :  { %v4680_v7 = vpop.permute.xlu0 %4679  ;;  %v3118_v48 = vadd.f32 %v3117_v59, %v8276_v5  ;;  %v8477_v44 = vadd.f32 %v8115_v62, %v2946_v26  ;;  %v4687_v36 = vunpack.i.h.bf16 %v4685_v52  ;;  %v4686_v11 = vunpack.i.l.bf16 %v4685_v52 }
 0x307   :  { %v4682_v27 = vunpack.i.h.bf16 %v4680_v7  ;;  %v4681_v33 = vunpack.i.l.bf16 %v4680_v7  ;;  %v2350_v22 = vsel %vm2335_vm6, %v2285_v58, %v4041_v39  ;;  %v2351_v12 = vsel %vm2335_vm6, %v2286_v45, %v4042_v47  ;;  %v9722_v58 = vld [vmem:[#allocation107_spill] sm:$0xff] }
 0x308   :  { %v3027_v42 = vmax.f32 %v8477_v44, 0.0  ;;  %v2836_v5 = vpop.f32.mrf.mxu0  ;;  %v2415_v25 = vsel %vm2400_vm7, %v2350_v22, %v4686_v11  ;;  %v2416_v30 = vsel %vm2400_vm7, %v2351_v12, %v4687_v36  ;;  %v3747_v45 = vunpack.i.h.bf16 %v9722_v58 }
 0x309   :  { %v2655_v19 = vsel %vm2595_vm10, %v2590_v28, %v4682_v27  ;;  %v2654_v32 = vsel %vm2595_vm10, %v2589_v2, %v4681_v33  ;;  %v2837_v16 = vadd.f32 %v8115_v62, %v2836_v5  ;;  %v2480_v39 = vsel %vm2465_vm8, %v2415_v25, %v4691_v3  ;;  %v9720_v2 = vld [vmem:[#allocation50_spill] sm:$0xff] }
 0x30a   :  { %v2689_v52 = vpack.c.bf16 %v2655_v19, %v2654_v32  ;;  %3091 = vst.msk [vmem:[%s9040_s5 + $0x1a8] sm:$0xff] %vm2595_vm10, %v3027_v42  ;;  %v2481_v59 = vsel %vm2465_vm8, %v2416_v30, %v4692_v46  ;;  %v3587_v19 = vunpack.i.h.bf16 %v9720_v2  ;;  %v3677_v5 = vunpack.i.h.bf16 %v9721_v29  ;;  %v9724_v46 = vld [vmem:[#allocation136_spill] sm:$0xff] }
 0x30b   :  { %v2983_v60 = vmax.f32 %v2837_v16, 0.0  ;;  %v3676_v32 = vunpack.i.l.bf16 %v9721_v29  ;;  %v3746_v16 = vunpack.i.l.bf16 %v9722_v58  ;;  %v3907_v3 = vunpack.i.h.bf16 %v9724_v46  ;;  %v4929_v30 = vld [vmem:[%s9035_s0 + $0x128] sm:$0xff] }
 0x30c   :  { %3493 = vmatmul.msk.bf16.gmra.mxu3 %vm2704_vm11, %v2689_v52  ;;  %v9723_v52 = vld [vmem:[#allocation134_spill] sm:$0xff]  ;;  %v8529_v25 = vpop.permute.xlu2 %4734  ;;  %v3210_v10 = vsel %vm2595_vm10, %v3026_v8, 0.0  ;;  %v3212_v53 = vsel %vm2595_vm10, %v3027_v42, 0.0 }
 0x30d   :  { %v4700_v43 = vpop.permute.xlu1 %4699  ;;  %3047 = vst.msk [vmem:[%s9040_s5 + $0x48] sm:$0xff] %vm2595_vm10, %v2983_v60  ;;  %v3119_v61 = vsel %vm2595_vm10, %v2983_v60, 0.0  ;;  %v3837_v22 = vunpack.i.h.bf16 %v9723_v52  ;;  %v3836_v12 = vunpack.i.l.bf16 %v9723_v52  ;;  %v2166_v60 = vsel %vm2140_vm3, %v4929_v30, %v3587_v19 }
 0x30e   :  { %v4702_v18 = vunpack.i.h.bf16 %v4700_v43  ;;  %v4701_v4 = vunpack.i.l.bf16 %v4700_v43  ;;  %v4695_v21 = vpop.permute.xlu0 %4694  ;;  %v8510_v47 = vadd.f32 %v3119_v61, %v3118_v48  ;;  %v3586_v48 = vunpack.i.l.bf16 %v9720_v2 }
 0x30f   :  { %v4697_v7 = vunpack.i.h.bf16 %v4695_v21  ;;  %v4696_v31 = vunpack.i.l.bf16 %v4695_v21  ;;  %v3906_v43 = vunpack.i.l.bf16 %v9724_v46  ;;  %v9725_v21 = vld [vmem:[#allocation89_spill] sm:$0xff] }
 0x310   :  { %v3997_v61 = vunpack.i.h.bf16 %v9725_v21 }
 0x311   :  { %v2545_v27 = vsel %vm2530_vm9, %v2480_v39, %v4696_v31  ;;  %v2546_v26 = vsel %vm2530_vm9, %v2481_v59, %v4697_v7  ;;  %v3996_v7 = vunpack.i.l.bf16 %v9725_v21  ;;  %v4931_v31 = vld [vmem:[%s9035_s0 + $0x308] sm:$0xff]  ;;  %v4932_v59 = vld [vmem:[%s9035_s0 + $0x300] sm:$0xff] }
 0x312   :  { %v2610_v33 = vsel %vm2595_vm10, %v2545_v27, %v4701_v4  ;;  %v2611_v28 = vsel %vm2595_vm10, %v2546_v26, %v4702_v18  ;;  %v4930_v18 = vld [vmem:[%s9035_s0 + $0x120] sm:$0xff]  ;;  %v2202_v39 = vsel %vm2140_vm3, %v4931_v31, %v3677_v5  ;;  %v2201_v27 = vsel %vm2140_vm3, %v4932_v59, %v3676_v32 }
 0x313   :  { %v2667_v36 = vpack.c.bf16 %v2611_v28, %v2610_v33  ;;  %v2165_v4 = vsel %vm2140_vm3, %v4930_v18, %v3586_v48  ;;  %v4707_v26 = vunpack.i.h.bf16 %v8461_v63  ;;  %v4706_v33 = vunpack.i.l.bf16 %v8461_v63 }
 0x314   :  { %v2230_v28 = vsel %vm2205_vm4, %v2165_v4, %v3746_v16  ;;  %v2266_v2 = vsel %vm2205_vm4, %v2201_v27, %v3836_v12  ;;  %v2267_v19 = vsel %vm2205_vm4, %v2202_v39, %v3837_v22  ;;  %v4737_v4 = vunpack.i.h.bf16 %v8529_v25 }
 0x315   :  { %v4715_v11 = vpop.permute.xlu1 %4714  ;;  %3471 = vmatmul.msk.bf16.gmra.mxu0 %vm2704_vm11, %v2667_v36  ;;  %v2231_v36 = vsel %vm2205_vm4, %v2166_v60, %v3747_v45  ;;  %v2295_v29 = vsel %vm2270_vm5, %v2230_v28, %v3906_v43  ;;  %v2331_v32 = vsel %vm2270_vm5, %v2266_v2, %v3996_v7  ;;  %v2332_v46 = vsel %vm2270_vm5, %v2267_v19, %v3997_v61 }
 0x316   :  { %v4710_v0 = vpop.permute.xlu0 %4709  ;;  %v2296_v5 = vsel %vm2270_vm5, %v2231_v36, %v3907_v3  ;;  %v4716_v58 = vunpack.i.l.bf16 %v4715_v11  ;;  %v4717_v63 = vunpack.i.h.bf16 %v4715_v11  ;;  %v2360_v45 = vsel %vm2335_vm6, %v2295_v29, %v4706_v33 }
 0x317   :  { %v4711_v52 = vunpack.i.l.bf16 %v4710_v0  ;;  %v4712_v30 = vunpack.i.h.bf16 %v4710_v0  ;;  %v2361_v12 = vsel %vm2335_vm6, %v2296_v5, %v4707_v26  ;;  %v4722_v43 = vunpack.i.h.bf16 %v8503_v57  ;;  %v4750_v26 = vpop.permute.xlu2 %4749 }
 0x318   :  { %v4721_v3 = vunpack.i.l.bf16 %v8503_v57  ;;  %v4736_v11 = vunpack.i.l.bf16 %v8529_v25  ;;  %v2396_v0 = vsel %vm2335_vm6, %v2331_v32, %v4716_v58  ;;  %v2397_v39 = vsel %vm2335_vm6, %v2332_v46, %v4717_v63 }
 0x319   :  { %v2425_v61 = vsel %vm2400_vm7, %v2360_v45, %v4711_v52  ;;  %v2426_v59 = vsel %vm2400_vm7, %v2361_v12, %v4712_v30  ;;  %v4752_v25 = vunpack.i.h.bf16 %v4750_v26  ;;  %v4751_v2 = vunpack.i.l.bf16 %v4750_v26 }
 0x31a   :  { %v2490_v29 = vsel %vm2465_vm8, %v2425_v61, %v4721_v3  ;;  %v2491_v58 = vsel %vm2465_vm8, %v2426_v59, %v4722_v43 }
 0x31d   :  { %v4730_v48 = vpop.permute.xlu1 %4729 }
 0x31e   :  { %v4725_v16 = vpop.permute.xlu0 %4724  ;;  %v4731_v27 = vunpack.i.l.bf16 %v4730_v48  ;;  %v4732_v19 = vunpack.i.h.bf16 %v4730_v48 }
 0x31f   :  { %v4727_v60 = vunpack.i.h.bf16 %v4725_v16  ;;  %v4726_v22 = vunpack.i.l.bf16 %v4725_v16  ;;  %v2914_v21 = vpop.f32.mrf.mxu2 }
 0x320   :  { %v2859_v18 = vpop.f32.mrf.mxu1  ;;  %v2915_v31 = vadd.f32 %v8115_v62, %v2914_v21  ;;  %v2555_v46 = vsel %vm2530_vm9, %v2490_v29, %v4731_v27  ;;  %v2556_v3 = vsel %vm2530_vm9, %v2491_v58, %v4732_v19  ;;  %v9726_v29 = vld [vmem:[#allocation81_spill] sm:$0xff] }
 0x321   :  { %v8565_v7 = vadd.f32 %v8115_v62, %v2859_v18  ;;  %v2461_v33 = vsel %vm2400_vm7, %v2396_v0, %v4726_v22  ;;  %v2462_v28 = vsel %vm2400_vm7, %v2397_v39, %v4727_v60  ;;  %v3591_v58 = vunpack.i.l.bf16 %v9726_v29 }
 0x322   :  { %v3014_v36 = vmax.f32 %v2915_v31, 0.0  ;;  %v2526_v30 = vsel %vm2465_vm8, %v2461_v33, %v4736_v11  ;;  %v2527_v16 = vsel %vm2465_vm8, %v2462_v28, %v4737_v4 }
 0x323   :  { %v2992_v57 = vmax.f32 %v8565_v7, 0.0 }
 0x324   :  { %3078 = vst.msk [vmem:[%s9040_s5 + $0x140] sm:$0xff] %vm2595_vm10, %v3014_v36  ;;  %v3186_v52 = vsel %vm2595_vm10, %v3014_v36, 0.0 }
 0x325   :  { %3056 = vst.msk [vmem:[%s9040_s5 + $0x90] sm:$0xff] %vm2595_vm10, %v2992_v57  ;;  %v4745_v5 = vpop.permute.xlu1 %4744  ;;  %v3187_v63 = vadd.f32 %v3186_v52, %v8410_v34  ;;  %v3137_v50 = vsel %vm2595_vm10, %v2992_v57, 0.0 }
 0x326   :  { %v4747_v48 = vunpack.i.h.bf16 %v4745_v5  ;;  %v4746_v32 = vunpack.i.l.bf16 %v4745_v5  ;;  %v4740_v45 = vpop.permute.xlu0 %4739  ;;  %v3592_v5 = vunpack.i.h.bf16 %v9726_v29 }
 0x327   :  { %v4742_v22 = vunpack.i.h.bf16 %v4740_v45  ;;  %v4741_v18 = vunpack.i.l.bf16 %v4740_v45  ;;  %v2916_v21 = vpop.f32.mrf.mxu2 }
 0x328   :  { %v2591_v12 = vsel %vm2530_vm9, %v2526_v30, %v4746_v32  ;;  %v2592_v60 = vsel %vm2530_vm9, %v2527_v16, %v4747_v48  ;;  %v2861_v43 = vpop.f32.mrf.mxu1  ;;  %v2917_v4 = vadd.f32 %v8115_v62, %v2916_v21  ;;  %v9727_v48 = vld [vmem:[#allocation132_spill] sm:$0xff]  ;;  %v9728_v30 = vld [vmem:[#allocation30_spill] sm:$0xff] }
 0x329   :  { %v8597_v0 = vadd.f32 %v8115_v62, %v2861_v43  ;;  %v2656_v34 = vsel %vm2595_vm10, %v2591_v12, %v4751_v2  ;;  %v2657_v11 = vsel %vm2595_vm10, %v2592_v60, %v4752_v25  ;;  %v2620_v61 = vsel %vm2595_vm10, %v2555_v46, %v4741_v18  ;;  %v8620_v2 = vpop.permute.xlu2 %4764  ;;  %v4933_v43 = vld [vmem:[%s9035_s0 + $0x140] sm:$0xff]  ;;  %v4934_v21 = vld [vmem:[%s9035_s0 + $0x138] sm:$0xff] }
 0x32a   :  { %v2621_v31 = vsel %vm2595_vm10, %v2556_v3, %v4742_v22  ;;  %v2690_v39 = vpack.c.bf16 %v2657_v11, %v2656_v34  ;;  %v3015_v26 = vmax.f32 %v2917_v4, 0.0  ;;  %v3752_v32 = vunpack.i.h.bf16 %v9727_v48  ;;  %v9729_v4 = vld [vmem:[#allocation105_spill] sm:$0xff] }
 0x32b   :  { %v2993_v59 = vmax.f32 %v8597_v0, 0.0  ;;  %v2672_v27 = vpack.c.bf16 %v2621_v31, %v2620_v61  ;;  %v3751_v46 = vunpack.i.l.bf16 %v9727_v48  ;;  %v3912_v16 = vunpack.i.h.bf16 %v9728_v30 }
 0x32c   :  { %3494 = vmatmul.msk.bf16.gmra.mxu3 %vm2704_vm11, %v2690_v39  ;;  %3079 = vst.msk [vmem:[%s9040_s5 + $0x148] sm:$0xff] %vm2595_vm10, %v3015_v26  ;;  %v3188_v28 = vsel %vm2595_vm10, %v3015_v26, 0.0  ;;  %v2168_v3 = vsel %vm2140_vm3, %v4933_v43, %v3592_v5  ;;  %v2167_v34 = vsel %vm2140_vm3, %v4934_v21, %v3591_v58  ;;  %v3682_v61 = vunpack.i.h.bf16 %v9729_v4 }
 0x32d   :  { %3057 = vst.msk [vmem:[%s9040_s5 + $0x98] sm:$0xff] %vm2595_vm10, %v2993_v59  ;;  %3476 = vmatmul.msk.bf16.gmra.mxu1 %vm2704_vm11, %v2672_v27  ;;  %v4760_v33 = vpop.permute.xlu1 %4759  ;;  %v8618_v36 = vadd.f32 %v3188_v28, %v3187_v63  ;;  %v2949_v19 = vpop.f32.mrf.mxu3  ;;  %v3911_v63 = vunpack.i.l.bf16 %v9728_v30  ;;  %v2233_v31 = vsel %vm2205_vm4, %v2168_v3, %v3752_v32  ;;  %v2232_v39 = vsel %vm2205_vm4, %v2167_v34, %v3751_v46 }
 0x32e   :  { %v4755_v25 = vpop.permute.xlu0 %4754  ;;  %v8625_v52 = vadd.f32 %v8115_v62, %v2949_v19  ;;  %v3681_v26 = vunpack.i.l.bf16 %v9729_v4  ;;  %v4761_v19 = vunpack.i.l.bf16 %v4760_v33  ;;  %v4762_v5 = vunpack.i.h.bf16 %v4760_v33  ;;  %v9730_v33 = vld [vmem:[#allocation14_spill] sm:$0xff] }
 0x32f   :  { %v4757_v60 = vunpack.i.h.bf16 %v4755_v25  ;;  %v4756_v22 = vunpack.i.l.bf16 %v4755_v25  ;;  %v2297_v28 = vsel %vm2270_vm5, %v2232_v39, %v3911_v63  ;;  %v2298_v25 = vsel %vm2270_vm5, %v2233_v31, %v3912_v16  ;;  %v4935_v39 = vld [vmem:[%s9035_s0 + $0x320] sm:$0xff] }
 0x330   :  { %v3028_v45 = vmax.f32 %v8625_v52, 0.0  ;;  %v2839_v12 = vpop.f32.mrf.mxu0  ;;  %v3133_v52 = vsel %vm2595_vm10, %v2990_v54, 0.0 }
 0x331   :  { %v2840_v18 = vadd.f32 %v8115_v62, %v2839_v12  ;;  %v2362_v58 = vsel %vm2335_vm6, %v2297_v28, %v4756_v22  ;;  %v2363_v48 = vsel %vm2335_vm6, %v2298_v25, %v4757_v60  ;;  %v4780_v46 = vpop.permute.xlu2 %4779  ;;  %v3842_v22 = vunpack.i.h.bf16 %v9730_v33  ;;  %v4936_v28 = vld [vmem:[%s9035_s0 + $0x318] sm:$0xff] }
 0x332   :  { %3092 = vst.msk [vmem:[%s9040_s5 + $0x1b0] sm:$0xff] %vm2595_vm10, %v3028_v45  ;;  %v2427_v60 = vsel %vm2400_vm7, %v2362_v58, %v4761_v19  ;;  %v4781_v43 = vunpack.i.l.bf16 %v4780_v46  ;;  %v2428_v34 = vsel %vm2400_vm7, %v2363_v48, %v4762_v5  ;;  %v4782_v31 = vunpack.i.h.bf16 %v4780_v46 }
 0x333   :  { %v2984_v27 = vmax.f32 %v2840_v18, 0.0  ;;  %v2203_v25 = vsel %vm2140_vm3, %v4936_v28, %v3681_v26  ;;  %v3841_v19 = vunpack.i.l.bf16 %v9730_v33  ;;  %v4766_v33 = vunpack.i.l.bf16 %v8620_v2 }
 0x334   :  { %v3214_v8 = vsel %vm2595_vm10, %v3028_v45, 0.0 }
 0x335   :  { %v8647_v11 = vpop.permute.xlu1 %4774  ;;  %3048 = vst.msk [vmem:[%s9040_s5 + $0x50] sm:$0xff] %vm2595_vm10, %v2984_v27  ;;  %v3121_v32 = vsel %vm2595_vm10, %v2984_v27, 0.0  ;;  %v2951_v30 = vpop.f32.mrf.mxu3  ;;  %v2204_v27 = vsel %vm2140_vm3, %v4935_v39, %v3682_v61 }
 0x336   :  { %v4770_v29 = vpop.permute.xlu0 %4769  ;;  %v3122_v63 = vadd.f32 %v3121_v32, %v8510_v47  ;;  %v8664_v18 = vadd.f32 %v8115_v62, %v2951_v30  ;;  %v2269_v61 = vsel %vm2205_vm4, %v2204_v27, %v3842_v22  ;;  %v9731_v32 = vld [vmem:[#allocation65_spill] sm:$0xff]  ;;  %v4767_v30 = vunpack.i.h.bf16 %v8620_v2 }
 0x337   :  { %v4772_v12 = vunpack.i.h.bf16 %v4770_v29  ;;  %v4771_v16 = vunpack.i.l.bf16 %v4770_v29  ;;  %v4002_v46 = vunpack.i.h.bf16 %v9731_v32  ;;  %v4001_v26 = vunpack.i.l.bf16 %v9731_v32 }
 0x338   :  { %v3029_v3 = vmax.f32 %v8664_v18, 0.0  ;;  %v2841_v21 = vpop.f32.mrf.mxu0  ;;  %v2268_v2 = vsel %vm2205_vm4, %v2203_v25, %v3841_v19 }
 0x339   :  { %v2492_v4 = vsel %vm2465_vm8, %v2427_v60, %v4771_v16  ;;  %v2842_v47 = vadd.f32 %v8115_v62, %v2841_v21  ;;  %v2493_v29 = vsel %vm2465_vm8, %v2428_v34, %v4772_v12  ;;  %v4777_v34 = vunpack.i.h.bf16 %v8647_v11  ;;  %v4795_v27 = vpop.permute.xlu2 %4794 }
 0x33a   :  { %3093 = vst.msk [vmem:[%s9040_s5 + $0x1b8] sm:$0xff] %vm2595_vm10, %v3029_v3  ;;  %v2557_v12 = vsel %vm2530_vm9, %v2492_v4, %v4781_v43  ;;  %v2558_v60 = vsel %vm2530_vm9, %v2493_v29, %v4782_v31  ;;  %v2333_v29 = vsel %vm2270_vm5, %v2268_v2, %v4001_v26  ;;  %v4796_v25 = vunpack.i.l.bf16 %v4795_v27 }
 0x33b   :  { %v2985_v5 = vmax.f32 %v2842_v47, 0.0  ;;  %v4776_v47 = vunpack.i.l.bf16 %v8647_v11 }
 0x33d   :  { %v4790_v62 = vpop.permute.xlu1 %4789  ;;  %3049 = vst.msk [vmem:[%s9040_s5 + $0x58] sm:$0xff] %vm2595_vm10, %v2985_v5  ;;  %v3123_v22 = vsel %vm2595_vm10, %v2985_v5, 0.0  ;;  %v2398_v5 = vsel %vm2335_vm6, %v2333_v29, %v4766_v33 }
 0x33e   :  { %v4792_v58 = vunpack.i.h.bf16 %v4790_v62  ;;  %v4791_v48 = vunpack.i.l.bf16 %v4790_v62  ;;  %v4785_v16 = vpop.permute.xlu0 %4784  ;;  %v3124_v39 = vadd.f32 %v3123_v22, %v3122_v63  ;;  %v2334_v62 = vsel %vm2270_vm5, %v2269_v61, %v4002_v46 }
 0x33f   :  { %v4787_v4 = vunpack.i.h.bf16 %v4785_v16  ;;  %v4786_v31 = vunpack.i.l.bf16 %v4785_v16  ;;  %v2463_v11 = vsel %vm2400_vm7, %v2398_v5, %v4776_v47 }
 0x340   :  { %v2622_v21 = vsel %vm2595_vm10, %v2557_v12, %v4791_v48  ;;  %v2623_v43 = vsel %vm2595_vm10, %v2558_v60, %v4792_v58  ;;  %v2399_v48 = vsel %vm2335_vm6, %v2334_v62, %v4767_v30  ;;  %v4797_v58 = vunpack.i.h.bf16 %v4795_v27 }
 0x341   :  { %v2673_v28 = vpack.c.bf16 %v2623_v43, %v2622_v21  ;;  %v2464_v63 = vsel %vm2400_vm7, %v2399_v48, %v4777_v34  ;;  %v2528_v19 = vsel %vm2465_vm8, %v2463_v11, %v4786_v31  ;;  %v8722_v34 = vld [vmem:[%s9037_s2] ss:$0 sm:$0xff] }
 0x342   :  { %v2529_v32 = vsel %vm2465_vm8, %v2464_v63, %v4787_v4  ;;  %v2593_v61 = vsel %vm2530_vm9, %v2528_v19, %v4796_v25 }
 0x343   :  { %3477 = vmatmul.msk.bf16.gmra.mxu1 %vm2704_vm11, %v2673_v28  ;;  %v2594_v46 = vsel %vm2530_vm9, %v2529_v32, %v4797_v58 }
 0x346   :  { %v4800_v12 = vpop.permute.xlu0 %4799 }
 0x347   :  { %v4802_v26 = vunpack.i.h.bf16 %v4800_v12  ;;  %v4801_v16 = vunpack.i.l.bf16 %v4800_v12 }
 0x349   :  { %v2658_v30 = vsel %vm2595_vm10, %v2593_v61, %v4801_v16  ;;  %v2659_v33 = vsel %vm2595_vm10, %v2594_v46, %v4802_v26 }
 0x34a   :  { %v2691_v60 = vpack.c.bf16 %v2659_v33, %v2658_v30 }
 0x34c   :  { %3495 = vmatmul.msk.bf16.gmra.mxu3 %vm2704_vm11, %v2691_v60 }
 0x34d   :  { %v2919_v22 = vpop.f32.mrf.mxu2 }
 0x34e   :  { %v2920_v47 = vadd.f32 %v8722_v34, %v2919_v22 }
 0x350   :  { %v2864_v21 = vpop.f32.mrf.mxu1  ;;  %v3016_v2 = vmax.f32 %v2920_v47, 0.0 }
 0x351   :  { %v8726_v43 = vadd.f32 %v8722_v34, %v2864_v21 }
 0x352   :  { %3080 = vst.msk [vmem:[%s9040_s5 + $0x150] sm:$0xff] %vm2595_vm10, %v3016_v2  ;;  %v3190_v31 = vsel %vm2595_vm10, %v3016_v2, 0.0  ;;  %v3252_v2 = vld [vmem:[%s9038_s3 + $0x18] sm:$0xff] }
 0x353   :  { %v2994_v4 = vmax.f32 %v8726_v43, 0.0  ;;  %v3191_v27 = vadd.f32 %v3190_v31, %v8618_v36  ;;  %3275 = vmatpush.msrb.mxu1 %v3252_v2  ;;  %v3200_v2 = vsel %vm2595_vm10, %v3021_v13, 0.0 }
 0x355   :  { %3058 = vst.msk [vmem:[%s9040_s5 + $0xa0] sm:$0xff] %vm2595_vm10, %v2994_v4  ;;  %v2921_v28 = vpop.f32.mrf.mxu2  ;;  %v3141_v6 = vsel %vm2595_vm10, %v2994_v4, 0.0 }
 0x356   :  { %v2922_v62 = vadd.f32 %v8722_v34, %v2921_v28 }
 0x358   :  { %v2866_v29 = vpop.f32.mrf.mxu1  ;;  %v3017_v48 = vmax.f32 %v2922_v62, 0.0 }
 0x359   :  { %v8743_v5 = vadd.f32 %v8722_v34, %v2866_v29 }
 0x35a   :  { %3081 = vst.msk [vmem:[%s9040_s5 + $0x158] sm:$0xff] %vm2595_vm10, %v3017_v48  ;;  %v3192_v36 = vsel %vm2595_vm10, %v3017_v48, 0.0 }
 0x35b   :  { %v2995_v11 = vmax.f32 %v8743_v5, 0.0  ;;  %v3193_v63 = vadd.f32 %v3192_v36, %v3191_v27 }
 0x35d   :  { %3059 = vst.msk [vmem:[%s9040_s5 + $0xa8] sm:$0xff] %vm2595_vm10, %v2995_v11  ;;  %v2954_v58 = vpop.f32.mrf.mxu3  ;;  %v3143_v7 = vsel %vm2595_vm10, %v2995_v11, 0.0 }
 0x35e   :  { %v8758_v25 = vadd.f32 %v8722_v34, %v2954_v58 }
 0x360   :  { %v2844_v19 = vpop.f32.mrf.mxu0  ;;  %v3030_v32 = vmax.f32 %v8758_v25, 0.0  ;;  %v3139_v25 = vsel %vm2595_vm10, %v2993_v59, 0.0 }
 0x361   :  { %v2845_v12 = vadd.f32 %v8722_v34, %v2844_v19 }
 0x362   :  { %3094 = vst.msk [vmem:[%s9040_s5 + $0x1c0] sm:$0xff] %vm2595_vm10, %v3030_v32  ;;  %v3218_v45 = vsel %vm2595_vm10, %v3030_v32, 0.0 }
 0x363   :  { %v2986_v26 = vmax.f32 %v2845_v12, 0.0 }
 0x365   :  { %3050 = vst.msk [vmem:[%s9040_s5 + $0x60] sm:$0xff] %vm2595_vm10, %v2986_v26  ;;  %v3125_v16 = vsel %vm2595_vm10, %v2986_v26, 0.0  ;;  %v2956_v46 = vpop.f32.mrf.mxu3 }
 0x366   :  { %v3126_v61 = vadd.f32 %v3125_v16, %v3124_v39  ;;  %v8774_v30 = vadd.f32 %v8722_v34, %v2956_v46  ;;  %v3251_v16 = vld [vmem:[%s9038_s3 + $0x10] sm:$0xff] }
 0x367   :  { %3276 = vmatpush.msrb.mxu1 %v3251_v16 }
 0x368   :  { %v2846_v33 = vpop.f32.mrf.mxu0  ;;  %v3031_v60 = vmax.f32 %v8774_v30, 0.0 }
 0x369   :  { %v2847_v22 = vadd.f32 %v8722_v34, %v2846_v33  ;;  %3277 = vmatpush.msrb.mxu1 %v3250_v15 }
 0x36a   :  { %3095 = vst.msk [vmem:[%s9040_s5 + $0x1c8] sm:$0xff] %vm2595_vm10, %v3031_v60  ;;  %v3220_v18 = vsel %vm2595_vm10, %v3031_v60, 0.0 }
 0x36b   :  { %v2987_v21 = vmax.f32 %v2847_v22, 0.0 }
 0x36d   :  { %3051 = vst.msk [vmem:[%s9040_s5 + $0x68] sm:$0xff] %vm2595_vm10, %v2987_v21  ;;  %v3127_v39 = vsel %vm2595_vm10, %v2987_v21, 0.0 }
 0x36e   :  { %v3128_v47 = vadd.f32 %v3127_v39, %v3126_v61  ;;  %v3198_v39 = vsel %vm2595_vm10, %v3020_v55, 0.0 }
 0x37f   :  { %v2924_v31 = vpop.f32.mrf.mxu2 }
 0x380   :  { %v2869_v27 = vpop.f32.mrf.mxu1  ;;  %v2925_v28 = vadd.f32 %v8722_v34, %v2924_v31 }
 0x381   :  { %v8794_v29 = vadd.f32 %v8722_v34, %v2869_v27 }
 0x382   :  { %v3018_v62 = vmax.f32 %v2925_v28, 0.0 }
 0x383   :  { %v2996_v48 = vmax.f32 %v8794_v29, 0.0 }
 0x384   :  { %3082 = vst.msk [vmem:[%s9040_s5 + $0x160] sm:$0xff] %vm2595_vm10, %v3018_v62  ;;  %v3194_v19 = vsel %vm2595_vm10, %v3018_v62, 0.0  ;;  %v3202_v62 = vsel %vm2595_vm10, %v3022_v40, 0.0  ;;  %v3206_v40 = vsel %vm2595_vm10, %v3024_v41, 0.0 }
 0x385   :  { %3060 = vst.msk [vmem:[%s9040_s5 + $0xb0] sm:$0xff] %vm2595_vm10, %v2996_v48  ;;  %v3195_v33 = vadd.f32 %v3194_v19, %v3193_v63  ;;  %v3145_v0 = vsel %vm2595_vm10, %v2996_v48, 0.0 }
 0x387   :  { %v2926_v36 = vpop.f32.mrf.mxu2 }
 0x388   :  { %v2871_v58 = vpop.f32.mrf.mxu1  ;;  %v2927_v12 = vadd.f32 %v8722_v34, %v2926_v36 }
 0x389   :  { %v8810_v26 = vadd.f32 %v8722_v34, %v2871_v58 }
 0x38a   :  { %v3019_v61 = vmax.f32 %v2927_v12, 0.0 }
 0x38b   :  { %v2997_v46 = vmax.f32 %v8810_v26, 0.0 }
 0x38c   :  { %3083 = vst.msk [vmem:[%s9040_s5 + $0x168] sm:$0xff] %vm2595_vm10, %v3019_v61  ;;  %v3196_v22 = vsel %vm2595_vm10, %v3019_v61, 0.0 }
 0x38d   :  { %v3197_v21 = vadd.f32 %v3196_v22, %v3195_v33  ;;  %3061 = vst.msk [vmem:[%s9040_s5 + $0xb8] sm:$0xff] %vm2595_vm10, %v2997_v46  ;;  %v3147_v4 = vsel %vm2595_vm10, %v2997_v46, 0.0 }
 0x38f   :  { %v3199_v63 = vadd.f32 %v3198_v39, %v3197_v21  ;;  %v2959_v31 = vpop.f32.mrf.mxu3 }
 0x390   :  { %v8834_v28 = vadd.f32 %v8722_v34, %v2959_v31 }
 0x391   :  { %v3201_v27 = vadd.f32 %v3200_v2, %v3199_v63  ;;  %v3216_v2 = vsel %vm2595_vm10, %v3029_v3, 0.0 }
 0x392   :  { %v2849_v36 = vpop.f32.mrf.mxu0  ;;  %v3032_v24 = vmax.f32 %v8834_v28, 0.0 }
 0x393   :  { %v3203_v58 = vadd.f32 %v3202_v62, %v3201_v27  ;;  %v2850_v55 = vadd.f32 %v8722_v34, %v2849_v36  ;;  %v3135_v62 = vsel %vm2595_vm10, %v2991_v23, 0.0 }
 0x394   :  { %3096 = vst.msk [vmem:[%s9040_s5 + $0x1d0] sm:$0xff] %vm2595_vm10, %v3032_v24 }
 0x395   :  { %v3205_v13 = vadd.f32 %v3204_v1, %v3203_v58  ;;  %v2988_v37 = vmax.f32 %v2850_v55, 0.0 }
 0x397   :  { %v3207_v19 = vadd.f32 %v3206_v40, %v3205_v13  ;;  %3052 = vst.msk [vmem:[%s9040_s5 + $0x70] sm:$0xff] %vm2595_vm10, %v2988_v37  ;;  %v2961_v38 = vpop.f32.mrf.mxu3  ;;  %v3129_v33 = vsel %vm2595_vm10, %v2988_v37, 0.0  ;;  %v3249_v37 = vld [vmem:[%s9038_s3] sm:$0xff] }
 0x398   :  { %v8861_v16 = vadd.f32 %v8722_v34, %v2961_v38  ;;  %v3130_v44 = vadd.f32 %v3129_v33, %v3128_v47  ;;  %3278 = vmatpush.msrb.mxu1 %v3249_v37 }
 0x399   :  { %v3209_v12 = vadd.f32 %v3208_v14, %v3207_v19 }
 0x39a   :  { %v2851_v41 = vpop.f32.mrf.mxu0  ;;  %v3033_v22 = vmax.f32 %v8861_v16, 0.0 }
 0x39b   :  { %v3211_v61 = vadd.f32 %v3210_v10, %v3209_v12  ;;  %v2852_v21 = vadd.f32 %v8722_v34, %v2851_v41 }
 0x39c   :  { %3097 = vst.msk [vmem:[%s9040_s5 + $0x1d8] sm:$0xff] %vm2595_vm10, %v3033_v22  ;;  %v3224_v28 = vsel %vm2595_vm10, %v3033_v22, 0.0 }
 0x39d   :  { %v3213_v39 = vadd.f32 %v3212_v53, %v3211_v61  ;;  %v2989_v35 = vmax.f32 %v2852_v21, 0.0 }
 0x39f   :  { %v3215_v42 = vadd.f32 %v3214_v8, %v3213_v39  ;;  %3053 = vst.msk [vmem:[%s9040_s5 + $0x78] sm:$0xff] %vm2595_vm10, %v2989_v35  ;;  %v3131_v63 = vsel %vm2595_vm10, %v2989_v35, 0.0 }
 0x3a0   :  { %v3132_v31 = vadd.f32 %v3131_v63, %v3130_v44  ;;  %v3157_v44 = vsel %vm2595_vm10, %v3002_v56, 0.0  ;;  %v4998_v63 = vmov 256.0   ;;  %v3161_v56 = vsel %vm2595_vm10, %v9732_v49, 0.0 }
 0x3a1   :  { %v3217_v27 = vadd.f32 %v3216_v2, %v3215_v42  ;;  %4806 = vrcp.f32 %v4998_v63  ;;  %v3222_v2 = vsel %vm2595_vm10, %v3032_v24, 0.0 }
 0x3a2   :  { %v3134_v47 = vadd.f32 %v3133_v52, %v3132_v31 }
 0x3a3   :  { %v3219_v36 = vadd.f32 %v3218_v45, %v3217_v27  ;;  %v3159_v27 = vsel %vm2595_vm10, %v3003_v20, 0.0  ;;  %v9733_v20 = vmax.f32 %v7527_v51, 0.0 }
 0x3a4   :  { %v3136_v3 = vadd.f32 %v3135_v62, %v3134_v47 }
 0x3a5   :  { %v3221_v54 = vadd.f32 %v3220_v18, %v3219_v36  ;;  %v3163_v18 = vsel %vm2595_vm10, %v9733_v20, 0.0  ;;  %v5001_v20 = vmov 15  }
 0x3a6   :  { %v3138_v58 = vadd.f32 %v3137_v50, %v3136_v3  ;;  %4803 = vset.pattern.permute.xlu0 %v5001_v20 }
 0x3a7   :  { %v3223_v45 = vadd.f32 %v3222_v2, %v3221_v54  ;;  %v4807_v9 = vpop.eup %4806 }
 0x3a8   :  { %v3140_v32 = vadd.f32 %v3139_v25, %v3138_v58  ;;  %vm3245_vm12 = vweird.f32 %v4807_v9 }
 0x3a9   :  { %v3225_v17 = vadd.f32 %v3224_v28, %v3223_v45 }
 0x3aa   :  { %v2874_v23 = vpop.f32.mrf.mxu1  ;;  %v3142_v60 = vadd.f32 %v3141_v6, %v3140_v32  ;;  %v3241_v32 = vmul.f32 256.0, %v4807_v9 }
 0x3ab   :  { %v2875_v30 = vadd.f32 %v8722_v34, %v2874_v23 }
 0x3ac   :  { %v3144_v55 = vadd.f32 %v3143_v7, %v3142_v60 }
 0x3ad   :  { %v2998_v57 = vmax.f32 %v2875_v30, 0.0 }
 0x3ae   :  { %v3146_v59 = vadd.f32 %v3145_v0, %v3144_v55 }
 0x3af   :  { %3062 = vst.msk [vmem:[%s9040_s5 + $0xc0] sm:$0xff] %vm2595_vm10, %v2998_v57  ;;  %v2964_v43 = vpop.f32.mrf.mxu3  ;;  %v3149_v12 = vsel %vm2595_vm10, %v2998_v57, 0.0  ;;  %v3242_v57 = vsub.f32 1.0, %v3241_v32 }
 0x3b0   :  { %v2965_v5 = vadd.f32 %v8722_v34, %v2964_v43  ;;  %v3148_v11 = vadd.f32 %v3147_v4, %v3146_v59 }
 0x3b1   :  { %v3243_v43 = vmul.f32 %v4807_v9, %v3242_v57 }
 0x3b2   :  { %v3034_v1 = vmax.f32 %v2965_v5, 0.0  ;;  %v2876_v13 = vpop.f32.mrf.mxu1  ;;  %v3150_v41 = vadd.f32 %v3149_v12, %v3148_v11 }
 0x3b3   :  { %v2877_v29 = vadd.f32 %v8722_v34, %v2876_v13  ;;  %v3244_v11 = vadd.f32 %v4807_v9, %v3243_v43 }
 0x3b4   :  { %3098 = vst.msk [vmem:[%s9040_s5 + $0x1e0] sm:$0xff] %vm2595_vm10, %v3034_v1  ;;  %v3226_v24 = vsel %vm2595_vm10, %v3034_v1, 0.0 }
 0x3b5   :  { %v2999_v48 = vmax.f32 %v2877_v29, 0.0  ;;  %v3227_v16 = vadd.f32 %v3226_v24, %v3225_v17 }
 0x3b7   :  { %3063 = vst.msk [vmem:[%s9040_s5 + $0xc8] sm:$0xff] %vm2595_vm10, %v2999_v48  ;;  %v2966_v26 = vpop.f32.mrf.mxu3  ;;  %v3151_v10 = vsel %vm2595_vm10, %v2999_v48, 0.0  ;;  %v3246_v48 = vsel %vm3245_vm12, %v4807_v9, %v3244_v11 }
 0x3b8   :  { %v2967_v46 = vadd.f32 %v8722_v34, %v2966_v26  ;;  %v3152_v53 = vadd.f32 %v3151_v10, %v3150_v41 }
 0x3ba   :  { %v3035_v40 = vmax.f32 %v2967_v46, 0.0 }
 0x3bc   :  { %3099 = vst.msk [vmem:[%s9040_s5 + $0x1e8] sm:$0xff] %vm2595_vm10, %v3035_v40  ;;  %v3228_v3 = vsel %vm2595_vm10, %v3035_v40, 0.0 }
 0x3bd   :  { %v3229_v6 = vadd.f32 %v3228_v3, %v3227_v16 }
 0x3c0   :  { %v2879_v19 = vpop.f32.mrf.mxu1 }
 0x3c1   :  { %v2880_v14 = vadd.f32 %v8722_v34, %v2879_v19  ;;  %v4805_v19 = vld [vmem:[%s9039_s4] ss:$0 sm:$0xff]  ;;  %s4999_s4 = smov 2  }
 0x3c3   :  { %v3000_v38 = vmax.f32 %v2880_v14, 0.0  ;;  %v3302_v14 = vlaneseq }
 0x3c5   :  { %3064 = vst.msk [vmem:[%s9040_s5 + $0xd0] sm:$0xff] %vm2595_vm10, %v3000_v38  ;;  %v3153_v33 = vsel %vm2595_vm10, %v3000_v38, 0.0  ;;  %v8995_v10 = vand.u32 127, %v3302_v14 }
 0x3c6   :  { %v3154_v39 = vadd.f32 %v3153_v33, %v3152_v53 }
 0x3c7   :  { %3310 = vrot.lane.b32.xlu2 %v8995_v10, %s4991_s17 }
 0x3c8   :  { %v2881_v61 = vpop.f32.mrf.mxu1 }
 0x3c9   :  { %v2882_v21 = vadd.f32 %v8722_v34, %v2881_v61 }
 0x3cb   :  { %v3001_v15 = vmax.f32 %v2882_v21, 0.0 }
 0x3cd   :  { %3065 = vst.msk [vmem:[%s9040_s5 + $0xd8] sm:$0xff] %vm2595_vm10, %v3001_v15  ;;  %v3155_v35 = vsel %vm2595_vm10, %v3001_v15, 0.0 }
 0x3ce   :  { %v3156_v8 = vadd.f32 %v3155_v35, %v3154_v39 }
 0x3cf   :  { %v2969_v42 = vpop.f32.mrf.mxu3 }
 0x3d0   :  { %v3158_v31 = vadd.f32 %v3157_v44, %v3156_v8  ;;  %v2970_v52 = vadd.f32 %v8722_v34, %v2969_v42 }
 0x3d2   :  { %v3160_v47 = vadd.f32 %v3159_v27, %v3158_v31  ;;  %v3036_v62 = vmax.f32 %v2970_v52, 0.0 }
 0x3d4   :  { %v3162_v36 = vadd.f32 %v3161_v56, %v3160_v47  ;;  %3100 = vst.msk [vmem:[%s9040_s5 + $0x1f0] sm:$0xff] %vm2595_vm10, %v3036_v62  ;;  %v3230_v58 = vsel %vm2595_vm10, %v3036_v62, 0.0 }
 0x3d5   :  { %v3231_v60 = vadd.f32 %v3230_v58, %v3229_v6 }
 0x3d6   :  { %v3164_v50 = vadd.f32 %v3163_v18, %v3162_v36 }
 0x3d7   :  { %v2971_v54 = vpop.f32.mrf.mxu3 }
 0x3d8   :  { %v3165_v22 = vrot.slane %v3164_v50, 4  ;;  %v2972_v25 = vadd.f32 %v8722_v34, %v2971_v54 }
 0x3da   :  { %v3037_v23 = vmax.f32 %v2972_v25, 0.0  ;;  %v3166_v30 = vadd.f32 %v3165_v22, %v3164_v50 }
 0x3dc   :  { %3101 = vst.msk [vmem:[%s9040_s5 + $0x1f8] sm:$0xff] %vm2595_vm10, %v3037_v23  ;;  %v3232_v51 = vsel %vm2595_vm10, %v3037_v23, 0.0  ;;  %v3167_v7 = vrot.slane %v3166_v30, 2 }
 0x3dd   :  { %v3233_v55 = vadd.f32 %v3232_v51, %v3231_v60 }
 0x3de   :  { %v3168_v59 = vadd.f32 %v3167_v7, %v3166_v30 }
 0x3df   :  { %v3234_v0 = vrot.slane %v3233_v55, 4 }
 0x3e0   :  { %v3169_v5 = vrot.slane %v3168_v59, 1 }
 0x3e1   :  { %v3235_v4 = vadd.f32 %v3234_v0, %v3233_v55 }
 0x3e2   :  { %v3170_v29 = vadd.f32 %v3169_v5, %v3168_v59 }
 0x3e3   :  { %v3236_v34 = vrot.slane %v3235_v4, 2 }
 0x3e4   :  { %v3247_v46 = vmul.f32 %v3246_v48, %v3170_v29 }
 0x3e5   :  { %v3237_v1 = vadd.f32 %v3236_v34, %v3235_v4 }
 0x3e7   :  { %v3238_v13 = vrot.slane %v3237_v1, 1 }
 0x3e9   :  { %v3239_v26 = vadd.f32 %v3238_v13, %v3237_v1 }
 0x3eb   :  { %v3248_v37 = vmul.f32 %v3246_v48, %v3239_v26 }
 0x3ed   :  { %v3260_v40 = vsel %vm3259_vm13, %v3248_v37, %v3247_v46 }
 0x3ee   :  { %3496 = vmatmul.msk.f32.vlgmr.msrb.gmra.mxu1 %vm2595_vm10, %v3260_v40 }
 0x421   :  { %v3311_v31 = vpop.permute.xlu2 %3310 }
 0x422   :  { %vm3312_vm2 = vcmp.lt.s32.totalorder %v8995_v10, %v3311_v31 }
 0x46b   :  { %v3280_v38 = vpop.f32.mrf.mxu1 }
 0x46c   :  { %v3281_v12 = vadd.f32 %v4805_v19, %v3280_v38 }
 0x46e   :  { %v3497_v41 = vmul.f32 -1.442695, %v3281_v12 }
 0x470   :  { %4808 = vpow2.f32 %v3497_v41 }
 0x476   :  { %v4809_v61 = vpop.eup %4808 }
 0x477   :  { %v3286_v33 = vadd.f32 1.0, %v4809_v61 }
 0x479   :  { %4810 = vrcp.f32 %v3286_v33  ;;  %v3298_v39 = vand.u32 2147483648, %v3286_v33  ;;  %v3296_v8 = vand.u32 2147483647, %v3286_v33  ;;  %vm3292_vm15 = vweird.f32 %v3286_v33 }
 0x47b   :  { %v3299_v42 = vor.u32 1.1754944e-38, %v3298_v39  ;;  %vm3297_vm1 = vcmp.eq.f32.partialorder %v3296_v8, 8.507059e+37 }
 0x47f   :  { %v4811_v21 = vpop.eup %4810 }
 0x480   :  { %v3288_v53 = vmul.f32 %v4811_v21, %v3286_v33  ;;  %vm3293_vm14 = vweird.f32 %v4811_v21 }
 0x481   :  { %vm3294_vm0 = vmor %vm3292_vm15, %vm3293_vm14 }
 0x482   :  { %v3289_v15 = vsub.f32 1.0, %v3288_v53 }
 0x484   :  { %v3290_v35 = vmul.f32 %v4811_v21, %v3289_v15 }
 0x486   :  { %v3291_v44 = vadd.f32 %v4811_v21, %v3290_v35 }
 0x488   :  { %v3295_v63 = vsel %vm3294_vm0, %v4811_v21, %v3291_v44 }
 0x489   :  { %v3300_v2 = vsel %vm3297_vm1, %v3299_v42, %v3295_v63 }
 0x48a   :  { %3305 = vrot.lane.b32.xlu1 %v3300_v2, %s4991_s17 }
 0x4fc   :  { %v3306_v52 = vpop.permute.xlu1 %3305 }
 0x4fd   :  { %vm3308_vm3 = vcmp.gt.f32.partialorder %v3300_v2, %v3306_v52  ;;  %vm3309_vm4 = vcmp.eq.f32.partialorder %v3300_v2, %v3306_v52 }
 0x4fe   :  { %vm3313_vm5 = vmand %vm3309_vm4, %vm3312_vm2 }
 0x4ff   :  { %vm3314_vm6 = vmor %vm3308_vm3, %vm3313_vm5 }
 0x500   :  { %v3316_v27 = vsel %vm3314_vm6, %v8995_v10, %v3311_v31  ;;  %v3315_v45 = vsel %vm3314_vm6, %v3300_v2, %v3306_v52 }
 0x501   :  { %3323 = vrot.lane.b32.xlu1 %v3316_v27, %s4990_s8  ;;  %3318 = vrot.lane.b32.xlu0 %v3315_v45, %s4990_s8 }
 0x573   :  { %v3324_v47 = vpop.permute.xlu1 %3323  ;;  %v3319_v62 = vpop.permute.xlu0 %3318 }
 0x574   :  { %vm3325_vm7 = vcmp.lt.s32.totalorder %v3316_v27, %v3324_v47  ;;  %vm3321_vm8 = vcmp.gt.f32.partialorder %v3315_v45, %v3319_v62  ;;  %vm3322_vm9 = vcmp.eq.f32.partialorder %v3315_v45, %v3319_v62 }
 0x575   :  { %vm3326_vm10 = vmand %vm3322_vm9, %vm3325_vm7 }
 0x576   :  { %vm3327_vm11 = vmor %vm3321_vm8, %vm3326_vm10 }
 0x577   :  { %v3329_v49 = vsel %vm3327_vm11, %v3316_v27, %v3324_v47  ;;  %v3328_v56 = vsel %vm3327_vm11, %v3315_v45, %v3319_v62 }
 0x578   :  { %3336 = vrot.lane.b32.xlu0 %v3329_v49, %s4999_s4  ;;  %3331 = vrot.lane.b32.xlu2 %v3328_v56, %s4999_s4 }
 0x5d2   :  { %v3332_v28 = vpop.permute.xlu2 %3331 }
 0x5d3   :  { %vm3335_vm12 = vcmp.eq.f32.partialorder %v3328_v56, %v3332_v28  ;;  %vm3334_vm14 = vcmp.gt.f32.partialorder %v3328_v56, %v3332_v28 }
 0x5ea   :  { %v3337_v24 = vpop.permute.xlu0 %3336 }
 0x5eb   :  { %vm3338_vm13 = vcmp.lt.s32.totalorder %v3329_v49, %v3337_v24 }
 0x5ec   :  { %vm3339_vm15 = vmand %vm3335_vm12, %vm3338_vm13 }
 0x5ed   :  { %vm3340_vm0 = vmor %vm3334_vm14, %vm3339_vm15 }
 0x5ee   :  { %v3342_v36 = vsel %vm3340_vm0, %v3329_v49, %v3337_v24  ;;  %v3341_v9 = vsel %vm3340_vm0, %v3328_v56, %v3332_v28 }
 0x5ef   :  { %3349 = vrot.lane.b32.xlu2 %v3342_v36, %s5000_s30  ;;  %3344 = vrot.lane.b32.xlu1 %v3341_v9, %s5000_s30 }
 0x649   :  { %v3350_v18 = vpop.permute.xlu2 %3349 }
 0x64a   :  { %vm3351_vm1 = vcmp.lt.s32.totalorder %v3342_v36, %v3350_v18 }
 0x661   :  { %v3345_v17 = vpop.permute.xlu1 %3344 }
 0x662   :  { %vm3347_vm3 = vcmp.gt.f32.partialorder %v3341_v9, %v3345_v17  ;;  %vm3348_vm4 = vcmp.eq.f32.partialorder %v3341_v9, %v3345_v17 }
 0x663   :  { %vm3352_vm5 = vmand %vm3348_vm4, %vm3351_vm1 }
 0x664   :  { %vm9010_vm6 = vmor %vm3347_vm3, %vm3352_vm5 }
 0x665   :  { %v3355_v50 = vsel %vm9010_vm6, %v3342_v36, %v3350_v18  ;;  %v3354_v60 = vsel %vm9010_vm6, %v3341_v9, %v3345_v17 }
 0x666   :  { %3357 = vperm.xlu0 %4803, %v3355_v50  }
 0x6d8   :  { %v3358_v16 = vpop.permute.xlu0 %3357 }
 0x6d9   :  { %vm3359_vm7 = vcmp.eq.s32.totalorder %v8995_v10, %v3358_v16 }
 0x6da   :  { %v3360_v54 = vsel %vm3359_vm7, -inf, %v3300_v2 }
 0x6db   :  { %3362 = vrot.lane.b32.xlu1 %v3360_v54, %s4991_s17  ;;  %s5002_s17 = smov 113  }
 0x74d   :  { %v3363_v22 = vpop.permute.xlu1 %3362 }
 0x74e   :  { %vm3365_vm8 = vcmp.gt.f32.partialorder %v3360_v54, %v3363_v22  ;;  %vm3366_vm9 = vcmp.eq.f32.partialorder %v3360_v54, %v3363_v22 }
 0x74f   :  { %vm3367_vm10 = vmand %vm3366_vm9, %vm3312_vm2 }
 0x750   :  { %vm3368_vm11 = vmor %vm3365_vm8, %vm3367_vm10 }
 0x751   :  { %v3370_v58 = vsel %vm3368_vm11, %v8995_v10, %v3311_v31  ;;  %v3369_v25 = vsel %vm3368_vm11, %v3360_v54, %v3363_v22  ;;  %vm3418_vm11 = vcmask 7168  }
 0x752   :  { %3377 = vrot.lane.b32.xlu1 %v3370_v58, %s4990_s8  ;;  %3372 = vrot.lane.b32.xlu2 %v3369_v25, %s4990_s8  ;;  %s5003_s8 = smov 114  }
 0x7ac   :  { %v3373_v32 = vpop.permute.xlu2 %3372 }
 0x7ad   :  { %vm3376_vm12 = vcmp.eq.f32.partialorder %v3369_v25, %v3373_v32  ;;  %vm3375_vm14 = vcmp.gt.f32.partialorder %v3369_v25, %v3373_v32 }
 0x7c4   :  { %v3378_v6 = vpop.permute.xlu1 %3377 }
 0x7c5   :  { %vm3379_vm13 = vcmp.lt.s32.totalorder %v3370_v58, %v3378_v6 }
 0x7c6   :  { %vm3380_vm15 = vmand %vm3376_vm12, %vm3379_vm13  ;;  %vm3420_vm12 = vcmask 9216  }
 0x7c7   :  { %vm3381_vm0 = vmor %vm3375_vm14, %vm3380_vm15 }
 0x7c8   :  { %v3383_v23 = vsel %vm3381_vm0, %v3370_v58, %v3378_v6  ;;  %v3382_v30 = vsel %vm3381_vm0, %v3369_v25, %v3373_v32 }
 0x7c9   :  { %3390 = vrot.lane.b32.xlu0 %v3383_v23, %s4999_s4  ;;  %3385 = vrot.lane.b32.xlu2 %v3382_v30, %s4999_s4 }
 0x7d1   :  { %3411 = vrot.lane.b32.xlu0 %v3354_v60, %s5002_s17 }
 0x823   :  { %v3386_v51 = vpop.permute.xlu2 %3385 }
 0x824   :  { %vm3389_vm2 = vcmp.eq.f32.partialorder %v3382_v30, %v3386_v51  ;;  %vm3388_vm3 = vcmp.gt.f32.partialorder %v3382_v30, %v3386_v51 }
 0x83b   :  { %v3391_v7 = vpop.permute.xlu0 %3390 }
 0x83c   :  { %vm3392_vm1 = vcmp.lt.s32.totalorder %v3383_v23, %v3391_v7 }
 0x83d   :  { %vm3393_vm4 = vmand %vm3389_vm2, %vm3392_vm1 }
 0x83e   :  { %vm3394_vm5 = vmor %vm3388_vm3, %vm3393_vm4 }
 0x83f   :  { %v3396_v57 = vsel %vm3394_vm5, %v3383_v23, %v3391_v7  ;;  %v3395_v55 = vsel %vm3394_vm5, %v3382_v30, %v3386_v51 }
 0x840   :  { %3403 = vrot.lane.b32.xlu2 %v3396_v57, %s5000_s30  ;;  %3398 = vrot.lane.b32.xlu1 %v3395_v55, %s5000_s30 }
 0x843   :  { %v3412_v34 = vpop.permute.xlu0 %3411 }
 0x848   :  { %3422 = vrot.lane.b32.xlu2 %v3355_v50, %s5002_s17 }
 0x89a   :  { %v3404_v0 = vpop.permute.xlu2 %3403 }
 0x89b   :  { %vm3405_vm7 = vcmp.lt.s32.totalorder %v3396_v57, %v3404_v0 }
 0x8a2   :  { %v3423_v5 = vpop.permute.xlu2 %3422 }
 0x8b2   :  { %v3399_v59 = vpop.permute.xlu1 %3398 }
 0x8b3   :  { %vm3401_vm6 = vcmp.gt.f32.partialorder %v3395_v55, %v3399_v59  ;;  %vm3402_vm8 = vcmp.eq.f32.partialorder %v3395_v55, %v3399_v59 }
 0x8b4   :  { %vm3406_vm9 = vmand %vm3402_vm8, %vm3405_vm7 }
 0x8b5   :  { %vm3407_vm10 = vmor %vm3401_vm6, %vm3406_vm9 }
 0x8b6   :  { %v3408_v43 = vsel %vm3407_vm10, %v3395_v55, %v3399_v59  ;;  %v3409_v4 = vsel %vm3407_vm10, %v3396_v57, %v3404_v0 }
 0x8b7   :  { %3415 = vrot.lane.b32.xlu1 %v3408_v43, %s5003_s8  ;;  %3424 = vrot.lane.b32.xlu0 %v3409_v4, %s5003_s8 }
 0x929   :  { %v3416_v11 = vpop.permute.xlu1 %3415  ;;  %v3425_v1 = vpop.permute.xlu0 %3424 }
 0x92a   :  { %v3419_v13 = vsel %vm3418_vm11, %v3412_v34, %v3416_v11  ;;  %v3426_v29 = vsel %vm3418_vm11, %v3423_v5, %v3425_v1 }
 0x92b   :  { %3427 = vst.msk [vmem:[#allocation4] sm:$0x3] %vm3420_vm12, %v3426_v29 }
 0x92c   :  { %3421 = vst.msk [vmem:[#allocation2] sm:$0x3] %vm3420_vm12, %v3419_v13  ;;  %3451 = dma.vmem_to_hbm [thread:$0]  %s3447_s16, 32, %s3449_s9, [#allocation5]  }
 0x92d   :  { %3440 = dma.vmem_to_hbm [thread:$0]  %s3436_s11, 32, %s3438_s15, [#allocation3]  }
 0x92e   :  { %4986 = dma.done.wait [#allocation3], 32  }
 0x92f   :  { %4987 = vsyncadd [#allocation3], 4294967264 }
 0x930   :  { %4988 = dma.done.wait [#allocation5], 32  }
 0x931   :  { %4989 = vsyncadd [#allocation5], 4294967264 }
 0x932   :  { %3462 = vsyncpa [#allocation3], 1 }
 0x933   :  { %3463 = vsyncpa [#allocation5], 1 }

</bundles_post_ra>
